<compile_context>
chip_gen: v7x
topology: tpu7x:2x2x1
jax: 0.10.0
libtpu: 0.0.40
codegen_flags: <defaults>
</compile_context>

<pallas_src>
import math

import jax
import jax.numpy as jnp
from jax import lax
from jax.experimental import pallas as pl
from jax.experimental.pallas import tpu as pltpu

ELMO_SIZE = 2048
INPUT_ENCODER_HIDDEN_SIZE = 128
TEMPLATE_ENCODING_SIZE = 128
GLOBAL_TEMPLATE_ENCODING_SIZE = 256
HID = INPUT_ENCODER_HIDDEN_SIZE

VMEM = pl.BlockSpec(memory_space=pltpu.MemorySpace.VMEM)
SMEM = pl.BlockSpec(memory_space=pltpu.MemorySpace.SMEM)

ROW_BLOCK = 256  # row tile for the projection / MLP kernels


def _row_block(n):
    return n if n <= ROW_BLOCK else ROW_BLOCK


# ----------------------------------------------------------------------------
# GRU input projection: gi = x @ [Wih_fwd || Wih_bwd] + bih   (row-tiled, weights
# resident; x is cast to the weight dtype inside the kernel -> bf16 MXU for layer 0)
# ----------------------------------------------------------------------------
def _proj_kernel(x_ref, w_ref, b_ref, o_ref):
    x = x_ref[...].astype(w_ref.dtype)
    o_ref[...] = (jnp.dot(x, w_ref[...], preferred_element_type=jnp.float32)
                  + b_ref[...])


def gru_proj_pallas(x_flat, w, b):
    N, d_in = x_flat.shape
    d_out = w.shape[1]
    bm = _row_block(N)
    return pl.pallas_call(
        _proj_kernel,
        out_shape=jax.ShapeDtypeStruct((N, d_out), jnp.float32),
        grid=(pl.cdiv(N, bm),),
        in_specs=[pl.BlockSpec((bm, d_in), lambda i: (i, 0)),
                  pl.BlockSpec((d_in, d_out), lambda i: (0, 0)),
                  pl.BlockSpec((1, d_out), lambda i: (0, 0))],
        out_specs=pl.BlockSpec((bm, d_out), lambda i: (i, 0)),
        compiler_params=pltpu.CompilerParams(dimension_semantics=("parallel",)),
    )(x_flat, w, b)


def gru_proj_ref(x_flat, w, b):
    return jnp.dot(x_flat.astype(w.dtype), w,
                   preferred_element_type=jnp.float32) + b


# ----------------------------------------------------------------------------
# GRU recurrence: both directions fused in one kernel (fwd at t, bwd at L-1-t).
# Only the small [B,128] x [128,384] matmuls remain inside the loop.
# ----------------------------------------------------------------------------
def _gru_rec_kernel(gi_ref, whhf_ref, whhb_ref, bhhf_ref, bhhb_ref, out_ref):
    L, B, _ = gi_ref.shape
    Hh = whhf_ref.shape[0]

    def cell(gi, gh, h):
        r = jax.nn.sigmoid(gi[:, :Hh] + gh[:, :Hh])
        z = jax.nn.sigmoid(gi[:, Hh:2 * Hh] + gh[:, Hh:2 * Hh])
        n = jnp.tanh(gi[:, 2 * Hh:] + r * gh[:, 2 * Hh:])
        return (1.0 - z) * n + z * h

    def step(t, carry):
        h_f, h_b = carry
        tb = L - 1 - t
        gi_f = gi_ref[t][:, :3 * Hh]
        gi_b = gi_ref[tb][:, 3 * Hh:]
        gh_f = jnp.dot(h_f, whhf_ref[...],
                       preferred_element_type=jnp.float32) + bhhf_ref[...]
        gh_b = jnp.dot(h_b, whhb_ref[...],
                       preferred_element_type=jnp.float32) + bhhb_ref[...]
        h_f = cell(gi_f, gh_f, h_f)
        h_b = cell(gi_b, gh_b, h_b)
        out_ref[t, :, :Hh] = h_f
        out_ref[tb, :, Hh:] = h_b
        return (h_f, h_b)

    h0 = jnp.zeros((B, Hh), jnp.float32)
    lax.fori_loop(0, L, step, (h0, h0), unroll=2)


def gru_rec_pallas(gi_tm, whh_f, whh_b, bhh_f, bhh_b):
    L, B, _ = gi_tm.shape
    Hh = whh_f.shape[0]
    return pl.pallas_call(
        _gru_rec_kernel,
        out_shape=jax.ShapeDtypeStruct((L, B, 2 * Hh), jnp.float32),
        in_specs=[VMEM, VMEM, VMEM, VMEM, VMEM],
        out_specs=VMEM,
    )(gi_tm, whh_f, whh_b, bhh_f, bhh_b)


def gru_rec_ref(gi_tm, whh_f, whh_b, bhh_f, bhh_b):
    L, B, _ = gi_tm.shape
    Hh = whh_f.shape[0]

    def direction(gis, whh, bhh, reverse):
        h = jnp.zeros((B, Hh), jnp.float32)
        outs = [None] * L
        order = range(L - 1, -1, -1) if reverse else range(L)
        for t in order:
            gi = gis[t]
            gh = h @ whh + bhh
            r = jax.nn.sigmoid(gi[:, :Hh] + gh[:, :Hh])
            z = jax.nn.sigmoid(gi[:, Hh:2 * Hh] + gh[:, Hh:2 * Hh])
            n = jnp.tanh(gi[:, 2 * Hh:] + r * gh[:, 2 * Hh:])
            h = (1.0 - z) * n + z * h
            outs[t] = h
        return jnp.stack(outs, axis=0)

    fwd = direction(gi_tm[:, :, :3 * Hh], whh_f, bhh_f, False)
    bwd = direction(gi_tm[:, :, 3 * Hh:], whh_b, bhh_b, True)
    return jnp.concatenate([fwd, bwd], axis=-1)


def bigru(word_repr, gru_params, use_pallas):
    """2-layer bidirectional GRU.  Returns time-major output [L, B, 2H]."""
    B, L, _ = word_repr.shape
    proj = gru_proj_pallas if use_pallas else gru_proj_ref
    rec = gru_rec_pallas if use_pallas else gru_rec_ref

    h_tm = None
    for li, p in enumerate(gru_params):
        if li == 0:
            gi = proj(word_repr.reshape(B * L, -1), p["wih"], p["bih"])   # (b,l) rows
            gi_tm = gi.reshape(B, L, -1).transpose(1, 0, 2)               # small re-layout
        else:
            gi = proj(h_tm.reshape(L * B, -1), p["wih"], p["bih"])        # (l,b) rows
            gi_tm = gi.reshape(L, B, -1)
        h_tm = rec(gi_tm, p["whh_f"], p["whh_b"], p["bhh_f"], p["bhh_b"])
    return h_tm


# ----------------------------------------------------------------------------
# Linear -> PReLU -> Linear (row-tiled, weights resident)
# ----------------------------------------------------------------------------
def _mlp_kernel(x_ref, w1_ref, b1_ref, alpha_ref, w2_ref, b2_ref, out_ref):
    h = jnp.dot(x_ref[...], w1_ref[...],
                preferred_element_type=jnp.float32) + b1_ref[...]
    h = jnp.maximum(h, 0.0) + alpha_ref[0] * jnp.minimum(h, 0.0)
    out_ref[...] = jnp.dot(h, w2_ref[...],
                           preferred_element_type=jnp.float32) + b2_ref[...]


def mlp_pallas(x, w1, b1, alpha, w2, b2):
    N, d_in = x.shape
    d_h = w1.shape[1]
    d_out = w2.shape[1]
    bm = _row_block(N)
    return pl.pallas_call(
        _mlp_kernel,
        out_shape=jax.ShapeDtypeStruct((N, d_out), jnp.float32),
        grid=(pl.cdiv(N, bm),),
        in_specs=[pl.BlockSpec((bm, d_in), lambda i: (i, 0)),
                  pl.BlockSpec((d_in, d_h), lambda i: (0, 0)),
                  pl.BlockSpec((1, d_h), lambda i: (0, 0)),
                  SMEM,
                  pl.BlockSpec((d_h, d_out), lambda i: (0, 0)),
                  pl.BlockSpec((1, d_out), lambda i: (0, 0))],
        out_specs=pl.BlockSpec((bm, d_out), lambda i: (i, 0)),
        compiler_params=pltpu.CompilerParams(dimension_semantics=("parallel",)),
    )(x, w1, b1, alpha, w2, b2)


def mlp_ref(x, w1, b1, alpha, w2, b2):
    h = x @ w1 + b1
    h = jnp.maximum(h, 0.0) + alpha[0] * jnp.minimum(h, 0.0)
    return h @ w2 + b2


# ----------------------------------------------------------------------------
# Attention: ONE lane-dense matmul [T*S, D] x [D, B*L], fused with the
# attention_adjust affine and the per-(row, batch) slot-sum reduction.
# ----------------------------------------------------------------------------
def _attention_kernel(slots_ref, ose_ref, a_ref, c_ref, att_ref, sums_ref):
    att = lax.dot_general(slots_ref[...], ose_ref[...],
                          (((1,), (1,)), ((), ())),
                          preferred_element_type=jnp.float32)        # [TS, B*L]
    att = att * a_ref[0] + c_ref[0]
    att_ref[...] = att

    BL = ose_ref.shape[0]
    B = sums_ref.shape[1]
    L = BL // B
    grp = lax.broadcasted_iota(jnp.int32, (BL, B), 0) // L
    col = lax.broadcasted_iota(jnp.int32, (BL, B), 1)
    mask = (grp == col).astype(jnp.float32)                           # [B*L, B]
    sums_ref[...] = jnp.dot(att, mask, preferred_element_type=jnp.float32)


def attention_pallas(slots_flat, ose_flat, a, c, B):
    TS, _ = slots_flat.shape
    BL = ose_flat.shape[0]
    return pl.pallas_call(
        _attention_kernel,
        out_shape=(jax.ShapeDtypeStruct((TS, BL), jnp.float32),
                   jax.ShapeDtypeStruct((TS, B), jnp.float32)),
        in_specs=[VMEM, VMEM, SMEM, SMEM],
        out_specs=(VMEM, VMEM),
    )(slots_flat, ose_flat, a, c)


# ----------------------------------------------------------------------------
# Parameter init (deterministic, PyTorch-default-style uniform ranges)
# ----------------------------------------------------------------------------
def _uniform(key, shape, k):
    return jax.random.uniform(key, shape, jnp.float32, -k, k)


def init_gru_params(key, input_size, hidden, num_layers=2, bf16_min_k=512):
    k = 1.0 / math.sqrt(hidden)
    params = []
    for layer in range(num_layers):
        in_size = input_size if layer == 0 else 2 * hidden
        key, k1, k2, k3, k4, k5, k6, k7, k8 = jax.random.split(key, 9)
        wih = jnp.concatenate([_uniform(k1, (in_size, 3 * hidden), k),
                               _uniform(k2, (in_size, 3 * hidden), k)], axis=1)
        if in_size >= bf16_min_k:           # bf16 operands for the wide layer-0 matmul
            wih = wih.astype(jnp.bfloat16)
        params.append(dict(
            wih=wih,
            bih=jnp.concatenate([_uniform(k3, (1, 3 * hidden), k),
                                 _uniform(k4, (1, 3 * hidden), k)], axis=1),
            whh_f=_uniform(k5, (hidden, 3 * hidden), k),
            whh_b=_uniform(k6, (hidden, 3 * hidden), k),
            bhh_f=_uniform(k7, (1, 3 * hidden), k),
            bhh_b=_uniform(k8, (1, 3 * hidden), k),
        ))
    return params, key


def init_mlp_params(key, d_in, d_hidden, d_out):
    key, k1, k2, k3, k4 = jax.random.split(key, 5)
    ka = 1.0 / math.sqrt(d_in)
    kb = 1.0 / math.sqrt(d_hidden)
    p = (
        _uniform(k1, (d_in, d_hidden), ka),
        _uniform(k2, (1, d_hidden), ka),
        jnp.array([0.25], jnp.float32),        # PReLU default alpha
        _uniform(k3, (d_hidden, d_out), kb),
        _uniform(k4, (1, d_out), kb),
    )
    return p, key


def init_params(key):
    gru, key = init_gru_params(key, ELMO_SIZE, HID, 2)
    i2s, key = init_mlp_params(key, 2 * HID, TEMPLATE_ENCODING_SIZE, TEMPLATE_ENCODING_SIZE)
    md, key = init_mlp_params(key, GLOBAL_TEMPLATE_ENCODING_SIZE + 2 * HID,
                              TEMPLATE_ENCODING_SIZE, 1)
    key, k1, k2, k3, k4 = jax.random.split(key, 5)
    params = dict(
        gru=gru,
        input_to_slot=i2s,
        match_detector=md,
        att_w=_uniform(k1, (1,), 1.0),
        att_b=_uniform(k2, (1,), 1.0),
        smp_w=_uniform(k3, (1,), 1.0),
        smp_b=_uniform(k4, (1,), 1.0),
    )
    return params, key


# ----------------------------------------------------------------------------
# Forward (mirrors TemplateMatcher.forward)
# ----------------------------------------------------------------------------
def forward(params, templates, word_repr, use_pallas=True):
    padded_slots, num_slots, global_encodings = templates
    B, L, _ = word_repr.shape
    T, S, D = padded_slots.shape

    # 2-layer bi-GRU input_encoder (time-major internal layout)
    h_tm = bigru(word_repr, params["gru"], use_pallas)          # [L, B, 2H]
    output = jnp.transpose(h_tm, (1, 0, 2))                     # [B, L, 2H]

    mlp = mlp_pallas if use_pallas else mlp_ref
    ose = mlp(output.reshape(B * L, 2 * HID), *params["input_to_slot"])   # [B*L, D]

    # attention (+ fused slot-sum)
    slots_flat = padded_slots.reshape(T * S, D)
    if use_pallas:
        att2, sums = attention_pallas(slots_flat, ose,
                                      params["att_w"], params["att_b"], B)
    else:
        att2 = (slots_flat @ ose.T) * params["att_w"][0] + params["att_b"][0]
        sums = att2.reshape(T * S, B, L).sum(axis=-1)
    attention = att2.reshape(T, S, B, L).transpose(2, 0, 1, 3)  # [B, T, S, L]
    slot_sums = sums.reshape(T, S, B).sum(axis=1).T             # [B, T]

    # bidirectional_rnn_output_edges + match_detector
    edges = jnp.concatenate([h_tm[L - 1, :, :HID], h_tm[0, :, HID:]], axis=1)  # [B, 2H]
    edges_rep = jnp.broadcast_to(edges[:, None, :], (B, T, 2 * HID))
    ge_rep = jnp.broadcast_to(global_encodings[None],
                              (B, T, GLOBAL_TEMPLATE_ENCODING_SIZE))
    eg = jnp.concatenate([ge_rep, edges_rep], axis=2).reshape(
        B * T, GLOBAL_TEMPLATE_ENCODING_SIZE + 2 * HID)
    gmp = mlp(eg, *params["match_detector"]).reshape(B, T)      # global_match_prob

    # slot_match_prob_adjust + combine (O(B*T) scalars -> wrapper)
    match_prob = gmp + (slot_sums / num_slots[None, :]) * params["smp_w"][0] \
        + params["smp_b"][0]
    return attention, match_prob


if __name__ == "__main__":
    key = jax.random.PRNGKey(0)
    params, key = init_params(key)

    B, L = 3, 8          # sentences, tokens per sentence
    T, S = 2, 3          # templates, max slots per template

    key, kw, ks, kg = jax.random.split(key, 4)
    word_repr = jax.random.normal(kw, (B, L, ELMO_SIZE), jnp.float32)
    padded_slots = jax.random.normal(ks, (T, S, TEMPLATE_ENCODING_SIZE), jnp.float32)
    global_encodings = jax.random.normal(kg, (T, GLOBAL_TEMPLATE_ENCODING_SIZE), jnp.float32)
    num_slots = jnp.array([3.0, 2.0], jnp.float32)
    templates = (padded_slots, num_slots, global_encodings)

    attention, match_prob = jax.block_until_ready(
        forward(params, templates, word_repr, use_pallas=True))

    att_ref, mp_ref = forward(params, templates, word_repr, use_pallas=False)

    assert attention.shape == (B, T, S, L)
    assert match_prob.shape == (B, T)
    assert jnp.allclose(attention, att_ref, atol=5e-3, rtol=5e-3)
    assert jnp.allclose(match_prob, mp_ref, atol=5e-3, rtol=5e-3)
    print("KERNEL_OK")
</pallas_src>

<mosaic_0001>
module attributes {stable_mosaic.version = 11 : i64} {
  func.func @_proj_kernel(%arg0: i32, %arg1: memref<24x2048xf32, #tpu.memory_space<vmem>>, %arg2: memref<2048x768xbf16, #tpu.memory_space<vmem>>, %arg3: memref<1x768xf32, #tpu.memory_space<vmem>>, %arg4: memref<24x768xf32, #tpu.memory_space<vmem>>) attributes {dimension_semantics = [#tpu.dimension_semantics<parallel>], iteration_bounds = array<i64: 1>, scalar_prefetch = 0 : i64, scratch_operands = 0 : i64, tpu.core_type = #tpu.core_type<tc>, window_params = [{transform_indices = @transform_0, window_bounds = array<i64: 24, 2048>}, {pipeline_mode = #tpu.pipeline_mode<synchronous>, transform_indices = @transform_1, window_bounds = array<i64: 2048, 768>}, {pipeline_mode = #tpu.pipeline_mode<synchronous>, transform_indices = @transform_2, window_bounds = array<i64: 1, 768>}, {transform_indices = @transform_3, window_bounds = array<i64: 24, 768>}]} {
    %c0 = arith.constant 0 : index
    %c0_0 = arith.constant 0 : index
    %0 = vector.load %arg1[%c0, %c0_0] : memref<24x2048xf32, #tpu.memory_space<vmem>>, vector<24x2048xf32>
    %1 = arith.truncf %0 : vector<24x2048xf32> to vector<24x2048xbf16>
    %c0_1 = arith.constant 0 : index
    %c0_2 = arith.constant 0 : index
    %2 = vector.load %arg2[%c0_1, %c0_2] : memref<2048x768xbf16, #tpu.memory_space<vmem>>, vector<2048x768xbf16>
    %cst = arith.constant dense<0.000000e+00> : vector<24x768xf32>
    %3 = tpu.matmul %1, %2, %cst {dimension_numbers = #tpu.dot_dimension_numbers<[1], [0], [0], [1], [0, 0, 1, 1], [], []>} : vector<24x2048xbf16>, vector<2048x768xbf16>, vector<24x768xf32> -> vector<24x768xf32>
    %c0_3 = arith.constant 0 : index
    %c0_4 = arith.constant 0 : index
    %4 = vector.load %arg3[%c0_3, %c0_4] : memref<1x768xf32, #tpu.memory_space<vmem>>, vector<1x768xf32>
    %5 = vector.broadcast %4 : vector<1x768xf32> to vector<24x768xf32>
    %6 = arith.addf %3, %5 : vector<24x768xf32>
    %c0_5 = arith.constant 0 : index
    %c0_6 = arith.constant 0 : index
    %7 = vector.load %arg4[%c0_5, %c0_6] : memref<24x768xf32, #tpu.memory_space<vmem>>, vector<24x768xf32>
    tpu.vector_store %arg4[%c0_5, %c0_6], %6 {strides = array<i32>} : memref<24x768xf32, #tpu.memory_space<vmem>>, vector<24x768xf32>,
    return
  }
  func.func @transform_0(%arg0: i32) -> (i32, i32) {
    %c0_i32 = arith.constant 0 : i32
    %c0_i32_0 = arith.constant 0 : i32
    return %arg0, %c0_i32 : i32, i32
  }
  func.func @transform_1(%arg0: i32) -> (i32, i32) {
    %c0_i32 = arith.constant 0 : i32
    %c0_i32_0 = arith.constant 0 : i32
    %c0_i32_1 = arith.constant 0 : i32
    return %c0_i32, %c0_i32_0 : i32, i32
  }
  func.func @transform_2(%arg0: i32) -> (i32, i32) {
    %c0_i32 = arith.constant 0 : i32
    %c0_i32_0 = arith.constant 0 : i32
    %c0_i32_1 = arith.constant 0 : i32
    return %c0_i32, %c0_i32_0 : i32, i32
  }
  func.func @transform_3(%arg0: i32) -> (i32, i32) {
    %c0_i32 = arith.constant 0 : i32
    %c0_i32_0 = arith.constant 0 : i32
    return %arg0, %c0_i32 : i32, i32
  }
}

</mosaic_0001>

<bundles_post_ra>
// kernel: tpu_custom_call.1
= control target key start
LH: loop header
LB: loop body
LE: loop exit
PB: predicated region body
PF: predicated region fallthrough
CT: control target
= control target key end

     0   :  { %8 = vsyncpa [#allocation3], 0  ;;  %s8489_s0 = inlined_call_operand.hbm [shape: f32[24,2048], index: 0, kind: input, shape index: {}]   ;;  %s8490_s1 = inlined_call_operand.hbm [shape: bf16[2048,768], index: 1, kind: input, shape index: {}]   ;;  %s8491_s2 = inlined_call_operand.hbm [shape: f32[1,768], index: 2, kind: input, shape index: {}]   ;;  %s8492_s3 = inlined_call_operand.hbm [shape: f32[24,768], index: 3, kind: output, shape index: {}]  }
   0x1   :  { %9 = vsyncpa [#allocation6], 0 }
   0x2   :  { %10 = vsyncpa [#allocation4], 0  ;;  %s8243_s12 = smov [#allocation5]   ;;  %s8149_s16 = scalar_lea.hbm %s8490_s1, 98304 }
   0x3   :  { %s28_s13 = sshll.u32 %s8243_s12, 4  ;;  %p8150_p0 = scmp.ne.s32.totalorder %s8490_s1, %s8149_s16  ;;  %s29_s13 = int_to_ptr.vmem [resolvable:$true] %s28_s13 }
   0x4   :  { %p8153_p1 = scmp.lt.u32.totalorder %s8149_s16, %s8490_s1 }
   0x6   :  { %p8155_p2 = pnand %p8153_p1, %p8150_p0 }
   0x8   :  { %8158 = shalt.err (!%p8155_p2)
}
   0x9   :  { %s8159_s21 = scalar_lea.vmem %s29_s13, 98304  ;;  %p8164_p4 = scmp.lt.s32.totalorder %s29_s13, %s29_s13 }
   0xa   :  { %p8160_p3 = scmp.ne.s32.totalorder %s29_s13, %s8159_s21  ;;  %p8165_p5 = scmp.lt.s32.totalorder %s8159_s21, %s8159_s21 }
   0xc   :  { %p8166_p6 = por %p8165_p5, %p8164_p4 }
   0xe   :  { %p8167_p7 = pnand %p8166_p6, %p8160_p3 }
  0x10   :  { %8170 = shalt.err (!%p8167_p7)
}
  0x11   :  { %s8244_s22 = smov 384   ;;  %s8245_s23 = smov 24  }
  0x12   :  { %34 = dma.hbm_to_vmem [thread:$0]  %s8490_s1, 98304, %s29_s13, [#allocation6], %s8244_s22, %s8244_s22, %s8245_s23  }
  0x13   :  { %s8246_s26 = smov [#allocation2]   ;;  %s8171_s30 = scalar_lea.hbm %s8489_s0, 6144 }
  0x14   :  { %s16_s27 = sshll.u32 %s8246_s26, 4  ;;  %p8172_p8 = scmp.ne.s32.totalorder %s8489_s0, %s8171_s30  ;;  %s17_s27 = int_to_ptr.vmem [resolvable:$true] %s16_s27 }
  0x15   :  { %p8175_p9 = scmp.lt.u32.totalorder %s8171_s30, %s8489_s0 }
  0x17   :  { %p8177_p10 = pnand %p8175_p9, %p8172_p8 }
  0x19   :  { %8180 = shalt.err (!%p8177_p10)
}
  0x1a   :  { %s8181_s8 = scalar_lea.vmem %s17_s27, 6144  ;;  %p8186_p12 = scmp.lt.s32.totalorder %s17_s27, %s17_s27 }
  0x1b   :  { %p8182_p11 = scmp.ne.s32.totalorder %s17_s27, %s8181_s8  ;;  %p8187_p13 = scmp.lt.s32.totalorder %s8181_s8, %s8181_s8 }
  0x1d   :  { %p8188_p0 = por %p8187_p13, %p8186_p12 }
  0x1f   :  { %p8189_p1 = pnand %p8188_p0, %p8182_p11 }
  0x21   :  { %8192 = shalt.err (!%p8189_p1)
}
  0x22   :  { %s8247_s1 = smov 2048   ;;  %s8248_s9 = smov 128  }
  0x23   :  { %22 = dma.hbm_to_vmem [thread:$0]  %s8489_s0, 6144, %s17_s27, [#allocation3], %s8247_s1, %s8247_s1, %s8248_s9  }
  0x24   :  { %s8249_s12 = smov [#allocation7]   ;;  %s8193_s16 = scalar_lea.hbm %s8491_s2, 96 }
  0x25   :  { %s41_s13 = sshll.u32 %s8249_s12, 4  ;;  %p8194_p2 = scmp.ne.s32.totalorder %s8491_s2, %s8193_s16  ;;  %s42_s13 = int_to_ptr.vmem [resolvable:$true] %s41_s13 }
  0x26   :  { %p8197_p3 = scmp.lt.u32.totalorder %s8193_s16, %s8491_s2 }
  0x28   :  { %p8199_p4 = pnand %p8197_p3, %p8194_p2 }
  0x2a   :  { %8202 = shalt.err (!%p8199_p4)
}
  0x2b   :  { %s8203_s21 = scalar_lea.vmem %s42_s13, 96  ;;  %p8208_p6 = scmp.lt.s32.totalorder %s42_s13, %s42_s13 }
  0x2c   :  { %p8204_p5 = scmp.ne.s32.totalorder %s42_s13, %s8203_s21  ;;  %p8209_p7 = scmp.lt.s32.totalorder %s8203_s21, %s8203_s21 }
  0x2e   :  { %p8210_p8 = por %p8209_p7, %p8208_p6 }
  0x30   :  { %p8211_p9 = pnand %p8210_p8, %p8204_p5 }
  0x32   :  { %8214 = shalt.err (!%p8211_p9)
}
  0x33   :  { %44 = dma.hbm_to_vmem [thread:$0]  %s8491_s2, 96, %s42_s13, [#allocation6]  }
  0x34   :  { %8237 = dma.done.wait [#allocation3], 6144  }
  0x35   :  { %8238 = vsyncadd [#allocation3], 4294961152 }
  0x36   :  { %8239 = dma.done.wait [#allocation6], 98400  }
  0x37   :  { %8240 = vsyncadd [#allocation6], 4294868896  ;;  %v6996_v0 = vld [vmem:[#allocation5 + $0x4] ss:$24 sps:$4 sm:$0xff]   ;;  %v7000_v2 = vld [vmem:[#allocation5] ss:$24 sps:$4 sm:$0xff]  }
  0x38   :  { %v6998_v1 = vld [vmem:[#allocation5 + $0xc04] ss:$24 sps:$4 sm:$0xff]   ;;  %4774 = vmatprep.subr.bf16.mxu1 %v6996_v0  ;;  %v7001_v3 = vld [vmem:[#allocation5 + $0xc00] ss:$24 sps:$4 sm:$0xff]   ;;  %v7002_v4 = vld [vmem:[#allocation5 + $0x34] ss:$24 sps:$4 sm:$0xff]  }
  0x39   :  { %4978 = vmatprep.subr.bf16.mxu0 %v6998_v1  ;;  %4775 = vmatpush1.bf16.msra.mxu1 %v7000_v2  ;;  %v7004_v5 = vld [vmem:[#allocation5 + $0xc34] ss:$24 sps:$4 sm:$0xff]   ;;  %v7006_v6 = vld [vmem:[#allocation5 + $0x30] ss:$24 sps:$4 sm:$0xff]   ;;  %v7008_v8 = vld [vmem:[#allocation5 + $0x64] ss:$24 sps:$4 sm:$0xff]  }
  0x3a   :  { %4979 = vmatpush1.bf16.msra.mxu0 %v7001_v3  ;;  %4776 = vmatprep.subr.bf16.mxu1 %v7002_v4  ;;  %v7007_v7 = vld [vmem:[#allocation5 + $0xc30] ss:$24 sps:$4 sm:$0xff]   ;;  %v7010_v9 = vld [vmem:[#allocation5 + $0xc64] ss:$24 sps:$4 sm:$0xff]   ;;  %v7012_v10 = vld [vmem:[#allocation5 + $0x60] ss:$24 sps:$4 sm:$0xff]  }
  0x3b   :  { %4980 = vmatprep.subr.bf16.mxu0 %v7004_v5  ;;  %v7013_v11 = vld [vmem:[#allocation5 + $0xc60] ss:$24 sps:$4 sm:$0xff]   ;;  %v7014_v12 = vld [vmem:[#allocation5 + $0x94] ss:$24 sps:$4 sm:$0xff]   ;;  %v7018_v14 = vld [vmem:[#allocation5 + $0x90] ss:$24 sps:$4 sm:$0xff]  }
  0x3c   :  { %v7016_v13 = vld [vmem:[#allocation5 + $0xc94] ss:$24 sps:$4 sm:$0xff]   ;;  %v7019_v15 = vld [vmem:[#allocation5 + $0xc90] ss:$24 sps:$4 sm:$0xff]   ;;  %v7020_v16 = vld [vmem:[#allocation5 + $0xc4] ss:$24 sps:$4 sm:$0xff]  }
  0x3d   :  { %4777 = vmatpush1.bf16.msra.mxu1 %v7006_v6  ;;  %v7022_v17 = vld [vmem:[#allocation5 + $0xcc4] ss:$24 sps:$4 sm:$0xff]   ;;  %v7024_v18 = vld [vmem:[#allocation5 + $0xc0] ss:$24 sps:$4 sm:$0xff]   ;;  %v7026_v20 = vld [vmem:[#allocation5 + $0xf4] ss:$24 sps:$4 sm:$0xff]  }
  0x3e   :  { %4981 = vmatpush1.bf16.msra.mxu0 %v7007_v7  ;;  %4778 = vmatprep.subr.bf16.mxu1 %v7008_v8  ;;  %v7025_v19 = vld [vmem:[#allocation5 + $0xcc0] ss:$24 sps:$4 sm:$0xff]   ;;  %v7028_v21 = vld [vmem:[#allocation5 + $0xcf4] ss:$24 sps:$4 sm:$0xff]   ;;  %v7030_v22 = vld [vmem:[#allocation5 + $0xf0] ss:$24 sps:$4 sm:$0xff]  }
  0x3f   :  { %4982 = vmatprep.subr.bf16.mxu0 %v7010_v9  ;;  %v7031_v23 = vld [vmem:[#allocation5 + $0xcf0] ss:$24 sps:$4 sm:$0xff]   ;;  %v7032_v24 = vld [vmem:[#allocation5 + $0x124] ss:$24 sps:$4 sm:$0xff]   ;;  %v7036_v26 = vld [vmem:[#allocation5 + $0x120] ss:$24 sps:$4 sm:$0xff]  }
  0x40   :  { %v7034_v25 = vld [vmem:[#allocation5 + $0xd24] ss:$24 sps:$4 sm:$0xff]   ;;  %v7037_v27 = vld [vmem:[#allocation5 + $0xd20] ss:$24 sps:$4 sm:$0xff]   ;;  %v7038_v28 = vld [vmem:[#allocation5 + $0x154] ss:$24 sps:$4 sm:$0xff]  }
  0x41   :  { %4779 = vmatpush1.bf16.msra.mxu1 %v7012_v10  ;;  %v7040_v29 = vld [vmem:[#allocation5 + $0xd54] ss:$24 sps:$4 sm:$0xff]   ;;  %v7042_v30 = vld [vmem:[#allocation5 + $0x150] ss:$24 sps:$4 sm:$0xff]   ;;  %v7044_v32 = vld [vmem:[#allocation5 + $0x184] ss:$24 sps:$4 sm:$0xff]  }
  0x42   :  { %4983 = vmatpush1.bf16.msra.mxu0 %v7013_v11  ;;  %4780 = vmatprep.subr.bf16.mxu1 %v7014_v12  ;;  %v7043_v31 = vld [vmem:[#allocation5 + $0xd50] ss:$24 sps:$4 sm:$0xff]   ;;  %v7046_v33 = vld [vmem:[#allocation5 + $0xd84] ss:$24 sps:$4 sm:$0xff]   ;;  %v7048_v34 = vld [vmem:[#allocation5 + $0x180] ss:$24 sps:$4 sm:$0xff]  }
  0x43   :  { %4984 = vmatprep.subr.bf16.mxu0 %v7016_v13  ;;  %v7049_v35 = vld [vmem:[#allocation5 + $0xd80] ss:$24 sps:$4 sm:$0xff]   ;;  %v7050_v36 = vld [vmem:[#allocation5 + $0x1b4] ss:$24 sps:$4 sm:$0xff]   ;;  %v7054_v38 = vld [vmem:[#allocation5 + $0x1b0] ss:$24 sps:$4 sm:$0xff]  }
  0x44   :  { %v7052_v37 = vld [vmem:[#allocation5 + $0xdb4] ss:$24 sps:$4 sm:$0xff]   ;;  %v7055_v39 = vld [vmem:[#allocation5 + $0xdb0] ss:$24 sps:$4 sm:$0xff]   ;;  %v7056_v40 = vld [vmem:[#allocation5 + $0x1e4] ss:$24 sps:$4 sm:$0xff]  }
  0x45   :  { %4781 = vmatpush1.bf16.msra.mxu1 %v7018_v14  ;;  %v7058_v41 = vld [vmem:[#allocation5 + $0xde4] ss:$24 sps:$4 sm:$0xff]   ;;  %v7060_v42 = vld [vmem:[#allocation5 + $0x1e0] ss:$24 sps:$4 sm:$0xff]   ;;  %v7062_v44 = vld [vmem:[#allocation5 + $0x214] ss:$24 sps:$4 sm:$0xff]  }
  0x46   :  { %4985 = vmatpush1.bf16.msra.mxu0 %v7019_v15  ;;  %4782 = vmatprep.subr.bf16.mxu1 %v7020_v16  ;;  %v7061_v43 = vld [vmem:[#allocation5 + $0xde0] ss:$24 sps:$4 sm:$0xff]   ;;  %v7064_v45 = vld [vmem:[#allocation5 + $0xe14] ss:$24 sps:$4 sm:$0xff]   ;;  %v7066_v46 = vld [vmem:[#allocation5 + $0x210] ss:$24 sps:$4 sm:$0xff]  }
  0x47   :  { %4986 = vmatprep.subr.bf16.mxu0 %v7022_v17  ;;  %v7067_v47 = vld [vmem:[#allocation5 + $0xe10] ss:$24 sps:$4 sm:$0xff]   ;;  %v7068_v50 = vld [vmem:[#allocation5 + $0x244] ss:$24 sps:$4 sm:$0xff]   ;;  %v7072_v56 = vld [vmem:[#allocation5 + $0x240] ss:$24 sps:$4 sm:$0xff]  }
  0x48   :  { %v55_v48 = vld [vmem:[#allocation2 + $0x8] sm:$0xff]  ;;  %v7070_v51 = vld [vmem:[#allocation5 + $0xe44] ss:$24 sps:$4 sm:$0xff]   ;;  %v7073_v57 = vld [vmem:[#allocation5 + $0xe40] ss:$24 sps:$4 sm:$0xff]   ;;  %s8250_s2 = smov [#allocation8]  }
  0x49   :  { %4783 = vmatpush1.bf16.msra.mxu1 %v7024_v18  ;;  %v71_v49 = vld [vmem:[#allocation2 + $0x88] sm:$0xff]  ;;  %v7080_v62 = vld [vmem:[#allocation5 + $0x2a4] ss:$24 sps:$4 sm:$0xff]   ;;  %v7084_v0 = vld [vmem:[#allocation5 + $0x2a0] ss:$24 sps:$4 sm:$0xff]   ;;  %s6021_s23 = sshll.u32 %s8250_s2, 4  ;;  %s6022_s23 = int_to_ptr.vmem [resolvable:$true] %s6021_s23 }
  0x4a   :  { %4987 = vmatpush1.bf16.msra.mxu0 %v7025_v19  ;;  %4784 = vmatprep.subr.bf16.mxu1 %v7026_v20  ;;  %v8309_v52 = vpack.c.bf16 %v71_v49, %v55_v48  ;;  %v63_v53 = vld [vmem:[#allocation2 + $0x48] sm:$0xff]  ;;  %v7082_v63 = vld [vmem:[#allocation5 + $0xea4] ss:$24 sps:$4 sm:$0xff]   ;;  %v7085_v1 = vld [vmem:[#allocation5 + $0xea0] ss:$24 sps:$4 sm:$0xff]   ;;  %s8215_s24 = scalar_lea.vmem %s6022_s23, 2304  ;;  %p8220_p11 = scmp.lt.s32.totalorder %s6022_s23, %s6022_s23 }
  0x4b   :  { %4988 = vmatprep.subr.bf16.mxu0 %v7028_v21  ;;  %v79_v54 = vld [vmem:[#allocation2 + $0xc8] sm:$0xff]  ;;  %v54_v6 = vld [vmem:[#allocation2] sm:$0xff]  ;;  %p8216_p10 = scmp.ne.s32.totalorder %s6022_s23, %s8215_s24  ;;  %p8221_p12 = scmp.lt.s32.totalorder %s8215_s24, %s8215_s24 }
  0x4c   :  { %4806 = vmatprep.mubr.bf16.mxu1 %v8309_v52  ;;  %v8312_v55 = vpack.c.bf16 %v79_v54, %v63_v53  ;;  %v7074_v58 = vld [vmem:[#allocation5 + $0x274] ss:$24 sps:$4 sm:$0xff]   ;;  %v7078_v60 = vld [vmem:[#allocation5 + $0x270] ss:$24 sps:$4 sm:$0xff]   ;;  %v7094_v7 = vld [vmem:[#allocation5 + $0x304] ss:$24 sps:$4 sm:$0xff]  }
  0x4d   :  { %4785 = vmatpush1.bf16.msra.mxu1 %v7030_v22  ;;  %v7076_v59 = vld [vmem:[#allocation5 + $0xe74] ss:$24 sps:$4 sm:$0xff]   ;;  %v7079_v61 = vld [vmem:[#allocation5 + $0xe70] ss:$24 sps:$4 sm:$0xff]   ;;  %v70_v8 = vld [vmem:[#allocation2 + $0x80] sm:$0xff]  ;;  %p8222_p13 = por %p8221_p12, %p8220_p11 }
  0x4e   :  { %4989 = vmatpush1.bf16.msra.mxu0 %v7031_v23  ;;  %4786 = vmatprep.subr.bf16.mxu1 %v7032_v24  ;;  %v7086_v2 = vld [vmem:[#allocation5 + $0x2d4] ss:$24 sps:$4 sm:$0xff]   ;;  %v7090_v4 = vld [vmem:[#allocation5 + $0x2d0] ss:$24 sps:$4 sm:$0xff]   ;;  %v62_v9 = vld [vmem:[#allocation2 + $0x40] sm:$0xff]  ;;  %v8315_v14 = vpack.c.bf16 %v70_v8, %v54_v6 }
  0x4f   :  { %4990 = vmatprep.subr.bf16.mxu0 %v7034_v25  ;;  %5010 = vmatprep.mubr.bf16.mxu0 %v8312_v55  ;;  %v7088_v3 = vld [vmem:[#allocation5 + $0xed4] ss:$24 sps:$4 sm:$0xff]   ;;  %v7091_v5 = vld [vmem:[#allocation5 + $0xed0] ss:$24 sps:$4 sm:$0xff]   ;;  %v78_v10 = vld [vmem:[#allocation2 + $0xc0] sm:$0xff]  ;;  %p8223_p0 = pnand %p8222_p13, %p8216_p10 }
  0x50   :  { %v7097_v11 = vld [vmem:[#allocation5 + $0xf04] ss:$24 sps:$4 sm:$0xff]   ;;  %v7092_v12 = vld [vmem:[#allocation5 + $0x300] ss:$24 sps:$4 sm:$0xff]   ;;  %v8317_v15 = vpack.c.bf16 %v78_v10, %v62_v9  ;;  %v7100_v16 = vld [vmem:[#allocation5 + $0x334] ss:$24 sps:$4 sm:$0xff]  }
  0x51   :  { %4787 = vmatpush1.bf16.msra.mxu1 %v7036_v26  ;;  %v7095_v13 = vld [vmem:[#allocation5 + $0xf00] ss:$24 sps:$4 sm:$0xff]   ;;  %v7103_v17 = vld [vmem:[#allocation5 + $0xf34] ss:$24 sps:$4 sm:$0xff]   ;;  %v7098_v18 = vld [vmem:[#allocation5 + $0x330] ss:$24 sps:$4 sm:$0xff]  }
  0x52   :  { %4991 = vmatpush1.bf16.msra.mxu0 %v7037_v27  ;;  %4788 = vmatprep.subr.bf16.mxu1 %v7038_v28  ;;  %v7101_v19 = vld [vmem:[#allocation5 + $0xf30] ss:$24 sps:$4 sm:$0xff]   ;;  %v7106_v20 = vld [vmem:[#allocation5 + $0x364] ss:$24 sps:$4 sm:$0xff]   ;;  %v7104_v22 = vld [vmem:[#allocation5 + $0x360] ss:$24 sps:$4 sm:$0xff]  }
  0x53   :  { %4992 = vmatprep.subr.bf16.mxu0 %v7040_v29  ;;  %v7109_v21 = vld [vmem:[#allocation5 + $0xf64] ss:$24 sps:$4 sm:$0xff]   ;;  %v7107_v23 = vld [vmem:[#allocation5 + $0xf60] ss:$24 sps:$4 sm:$0xff]   ;;  %v7112_v24 = vld [vmem:[#allocation5 + $0x394] ss:$24 sps:$4 sm:$0xff]  }
  0x54   :  { %v7115_v25 = vld [vmem:[#allocation5 + $0xf94] ss:$24 sps:$4 sm:$0xff]   ;;  %v7110_v26 = vld [vmem:[#allocation5 + $0x390] ss:$24 sps:$4 sm:$0xff]   ;;  %v7118_v28 = vld [vmem:[#allocation5 + $0x3c4] ss:$24 sps:$4 sm:$0xff]  }
  0x55   :  { %4789 = vmatpush1.bf16.msra.mxu1 %v7042_v30  ;;  %v7113_v27 = vld [vmem:[#allocation5 + $0xf90] ss:$24 sps:$4 sm:$0xff]   ;;  %v7121_v29 = vld [vmem:[#allocation5 + $0xfc4] ss:$24 sps:$4 sm:$0xff]   ;;  %v7116_v30 = vld [vmem:[#allocation5 + $0x3c0] ss:$24 sps:$4 sm:$0xff]  }
  0x56   :  { %4993 = vmatpush1.bf16.msra.mxu0 %v7043_v31  ;;  %4790 = vmatprep.subr.bf16.mxu1 %v7044_v32  ;;  %v7119_v31 = vld [vmem:[#allocation5 + $0xfc0] ss:$24 sps:$4 sm:$0xff]   ;;  %v7124_v32 = vld [vmem:[#allocation5 + $0x3f4] ss:$24 sps:$4 sm:$0xff]   ;;  %v7134_v54 = vld [vmem:[#allocation5 + $0x450] ss:$24 sps:$4 sm:$0xff]  }
  0x57   :  { %4994 = vmatprep.subr.bf16.mxu0 %v7046_v33  ;;  %v7127_v33 = vld [vmem:[#allocation5 + $0xff4] ss:$24 sps:$4 sm:$0xff]   ;;  %v7152_v6 = vld [vmem:[#allocation5 + $0x4e0] ss:$24 sps:$4 sm:$0xff]   ;;  %v7158_v10 = vld [vmem:[#allocation5 + $0x510] ss:$24 sps:$4 sm:$0xff]  }
  0x58   :  { %v7136_v48 = vld [vmem:[#allocation5 + $0x454] ss:$24 sps:$4 sm:$0xff]  }
  0x59   :  { %4791 = vmatpush1.bf16.msra.mxu1 %v7048_v34  ;;  %v87_v34 = vld [vmem:[#allocation2 + $0x108] sm:$0xff] }
  0x5a   :  { %4995 = vmatpush1.bf16.msra.mxu0 %v7049_v35  ;;  %4792 = vmatprep.subr.bf16.mxu1 %v7050_v36  ;;  %v7122_v35 = vld [vmem:[#allocation5 + $0x3f0] ss:$24 sps:$4 sm:$0xff]   ;;  %v8321_v36 = vpack.c.bf16 %v87_v34, %v87_v34  ;;  %v7139_v49 = vld [vmem:[#allocation5 + $0x1054] ss:$24 sps:$4 sm:$0xff]  }
  0x5b   :  { %4996 = vmatprep.subr.bf16.mxu0 %v7052_v37  ;;  %v7125_v37 = vld [vmem:[#allocation5 + $0xff0] ss:$24 sps:$4 sm:$0xff]   ;;  %v7160_v8 = vld [vmem:[#allocation5 + $0x514] ss:$24 sps:$4 sm:$0xff]  }
  0x5c   :  { %v7163_v9 = vld [vmem:[#allocation5 + $0x1114] ss:$24 sps:$4 sm:$0xff]  }
  0x5d   :  { %4793 = vmatpush1.bf16.msra.mxu1 %v7054_v38  ;;  %v95_v38 = vld [vmem:[#allocation2 + $0x148] sm:$0xff]  ;;  %v80_v34 = vld [vmem:[#allocation2 + $0xd0] sm:$0xff] }
  0x5e   :  { %4997 = vmatpush1.bf16.msra.mxu0 %v7055_v39  ;;  %4794 = vmatprep.subr.bf16.mxu1 %v7056_v40  ;;  %v7130_v39 = vld [vmem:[#allocation5 + $0x424] ss:$24 sps:$4 sm:$0xff]  }
  0x5f   :  { %4998 = vmatprep.subr.bf16.mxu0 %v7058_v41  ;;  %v7133_v40 = vld [vmem:[#allocation5 + $0x1024] ss:$24 sps:$4 sm:$0xff]   ;;  %v8323_v41 = vpack.c.bf16 %v95_v38, %v95_v38  ;;  %v7191_v38 = vld [vmem:[#allocation5 + $0x1200] ss:$24 sps:$4 sm:$0xff]  }
  0x61   :  { %4795 = vmatpush1.bf16.msra.mxu1 %v7060_v42  ;;  %v86_v42 = vld [vmem:[#allocation2 + $0x100] sm:$0xff] }
  0x62   :  { %4999 = vmatpush1.bf16.msra.mxu0 %v7061_v43  ;;  %4796 = vmatprep.subr.bf16.mxu1 %v7062_v44  ;;  %v94_v43 = vld [vmem:[#allocation2 + $0x140] sm:$0xff] }
  0x63   :  { %5000 = vmatprep.subr.bf16.mxu0 %v7064_v45  ;;  %v7128_v44 = vld [vmem:[#allocation5 + $0x420] ss:$24 sps:$4 sm:$0xff]  }
  0x64   :  { %v7131_v45 = vld [vmem:[#allocation5 + $0x1020] ss:$24 sps:$4 sm:$0xff]  }
  0x65   :  { %4797 = vmatpush1.bf16.msra.mxu1 %v7066_v46  ;;  %v8327_v46 = vpack.c.bf16 %v86_v42, %v86_v42  ;;  %v7196_v42 = vld [vmem:[#allocation5 + $0x634] ss:$24 sps:$4 sm:$0xff]  }
  0x66   :  { %5001 = vmatpush1.bf16.msra.mxu0 %v7067_v47  ;;  %4798 = vmatprep.subr.bf16.mxu1 %v7068_v50  ;;  %v8329_v47 = vpack.c.bf16 %v94_v43, %v94_v43  ;;  %v57_v50 = vld [vmem:[#allocation2 + $0x18] sm:$0xff]  ;;  %v7199_v43 = vld [vmem:[#allocation5 + $0x1234] ss:$24 sps:$4 sm:$0xff]  }
  0x67   :  { %5002 = vmatprep.subr.bf16.mxu0 %v7070_v51  ;;  %v73_v51 = vld [vmem:[#allocation2 + $0x98] sm:$0xff] }
  0x68   :  { %v8333_v53 = vpack.c.bf16 %v73_v51, %v57_v50  ;;  %v97_v50 = vld [vmem:[#allocation2 + $0x158] sm:$0xff] }
  0x69   :  { %4799 = vmatpush1.bf16.msra.mxu1 %v7072_v56  ;;  %v65_v56 = vld [vmem:[#allocation2 + $0x58] sm:$0xff] }
  0x6a   :  { %5003 = vmatpush1.bf16.msra.mxu0 %v7073_v57  ;;  %4800 = vmatprep.subr.bf16.mxu1 %v7074_v58  ;;  %v81_v57 = vld [vmem:[#allocation2 + $0xd8] sm:$0xff]  ;;  %v7137_v58 = vld [vmem:[#allocation5 + $0x1050] ss:$24 sps:$4 sm:$0xff]  }
  0x6b   :  { %5004 = vmatprep.subr.bf16.mxu0 %v7076_v59  ;;  %v8335_v59 = vpack.c.bf16 %v81_v57, %v65_v56  ;;  %v7202_v51 = vld [vmem:[#allocation5 + $0x664] ss:$24 sps:$4 sm:$0xff]   ;;  %v8347_v56 = vpack.c.bf16 %v97_v50, %v97_v50  ;;  %v88_v57 = vld [vmem:[#allocation2 + $0x110] sm:$0xff] }
  0x6c   :  { %v7257_v50 = vld [vmem:[#allocation5 + $0x1410] ss:$24 sps:$4 sm:$0xff]  }
  0x6d   :  { %4801 = vmatpush1.bf16.msra.mxu1 %v7078_v60  ;;  %v7142_v60 = vld [vmem:[#allocation5 + $0x484] ss:$24 sps:$4 sm:$0xff]  }
  0x6e   :  { %5005 = vmatpush1.bf16.msra.mxu0 %v7079_v61  ;;  %4802 = vmatprep.subr.bf16.mxu1 %v7080_v62  ;;  %v7145_v61 = vld [vmem:[#allocation5 + $0x1084] ss:$24 sps:$4 sm:$0xff]   ;;  %v7140_v62 = vld [vmem:[#allocation5 + $0x480] ss:$24 sps:$4 sm:$0xff]  }
  0x6f   :  { %5006 = vmatprep.subr.bf16.mxu0 %v7082_v63  ;;  %v7143_v63 = vld [vmem:[#allocation5 + $0x1080] ss:$24 sps:$4 sm:$0xff]  }
  0x71   :  { %4803 = vmatpush1.bf16.msra.mxu1 %v7084_v0  ;;  %v7148_v0 = vld [vmem:[#allocation5 + $0x4b4] ss:$24 sps:$4 sm:$0xff]  }
  0x72   :  { %5007 = vmatpush1.bf16.msra.mxu0 %v7085_v1  ;;  %4804 = vmatprep.subr.bf16.mxu1 %v7086_v2  ;;  %v7151_v1 = vld [vmem:[#allocation5 + $0x10b4] ss:$24 sps:$4 sm:$0xff]   ;;  %v7146_v2 = vld [vmem:[#allocation5 + $0x4b0] ss:$24 sps:$4 sm:$0xff]  }
  0x73   :  { %5008 = vmatprep.subr.bf16.mxu0 %v7088_v3  ;;  %v7149_v3 = vld [vmem:[#allocation5 + $0x10b0] ss:$24 sps:$4 sm:$0xff]  }
  0x75   :  { %4805 = vmatpush1.bf16.msra.mxu1 %v7090_v4  ;;  %v7154_v4 = vld [vmem:[#allocation5 + $0x4e4] ss:$24 sps:$4 sm:$0xff]  }
  0x76   :  { %5009 = vmatpush1.bf16.msra.mxu0 %v7091_v5  ;;  %4825 = vmatprep.subr.bf16.mxu1 %v7094_v7  ;;  %v7157_v5 = vld [vmem:[#allocation5 + $0x10e4] ss:$24 sps:$4 sm:$0xff]   ;;  %v7155_v7 = vld [vmem:[#allocation5 + $0x10e0] ss:$24 sps:$4 sm:$0xff]  }
  0x77   :  { %5029 = vmatprep.subr.bf16.mxu0 %v7097_v11  ;;  %v7161_v11 = vld [vmem:[#allocation5 + $0x1110] ss:$24 sps:$4 sm:$0xff]  }
  0x78   :  { %4807 = vmatmul.mubr.bf16.vlgmr.msra.gmra.mrb[0].mxu1 %v8315_v14 }
  0x79   :  { %5011 = vmatmul.mubr.bf16.vlgmr.msra.gmra.mrb[0].mxu0 %v8317_v15  ;;  %4826 = vmatpush1.bf16.msra.mxu1 %v7092_v12  ;;  %v7166_v12 = vld [vmem:[#allocation5 + $0x544] ss:$24 sps:$4 sm:$0xff]  }
  0x7a   :  { %5030 = vmatpush1.bf16.msra.mxu0 %v7095_v13  ;;  %4827 = vmatprep.subr.bf16.mxu1 %v7100_v16  ;;  %v7169_v13 = vld [vmem:[#allocation5 + $0x1144] ss:$24 sps:$4 sm:$0xff]   ;;  %v7164_v16 = vld [vmem:[#allocation5 + $0x540] ss:$24 sps:$4 sm:$0xff]  }
  0x7b   :  { %5031 = vmatprep.subr.bf16.mxu0 %v7103_v17  ;;  %4816 = vmatprep.mubr.bf16.mxu1 %v8321_v36  ;;  %v7167_v17 = vld [vmem:[#allocation5 + $0x1140] ss:$24 sps:$4 sm:$0xff]  }
  0x7c   :  { %5020 = vmatprep.mubr.bf16.mxu0 %v8323_v41 }
  0x7d   :  { %4828 = vmatpush1.bf16.msra.mxu1 %v7098_v18  ;;  %v7172_v18 = vld [vmem:[#allocation5 + $0x574] ss:$24 sps:$4 sm:$0xff]  }
  0x7e   :  { %5032 = vmatpush1.bf16.msra.mxu0 %v7101_v19  ;;  %4829 = vmatprep.subr.bf16.mxu1 %v7106_v20  ;;  %v7175_v19 = vld [vmem:[#allocation5 + $0x1174] ss:$24 sps:$4 sm:$0xff]   ;;  %v7170_v20 = vld [vmem:[#allocation5 + $0x570] ss:$24 sps:$4 sm:$0xff]  }
  0x7f   :  { %5033 = vmatprep.subr.bf16.mxu0 %v7109_v21  ;;  %v7173_v21 = vld [vmem:[#allocation5 + $0x1170] ss:$24 sps:$4 sm:$0xff]  }
  0x80   :  { %4817 = vmatmul.mubr.bf16.gmra.mrb[4].mxu1 %v8327_v46 }
  0x81   :  { %4830 = vmatpush1.bf16.msra.mxu1 %v7104_v22  ;;  %5021 = vmatmul.mubr.bf16.gmra.mrb[4].mxu0 %v8329_v47  ;;  %v7178_v22 = vld [vmem:[#allocation5 + $0x5a4] ss:$24 sps:$4 sm:$0xff]  }
  0x82   :  { %5034 = vmatpush1.bf16.msra.mxu0 %v7107_v23  ;;  %4831 = vmatprep.subr.bf16.mxu1 %v7112_v24  ;;  %v7181_v23 = vld [vmem:[#allocation5 + $0x11a4] ss:$24 sps:$4 sm:$0xff]   ;;  %v7176_v24 = vld [vmem:[#allocation5 + $0x5a0] ss:$24 sps:$4 sm:$0xff]  }
  0x83   :  { %5035 = vmatprep.subr.bf16.mxu0 %v7115_v25  ;;  %4857 = vmatprep.mubr.bf16.mxu1 %v8333_v53  ;;  %v7179_v25 = vld [vmem:[#allocation5 + $0x11a0] ss:$24 sps:$4 sm:$0xff]  }
  0x84   :  { %5061 = vmatprep.mubr.bf16.mxu0 %v8335_v59 }
  0x85   :  { %4832 = vmatpush1.bf16.msra.mxu1 %v7110_v26  ;;  %v7184_v26 = vld [vmem:[#allocation5 + $0x5d4] ss:$24 sps:$4 sm:$0xff]  }
  0x86   :  { %5036 = vmatpush1.bf16.msra.mxu0 %v7113_v27  ;;  %4833 = vmatprep.subr.bf16.mxu1 %v7118_v28  ;;  %v7187_v27 = vld [vmem:[#allocation5 + $0x11d4] ss:$24 sps:$4 sm:$0xff]   ;;  %v7182_v28 = vld [vmem:[#allocation5 + $0x5d0] ss:$24 sps:$4 sm:$0xff]  }
  0x87   :  { %5037 = vmatprep.subr.bf16.mxu0 %v7121_v29  ;;  %v7185_v29 = vld [vmem:[#allocation5 + $0x11d0] ss:$24 sps:$4 sm:$0xff]  }
  0x89   :  { %4834 = vmatpush1.bf16.msra.mxu1 %v7116_v30  ;;  %v56_v30 = vld [vmem:[#allocation2 + $0x10] sm:$0xff] }
  0x8a   :  { %5038 = vmatpush1.bf16.msra.mxu0 %v7119_v31  ;;  %4835 = vmatprep.subr.bf16.mxu1 %v7124_v32  ;;  %v7190_v31 = vld [vmem:[#allocation5 + $0x604] ss:$24 sps:$4 sm:$0xff]   ;;  %v72_v32 = vld [vmem:[#allocation2 + $0x90] sm:$0xff] }
  0x8b   :  { %5039 = vmatprep.subr.bf16.mxu0 %v7127_v33  ;;  %v64_v33 = vld [vmem:[#allocation2 + $0x50] sm:$0xff] }
  0x8d   :  { %4836 = vmatpush1.bf16.msra.mxu1 %v7122_v35  ;;  %v7193_v35 = vld [vmem:[#allocation5 + $0x1204] ss:$24 sps:$4 sm:$0xff]  }
  0x8e   :  { %5040 = vmatpush1.bf16.msra.mxu0 %v7125_v37  ;;  %4837 = vmatprep.subr.bf16.mxu1 %v7130_v39  ;;  %v7188_v37 = vld [vmem:[#allocation5 + $0x600] ss:$24 sps:$4 sm:$0xff]   ;;  %v8339_v39 = vpack.c.bf16 %v72_v32, %v56_v30  ;;  %v7244_v32 = vld [vmem:[#allocation5 + $0x7b4] ss:$24 sps:$4 sm:$0xff]  }
  0x8f   :  { %5041 = vmatprep.subr.bf16.mxu0 %v7133_v40  ;;  %v8341_v40 = vpack.c.bf16 %v80_v34, %v64_v33  ;;  %v7236_v30 = vld [vmem:[#allocation5 + $0x780] ss:$24 sps:$4 sm:$0xff]   ;;  %v7247_v33 = vld [vmem:[#allocation5 + $0x13b4] ss:$24 sps:$4 sm:$0xff]   ;;  %v7242_v34 = vld [vmem:[#allocation5 + $0x7b0] ss:$24 sps:$4 sm:$0xff]  }
  0x91   :  { %4838 = vmatpush1.bf16.msra.mxu1 %v7128_v44  ;;  %v89_v44 = vld [vmem:[#allocation2 + $0x118] sm:$0xff] }
  0x92   :  { %5042 = vmatpush1.bf16.msra.mxu0 %v7131_v45  ;;  %4839 = vmatprep.subr.bf16.mxu1 %v7136_v48  ;;  %v7194_v45 = vld [vmem:[#allocation5 + $0x630] ss:$24 sps:$4 sm:$0xff]  }
  0x93   :  { %5043 = vmatprep.subr.bf16.mxu0 %v7139_v49  ;;  %v7197_v48 = vld [vmem:[#allocation5 + $0x1230] ss:$24 sps:$4 sm:$0xff]   ;;  %v8343_v49 = vpack.c.bf16 %v89_v44, %v89_v44  ;;  %v7256_v44 = vld [vmem:[#allocation5 + $0x814] ss:$24 sps:$4 sm:$0xff]  }
  0x95   :  { %4840 = vmatpush1.bf16.msra.mxu1 %v7134_v54  ;;  %v7205_v54 = vld [vmem:[#allocation5 + $0x1264] ss:$24 sps:$4 sm:$0xff]  }
  0x96   :  { %5044 = vmatpush1.bf16.msra.mxu0 %v7137_v58  ;;  %4841 = vmatprep.subr.bf16.mxu1 %v7142_v60  ;;  %v96_v58 = vld [vmem:[#allocation2 + $0x150] sm:$0xff]  ;;  %v7200_v60 = vld [vmem:[#allocation5 + $0x660] ss:$24 sps:$4 sm:$0xff]  }
  0x97   :  { %5045 = vmatprep.subr.bf16.mxu0 %v7145_v61  ;;  %v7203_v61 = vld [vmem:[#allocation5 + $0x1260] ss:$24 sps:$4 sm:$0xff]  }
  0x99   :  { %4842 = vmatpush1.bf16.msra.mxu1 %v7140_v62  ;;  %v8351_v62 = vpack.c.bf16 %v88_v57, %v88_v57  ;;  %v7260_v57 = vld [vmem:[#allocation5 + $0x840] ss:$24 sps:$4 sm:$0xff]  }
  0x9a   :  { %5046 = vmatpush1.bf16.msra.mxu0 %v7143_v63  ;;  %4843 = vmatprep.subr.bf16.mxu1 %v7148_v0  ;;  %v8353_v63 = vpack.c.bf16 %v96_v58, %v96_v58  ;;  %v59_v0 = vld [vmem:[#allocation2 + $0x28] sm:$0xff]  ;;  %v7263_v58 = vld [vmem:[#allocation5 + $0x1440] ss:$24 sps:$4 sm:$0xff]  }
  0x9b   :  { %5047 = vmatprep.subr.bf16.mxu0 %v7151_v1  ;;  %v75_v1 = vld [vmem:[#allocation2 + $0xa8] sm:$0xff] }
  0x9d   :  { %4844 = vmatpush1.bf16.msra.mxu1 %v7146_v2  ;;  %v7208_v2 = vld [vmem:[#allocation5 + $0x694] ss:$24 sps:$4 sm:$0xff]  }
  0x9e   :  { %5048 = vmatpush1.bf16.msra.mxu0 %v7149_v3  ;;  %4845 = vmatprep.subr.bf16.mxu1 %v7154_v4  ;;  %v7211_v3 = vld [vmem:[#allocation5 + $0x1294] ss:$24 sps:$4 sm:$0xff]   ;;  %v8355_v4 = vpack.c.bf16 %v75_v1, %v59_v0  ;;  %v7266_v0 = vld [vmem:[#allocation5 + $0x870] ss:$24 sps:$4 sm:$0xff]  }
  0x9f   :  { %5049 = vmatprep.subr.bf16.mxu0 %v7157_v5  ;;  %v67_v5 = vld [vmem:[#allocation2 + $0x68] sm:$0xff] }
  0xa0   :  { %v7269_v1 = vld [vmem:[#allocation5 + $0x1470] ss:$24 sps:$4 sm:$0xff]  }
  0xa1   :  { %4846 = vmatpush1.bf16.msra.mxu1 %v7152_v6  ;;  %v83_v6 = vld [vmem:[#allocation2 + $0xe8] sm:$0xff] }
  0xa2   :  { %5050 = vmatpush1.bf16.msra.mxu0 %v7155_v7  ;;  %4847 = vmatprep.subr.bf16.mxu1 %v7160_v8  ;;  %v8359_v7 = vpack.c.bf16 %v83_v6, %v67_v5  ;;  %v7206_v8 = vld [vmem:[#allocation5 + $0x690] ss:$24 sps:$4 sm:$0xff]   ;;  %v7272_v5 = vld [vmem:[#allocation5 + $0x8a0] ss:$24 sps:$4 sm:$0xff]  }
  0xa3   :  { %5051 = vmatprep.subr.bf16.mxu0 %v7163_v9  ;;  %v7209_v9 = vld [vmem:[#allocation5 + $0x1290] ss:$24 sps:$4 sm:$0xff]   ;;  %v7275_v6 = vld [vmem:[#allocation5 + $0x14a0] ss:$24 sps:$4 sm:$0xff]  }
  0xa5   :  { %4848 = vmatpush1.bf16.msra.mxu1 %v7158_v10  ;;  %v7214_v10 = vld [vmem:[#allocation5 + $0x6c4] ss:$24 sps:$4 sm:$0xff]  }
  0xa6   :  { %5052 = vmatpush1.bf16.msra.mxu0 %v7161_v11  ;;  %4849 = vmatprep.subr.bf16.mxu1 %v7166_v12  ;;  %v7217_v11 = vld [vmem:[#allocation5 + $0x12c4] ss:$24 sps:$4 sm:$0xff]   ;;  %v7212_v12 = vld [vmem:[#allocation5 + $0x6c0] ss:$24 sps:$4 sm:$0xff]  }
  0xa7   :  { %5053 = vmatprep.subr.bf16.mxu0 %v7169_v13  ;;  %v7215_v13 = vld [vmem:[#allocation5 + $0x12c0] ss:$24 sps:$4 sm:$0xff]  }
  0xa9   :  { %4850 = vmatpush1.bf16.msra.mxu1 %v7164_v16  ;;  %v7220_v16 = vld [vmem:[#allocation5 + $0x6f4] ss:$24 sps:$4 sm:$0xff]  }
  0xaa   :  { %5054 = vmatpush1.bf16.msra.mxu0 %v7167_v17  ;;  %4851 = vmatprep.subr.bf16.mxu1 %v7172_v18  ;;  %v7223_v17 = vld [vmem:[#allocation5 + $0x12f4] ss:$24 sps:$4 sm:$0xff]   ;;  %v7218_v18 = vld [vmem:[#allocation5 + $0x6f0] ss:$24 sps:$4 sm:$0xff]  }
  0xab   :  { %5055 = vmatprep.subr.bf16.mxu0 %v7175_v19  ;;  %v7221_v19 = vld [vmem:[#allocation5 + $0x12f0] ss:$24 sps:$4 sm:$0xff]  }
  0xad   :  { %4852 = vmatpush1.bf16.msra.mxu1 %v7170_v20  ;;  %v7226_v20 = vld [vmem:[#allocation5 + $0x724] ss:$24 sps:$4 sm:$0xff]  }
  0xae   :  { %5056 = vmatpush1.bf16.msra.mxu0 %v7173_v21  ;;  %4853 = vmatprep.subr.bf16.mxu1 %v7178_v22  ;;  %v7229_v21 = vld [vmem:[#allocation5 + $0x1324] ss:$24 sps:$4 sm:$0xff]   ;;  %v7224_v22 = vld [vmem:[#allocation5 + $0x720] ss:$24 sps:$4 sm:$0xff]  }
  0xaf   :  { %5057 = vmatprep.subr.bf16.mxu0 %v7181_v23  ;;  %v7227_v23 = vld [vmem:[#allocation5 + $0x1320] ss:$24 sps:$4 sm:$0xff]  }
  0xb1   :  { %4854 = vmatpush1.bf16.msra.mxu1 %v7176_v24  ;;  %v7232_v24 = vld [vmem:[#allocation5 + $0x754] ss:$24 sps:$4 sm:$0xff]  }
  0xb2   :  { %5058 = vmatpush1.bf16.msra.mxu0 %v7179_v25  ;;  %4855 = vmatprep.subr.bf16.mxu1 %v7184_v26  ;;  %v7235_v25 = vld [vmem:[#allocation5 + $0x1354] ss:$24 sps:$4 sm:$0xff]   ;;  %v7230_v26 = vld [vmem:[#allocation5 + $0x750] ss:$24 sps:$4 sm:$0xff]  }
  0xb3   :  { %5059 = vmatprep.subr.bf16.mxu0 %v7187_v27  ;;  %v7233_v27 = vld [vmem:[#allocation5 + $0x1350] ss:$24 sps:$4 sm:$0xff]  }
  0xb5   :  { %4856 = vmatpush1.bf16.msra.mxu1 %v7182_v28  ;;  %v7238_v28 = vld [vmem:[#allocation5 + $0x784] ss:$24 sps:$4 sm:$0xff]  }
  0xb6   :  { %5060 = vmatpush1.bf16.msra.mxu0 %v7185_v29  ;;  %4876 = vmatprep.subr.bf16.mxu1 %v7190_v31  ;;  %v7241_v29 = vld [vmem:[#allocation5 + $0x1384] ss:$24 sps:$4 sm:$0xff]   ;;  %v7239_v31 = vld [vmem:[#allocation5 + $0x1380] ss:$24 sps:$4 sm:$0xff]  }
  0xb7   :  { %5080 = vmatprep.subr.bf16.mxu0 %v7193_v35  ;;  %v7245_v35 = vld [vmem:[#allocation5 + $0x13b0] ss:$24 sps:$4 sm:$0xff]  }
  0xb8   :  { %4858 = vmatmul.mubr.bf16.vlgmr.msra.gmra.mrb[0].mxu1 %v8339_v39 }
  0xb9   :  { %5062 = vmatmul.mubr.bf16.vlgmr.msra.gmra.mrb[0].mxu0 %v8341_v40  ;;  %4877 = vmatpush1.bf16.msra.mxu1 %v7188_v37  ;;  %v7250_v37 = vld [vmem:[#allocation5 + $0x7e4] ss:$24 sps:$4 sm:$0xff]  }
  0xba   :  { %5081 = vmatpush1.bf16.msra.mxu0 %v7191_v38  ;;  %4878 = vmatprep.subr.bf16.mxu1 %v7196_v42  ;;  %v7253_v38 = vld [vmem:[#allocation5 + $0x13e4] ss:$24 sps:$4 sm:$0xff]   ;;  %v7248_v42 = vld [vmem:[#allocation5 + $0x7e0] ss:$24 sps:$4 sm:$0xff]  }
  0xbb   :  { %5082 = vmatprep.subr.bf16.mxu0 %v7199_v43  ;;  %4867 = vmatprep.mubr.bf16.mxu1 %v8343_v49  ;;  %v7251_v43 = vld [vmem:[#allocation5 + $0x13e0] ss:$24 sps:$4 sm:$0xff]  }
  0xbc   :  { %5071 = vmatprep.mubr.bf16.mxu0 %v8347_v56 }
  0xbd   :  { %4879 = vmatpush1.bf16.msra.mxu1 %v7194_v45  ;;  %v7259_v45 = vld [vmem:[#allocation5 + $0x1414] ss:$24 sps:$4 sm:$0xff]  }
  0xbe   :  { %5083 = vmatpush1.bf16.msra.mxu0 %v7197_v48  ;;  %4880 = vmatprep.subr.bf16.mxu1 %v7202_v51  ;;  %v7254_v48 = vld [vmem:[#allocation5 + $0x810] ss:$24 sps:$4 sm:$0xff]   ;;  %v7262_v51 = vld [vmem:[#allocation5 + $0x844] ss:$24 sps:$4 sm:$0xff]  }
  0xbf   :  { %5084 = vmatprep.subr.bf16.mxu0 %v7205_v54  ;;  %v7265_v54 = vld [vmem:[#allocation5 + $0x1444] ss:$24 sps:$4 sm:$0xff]  }
  0xc0   :  { %4868 = vmatmul.mubr.bf16.gmra.mrb[4].mxu1 %v8351_v62 }
  0xc1   :  { %5072 = vmatmul.mubr.bf16.gmra.mrb[4].mxu0 %v8353_v63  ;;  %4881 = vmatpush1.bf16.msra.mxu1 %v7200_v60  ;;  %v7268_v60 = vld [vmem:[#allocation5 + $0x874] ss:$24 sps:$4 sm:$0xff]  }
  0xc2   :  { %5085 = vmatpush1.bf16.msra.mxu0 %v7203_v61  ;;  %4882 = vmatprep.subr.bf16.mxu1 %v7208_v2  ;;  %v7271_v61 = vld [vmem:[#allocation5 + $0x1474] ss:$24 sps:$4 sm:$0xff]   ;;  %v7274_v2 = vld [vmem:[#allocation5 + $0x8a4] ss:$24 sps:$4 sm:$0xff]  }
  0xc3   :  { %5086 = vmatprep.subr.bf16.mxu0 %v7211_v3  ;;  %4908 = vmatprep.mubr.bf16.mxu1 %v8355_v4  ;;  %v7277_v3 = vld [vmem:[#allocation5 + $0x14a4] ss:$24 sps:$4 sm:$0xff]  }
  0xc4   :  { %5112 = vmatprep.mubr.bf16.mxu0 %v8359_v7 }
  0xc5   :  { %4883 = vmatpush1.bf16.msra.mxu1 %v7206_v8  ;;  %v7280_v8 = vld [vmem:[#allocation5 + $0x8d4] ss:$24 sps:$4 sm:$0xff]  }
  0xc6   :  { %5087 = vmatpush1.bf16.msra.mxu0 %v7209_v9  ;;  %4884 = vmatprep.subr.bf16.mxu1 %v7214_v10  ;;  %v7283_v9 = vld [vmem:[#allocation5 + $0x14d4] ss:$24 sps:$4 sm:$0xff]   ;;  %v7278_v10 = vld [vmem:[#allocation5 + $0x8d0] ss:$24 sps:$4 sm:$0xff]  }
  0xc7   :  { %5088 = vmatprep.subr.bf16.mxu0 %v7217_v11  ;;  %v7281_v11 = vld [vmem:[#allocation5 + $0x14d0] ss:$24 sps:$4 sm:$0xff]  }
  0xc9   :  { %4885 = vmatpush1.bf16.msra.mxu1 %v7212_v12  ;;  %v58_v12 = vld [vmem:[#allocation2 + $0x20] sm:$0xff] }
  0xca   :  { %5089 = vmatpush1.bf16.msra.mxu0 %v7215_v13  ;;  %4886 = vmatprep.subr.bf16.mxu1 %v7220_v16  ;;  %v7286_v13 = vld [vmem:[#allocation5 + $0x904] ss:$24 sps:$4 sm:$0xff]  }
  0xcb   :  { %5090 = vmatprep.subr.bf16.mxu0 %v7223_v17  ;;  %v74_v16 = vld [vmem:[#allocation2 + $0xa0] sm:$0xff] }
  0xcc   :  { %v66_v17 = vld [vmem:[#allocation2 + $0x60] sm:$0xff] }
  0xcd   :  { %4887 = vmatpush1.bf16.msra.mxu1 %v7218_v18  ;;  %v82_v18 = vld [vmem:[#allocation2 + $0xe0] sm:$0xff] }
  0xce   :  { %5091 = vmatpush1.bf16.msra.mxu0 %v7221_v19  ;;  %4888 = vmatprep.subr.bf16.mxu1 %v7226_v20  ;;  %v7289_v19 = vld [vmem:[#allocation5 + $0x1504] ss:$24 sps:$4 sm:$0xff]   ;;  %v7284_v20 = vld [vmem:[#allocation5 + $0x900] ss:$24 sps:$4 sm:$0xff]  }
  0xcf   :  { %5092 = vmatprep.subr.bf16.mxu0 %v7229_v21  ;;  %v7287_v21 = vld [vmem:[#allocation5 + $0x1500] ss:$24 sps:$4 sm:$0xff]  }
  0xd1   :  { %4889 = vmatpush1.bf16.msra.mxu1 %v7224_v22  ;;  %v8363_v22 = vpack.c.bf16 %v74_v16, %v58_v12  ;;  %v7320_v12 = vld [vmem:[#allocation5 + $0xa20] ss:$24 sps:$4 sm:$0xff]   ;;  %v7328_v16 = vld [vmem:[#allocation5 + $0xa54] ss:$24 sps:$4 sm:$0xff]  }
  0xd2   :  { %5093 = vmatpush1.bf16.msra.mxu0 %v7227_v23  ;;  %4890 = vmatprep.subr.bf16.mxu1 %v7232_v24  ;;  %v8365_v23 = vpack.c.bf16 %v82_v18, %v66_v17  ;;  %v91_v24 = vld [vmem:[#allocation2 + $0x128] sm:$0xff] }
  0xd3   :  { %5094 = vmatprep.subr.bf16.mxu0 %v7235_v25  ;;  %v99_v25 = vld [vmem:[#allocation2 + $0x168] sm:$0xff] }
  0xd4   :  { %v7331_v17 = vld [vmem:[#allocation5 + $0x1654] ss:$24 sps:$4 sm:$0xff]   ;;  %v7326_v18 = vld [vmem:[#allocation5 + $0xa50] ss:$24 sps:$4 sm:$0xff]  }
  0xd5   :  { %4891 = vmatpush1.bf16.msra.mxu1 %v7230_v26  ;;  %v7292_v26 = vld [vmem:[#allocation5 + $0x934] ss:$24 sps:$4 sm:$0xff]  }
  0xd6   :  { %5095 = vmatpush1.bf16.msra.mxu0 %v7233_v27  ;;  %4892 = vmatprep.subr.bf16.mxu1 %v7238_v28  ;;  %v7295_v27 = vld [vmem:[#allocation5 + $0x1534] ss:$24 sps:$4 sm:$0xff]   ;;  %v7290_v28 = vld [vmem:[#allocation5 + $0x930] ss:$24 sps:$4 sm:$0xff]  }
  0xd7   :  { %5096 = vmatprep.subr.bf16.mxu0 %v7241_v29  ;;  %v7293_v29 = vld [vmem:[#allocation5 + $0x1530] ss:$24 sps:$4 sm:$0xff]  }
  0xd9   :  { %4893 = vmatpush1.bf16.msra.mxu1 %v7236_v30  ;;  %v8367_v30 = vpack.c.bf16 %v91_v24, %v91_v24  ;;  %v7332_v24 = vld [vmem:[#allocation5 + $0xa80] ss:$24 sps:$4 sm:$0xff]  }
  0xda   :  { %5097 = vmatpush1.bf16.msra.mxu0 %v7239_v31  ;;  %4894 = vmatprep.subr.bf16.mxu1 %v7244_v32  ;;  %v8369_v31 = vpack.c.bf16 %v99_v25, %v99_v25  ;;  %v7298_v32 = vld [vmem:[#allocation5 + $0x964] ss:$24 sps:$4 sm:$0xff]   ;;  %v7335_v25 = vld [vmem:[#allocation5 + $0x1680] ss:$24 sps:$4 sm:$0xff]  }
  0xdb   :  { %5098 = vmatprep.subr.bf16.mxu0 %v7247_v33  ;;  %v90_v33 = vld [vmem:[#allocation2 + $0x120] sm:$0xff] }
  0xdd   :  { %4895 = vmatpush1.bf16.msra.mxu1 %v7242_v34  ;;  %v98_v34 = vld [vmem:[#allocation2 + $0x160] sm:$0xff] }
  0xde   :  { %5099 = vmatpush1.bf16.msra.mxu0 %v7245_v35  ;;  %4896 = vmatprep.subr.bf16.mxu1 %v7250_v37  ;;  %v7301_v35 = vld [vmem:[#allocation5 + $0x1564] ss:$24 sps:$4 sm:$0xff]   ;;  %v7296_v37 = vld [vmem:[#allocation5 + $0x960] ss:$24 sps:$4 sm:$0xff]  }
  0xdf   :  { %5100 = vmatprep.subr.bf16.mxu0 %v7253_v38  ;;  %v7299_v38 = vld [vmem:[#allocation5 + $0x1560] ss:$24 sps:$4 sm:$0xff]  }
  0xe1   :  { %4897 = vmatpush1.bf16.msra.mxu1 %v7248_v42  ;;  %v61_v42 = vld [vmem:[#allocation2 + $0x38] sm:$0xff] }
  0xe2   :  { %5101 = vmatpush1.bf16.msra.mxu0 %v7251_v43  ;;  %4898 = vmatprep.subr.bf16.mxu1 %v7256_v44  ;;  %v77_v43 = vld [vmem:[#allocation2 + $0xb8] sm:$0xff]  ;;  %v8375_v44 = vpack.c.bf16 %v90_v33, %v90_v33 }
  0xe3   :  { %5102 = vmatprep.subr.bf16.mxu0 %v7259_v45  ;;  %v8377_v45 = vpack.c.bf16 %v98_v34, %v98_v34  ;;  %v7349_v33 = vld [vmem:[#allocation5 + $0x16e4] ss:$24 sps:$4 sm:$0xff]   ;;  %v7344_v34 = vld [vmem:[#allocation5 + $0xae0] ss:$24 sps:$4 sm:$0xff]  }
  0xe5   :  { %4899 = vmatpush1.bf16.msra.mxu1 %v7254_v48  ;;  %v69_v48 = vld [vmem:[#allocation2 + $0x78] sm:$0xff] }
  0xe6   :  { %5103 = vmatpush1.bf16.msra.mxu0 %v7257_v50  ;;  %4900 = vmatprep.subr.bf16.mxu1 %v7262_v51  ;;  %v85_v50 = vld [vmem:[#allocation2 + $0xf8] sm:$0xff]  ;;  %v7304_v51 = vld [vmem:[#allocation5 + $0x994] ss:$24 sps:$4 sm:$0xff]  }
  0xe7   :  { %5104 = vmatprep.subr.bf16.mxu0 %v7265_v54  ;;  %v7307_v54 = vld [vmem:[#allocation5 + $0x1594] ss:$24 sps:$4 sm:$0xff]  }
  0xe9   :  { %4901 = vmatpush1.bf16.msra.mxu1 %v7260_v57  ;;  %v8379_v57 = vpack.c.bf16 %v77_v43, %v61_v42  ;;  %v7350_v42 = vld [vmem:[#allocation5 + $0xb10] ss:$24 sps:$4 sm:$0xff]  }
  0xea   :  { %5105 = vmatpush1.bf16.msra.mxu0 %v7263_v58  ;;  %4902 = vmatprep.subr.bf16.mxu1 %v7268_v60  ;;  %v8381_v58 = vpack.c.bf16 %v85_v50, %v69_v48  ;;  %v7302_v60 = vld [vmem:[#allocation5 + $0x990] ss:$24 sps:$4 sm:$0xff]   ;;  %v7358_v48 = vld [vmem:[#allocation5 + $0xb44] ss:$24 sps:$4 sm:$0xff]  }
  0xeb   :  { %5106 = vmatprep.subr.bf16.mxu0 %v7271_v61  ;;  %v7305_v61 = vld [vmem:[#allocation5 + $0x1590] ss:$24 sps:$4 sm:$0xff]   ;;  %v7361_v50 = vld [vmem:[#allocation5 + $0x1744] ss:$24 sps:$4 sm:$0xff]  }
  0xec   :  { %v7353_v43 = vld [vmem:[#allocation5 + $0x1710] ss:$24 sps:$4 sm:$0xff]  }
  0xed   :  { %4903 = vmatpush1.bf16.msra.mxu1 %v7266_v0  ;;  %v7310_v0 = vld [vmem:[#allocation5 + $0x9c4] ss:$24 sps:$4 sm:$0xff]  }
  0xee   :  { %5107 = vmatpush1.bf16.msra.mxu0 %v7269_v1  ;;  %4904 = vmatprep.subr.bf16.mxu1 %v7274_v2  ;;  %v7313_v1 = vld [vmem:[#allocation5 + $0x15c4] ss:$24 sps:$4 sm:$0xff]   ;;  %v7308_v2 = vld [vmem:[#allocation5 + $0x9c0] ss:$24 sps:$4 sm:$0xff]  }
  0xef   :  { %5108 = vmatprep.subr.bf16.mxu0 %v7277_v3  ;;  %v7311_v3 = vld [vmem:[#allocation5 + $0x15c0] ss:$24 sps:$4 sm:$0xff]  }
  0xf1   :  { %4905 = vmatpush1.bf16.msra.mxu1 %v7272_v5  ;;  %v7316_v5 = vld [vmem:[#allocation5 + $0x9f4] ss:$24 sps:$4 sm:$0xff]  }
  0xf2   :  { %5109 = vmatpush1.bf16.msra.mxu0 %v7275_v6  ;;  %4906 = vmatprep.subr.bf16.mxu1 %v7280_v8  ;;  %v7319_v6 = vld [vmem:[#allocation5 + $0x15f4] ss:$24 sps:$4 sm:$0xff]   ;;  %v7314_v8 = vld [vmem:[#allocation5 + $0x9f0] ss:$24 sps:$4 sm:$0xff]  }
  0xf3   :  { %5110 = vmatprep.subr.bf16.mxu0 %v7283_v9  ;;  %v7317_v9 = vld [vmem:[#allocation5 + $0x15f0] ss:$24 sps:$4 sm:$0xff]  }
  0xf5   :  { %4907 = vmatpush1.bf16.msra.mxu1 %v7278_v10  ;;  %v7322_v10 = vld [vmem:[#allocation5 + $0xa24] ss:$24 sps:$4 sm:$0xff]  }
  0xf6   :  { %5111 = vmatpush1.bf16.msra.mxu0 %v7281_v11  ;;  %4927 = vmatprep.subr.bf16.mxu1 %v7286_v13  ;;  %v7325_v11 = vld [vmem:[#allocation5 + $0x1624] ss:$24 sps:$4 sm:$0xff]   ;;  %v7323_v13 = vld [vmem:[#allocation5 + $0x1620] ss:$24 sps:$4 sm:$0xff]  }
  0xf7   :  { %5131 = vmatprep.subr.bf16.mxu0 %v7289_v19  ;;  %v7329_v19 = vld [vmem:[#allocation5 + $0x1650] ss:$24 sps:$4 sm:$0xff]  }
  0xf8   :  { %4909 = vmatmul.mubr.bf16.vlgmr.msra.gmra.mrb[0].mxu1 %v8363_v22 }
  0xf9   :  { %5113 = vmatmul.mubr.bf16.vlgmr.msra.gmra.mrb[0].mxu0 %v8365_v23  ;;  %4928 = vmatpush1.bf16.msra.mxu1 %v7284_v20  ;;  %v7334_v20 = vld [vmem:[#allocation5 + $0xa84] ss:$24 sps:$4 sm:$0xff]  }
  0xfa   :  { %5132 = vmatpush1.bf16.msra.mxu0 %v7287_v21  ;;  %4929 = vmatprep.subr.bf16.mxu1 %v7292_v26  ;;  %v7337_v21 = vld [vmem:[#allocation5 + $0x1684] ss:$24 sps:$4 sm:$0xff]   ;;  %v7340_v26 = vld [vmem:[#allocation5 + $0xab4] ss:$24 sps:$4 sm:$0xff]  }
  0xfb   :  { %5133 = vmatprep.subr.bf16.mxu0 %v7295_v27  ;;  %4918 = vmatprep.mubr.bf16.mxu1 %v8367_v30  ;;  %v7343_v27 = vld [vmem:[#allocation5 + $0x16b4] ss:$24 sps:$4 sm:$0xff]  }
  0xfc   :  { %5122 = vmatprep.mubr.bf16.mxu0 %v8369_v31 }
  0xfd   :  { %4930 = vmatpush1.bf16.msra.mxu1 %v7290_v28  ;;  %v7338_v28 = vld [vmem:[#allocation5 + $0xab0] ss:$24 sps:$4 sm:$0xff]  }
  0xfe   :  { %5134 = vmatpush1.bf16.msra.mxu0 %v7293_v29  ;;  %4931 = vmatprep.subr.bf16.mxu1 %v7298_v32  ;;  %v7341_v29 = vld [vmem:[#allocation5 + $0x16b0] ss:$24 sps:$4 sm:$0xff]   ;;  %v7346_v32 = vld [vmem:[#allocation5 + $0xae4] ss:$24 sps:$4 sm:$0xff]  }
  0xff   :  { %5135 = vmatprep.subr.bf16.mxu0 %v7301_v35  ;;  %v7347_v35 = vld [vmem:[#allocation5 + $0x16e0] ss:$24 sps:$4 sm:$0xff]  }
 0x100   :  { %4919 = vmatmul.mubr.bf16.gmra.mrb[4].mxu1 %v8375_v44 }
 0x101   :  { %5123 = vmatmul.mubr.bf16.gmra.mrb[4].mxu0 %v8377_v45  ;;  %4932 = vmatpush1.bf16.msra.mxu1 %v7296_v37  ;;  %v7352_v37 = vld [vmem:[#allocation5 + $0xb14] ss:$24 sps:$4 sm:$0xff]  }
 0x102   :  { %5136 = vmatpush1.bf16.msra.mxu0 %v7299_v38  ;;  %4933 = vmatprep.subr.bf16.mxu1 %v7304_v51  ;;  %v7355_v38 = vld [vmem:[#allocation5 + $0x1714] ss:$24 sps:$4 sm:$0xff]   ;;  %v7356_v51 = vld [vmem:[#allocation5 + $0xb40] ss:$24 sps:$4 sm:$0xff]  }
 0x103   :  { %5137 = vmatprep.subr.bf16.mxu0 %v7307_v54  ;;  %4959 = vmatprep.mubr.bf16.mxu1 %v8379_v57  ;;  %v7359_v54 = vld [vmem:[#allocation5 + $0x1740] ss:$24 sps:$4 sm:$0xff]  }
 0x104   :  { %5163 = vmatprep.mubr.bf16.mxu0 %v8381_v58 }
 0x105   :  { %4934 = vmatpush1.bf16.msra.mxu1 %v7302_v60  ;;  %v7364_v60 = vld [vmem:[#allocation5 + $0xb74] ss:$24 sps:$4 sm:$0xff]  }
 0x106   :  { %5138 = vmatpush1.bf16.msra.mxu0 %v7305_v61  ;;  %4935 = vmatprep.subr.bf16.mxu1 %v7310_v0  ;;  %v7367_v61 = vld [vmem:[#allocation5 + $0x1774] ss:$24 sps:$4 sm:$0xff]   ;;  %v7362_v0 = vld [vmem:[#allocation5 + $0xb70] ss:$24 sps:$4 sm:$0xff]  }
 0x107   :  { %5139 = vmatprep.subr.bf16.mxu0 %v7313_v1  ;;  %v7365_v1 = vld [vmem:[#allocation5 + $0x1770] ss:$24 sps:$4 sm:$0xff]  }
 0x109   :  { %4936 = vmatpush1.bf16.msra.mxu1 %v7308_v2  ;;  %v7370_v2 = vld [vmem:[#allocation5 + $0xba4] ss:$24 sps:$4 sm:$0xff]  }
 0x10a   :  { %5140 = vmatpush1.bf16.msra.mxu0 %v7311_v3  ;;  %4937 = vmatprep.subr.bf16.mxu1 %v7316_v5  ;;  %v7373_v3 = vld [vmem:[#allocation5 + $0x17a4] ss:$24 sps:$4 sm:$0xff]   ;;  %v7368_v5 = vld [vmem:[#allocation5 + $0xba0] ss:$24 sps:$4 sm:$0xff]  }
 0x10b   :  { %5141 = vmatprep.subr.bf16.mxu0 %v7319_v6  ;;  %v7371_v6 = vld [vmem:[#allocation5 + $0x17a0] ss:$24 sps:$4 sm:$0xff]  }
 0x10d   :  { %4938 = vmatpush1.bf16.msra.mxu1 %v7314_v8  ;;  %v7376_v8 = vld [vmem:[#allocation5 + $0xbd4] ss:$24 sps:$4 sm:$0xff]  }
 0x10e   :  { %5142 = vmatpush1.bf16.msra.mxu0 %v7317_v9  ;;  %4939 = vmatprep.subr.bf16.mxu1 %v7322_v10  ;;  %v7379_v9 = vld [vmem:[#allocation5 + $0x17d4] ss:$24 sps:$4 sm:$0xff]   ;;  %v7374_v10 = vld [vmem:[#allocation5 + $0xbd0] ss:$24 sps:$4 sm:$0xff]  }
 0x10f   :  { %5143 = vmatprep.subr.bf16.mxu0 %v7325_v11  ;;  %v7377_v11 = vld [vmem:[#allocation5 + $0x17d0] ss:$24 sps:$4 sm:$0xff]  }
 0x111   :  { %4940 = vmatpush1.bf16.msra.mxu1 %v7320_v12  ;;  %v60_v12 = vld [vmem:[#allocation2 + $0x30] sm:$0xff] }
 0x112   :  { %5144 = vmatpush1.bf16.msra.mxu0 %v7323_v13  ;;  %4941 = vmatprep.subr.bf16.mxu1 %v7328_v16  ;;  %v76_v13 = vld [vmem:[#allocation2 + $0xb0] sm:$0xff] }
 0x113   :  { %5145 = vmatprep.subr.bf16.mxu0 %v7331_v17  ;;  %v68_v16 = vld [vmem:[#allocation2 + $0x70] sm:$0xff] }
 0x114   :  { %v84_v17 = vld [vmem:[#allocation2 + $0xf0] sm:$0xff] }
 0x115   :  { %4942 = vmatpush1.bf16.msra.mxu1 %v7326_v18  ;;  %v7382_v18 = vld [vmem:[#allocation5 + $0xc] ss:$24 sps:$4 sm:$0xff]  }
 0x116   :  { %5146 = vmatpush1.bf16.msra.mxu0 %v7329_v19  ;;  %4943 = vmatprep.subr.bf16.mxu1 %v7334_v20  ;;  %v7385_v19 = vld [vmem:[#allocation5 + $0x14] ss:$24 sps:$4 sm:$0xff]   ;;  %v7380_v20 = vld [vmem:[#allocation5 + $0x8] ss:$24 sps:$4 sm:$0xff]  }
 0x117   :  { %5147 = vmatprep.subr.bf16.mxu0 %v7337_v21  ;;  %v7383_v21 = vld [vmem:[#allocation5 + $0x10] ss:$24 sps:$4 sm:$0xff]  }
 0x119   :  { %4944 = vmatpush1.bf16.msra.mxu1 %v7332_v24  ;;  %v8387_v24 = vpack.c.bf16 %v76_v13, %v60_v12  ;;  %v7418_v12 = vld [vmem:[#allocation5 + $0x12c] ss:$24 sps:$4 sm:$0xff]  }
 0x11a   :  { %5148 = vmatpush1.bf16.msra.mxu0 %v7335_v25  ;;  %4945 = vmatprep.subr.bf16.mxu1 %v7340_v26  ;;  %v8389_v25 = vpack.c.bf16 %v84_v17, %v68_v16  ;;  %v93_v26 = vld [vmem:[#allocation2 + $0x138] sm:$0xff]  ;;  %v7421_v13 = vld [vmem:[#allocation5 + $0x134] ss:$24 sps:$4 sm:$0xff]   ;;  %v7416_v16 = vld [vmem:[#allocation5 + $0x128] ss:$24 sps:$4 sm:$0xff]  }
 0x11b   :  { %5149 = vmatprep.subr.bf16.mxu0 %v7343_v27  ;;  %v101_v27 = vld [vmem:[#allocation2 + $0x178] sm:$0xff]  ;;  %v7419_v17 = vld [vmem:[#allocation5 + $0x130] ss:$24 sps:$4 sm:$0xff]  }
 0x11d   :  { %4946 = vmatpush1.bf16.msra.mxu1 %v7338_v28  ;;  %v7388_v28 = vld [vmem:[#allocation5 + $0x3c] ss:$24 sps:$4 sm:$0xff]  }
 0x11e   :  { %5150 = vmatpush1.bf16.msra.mxu0 %v7341_v29  ;;  %4947 = vmatprep.subr.bf16.mxu1 %v7346_v32  ;;  %v7391_v29 = vld [vmem:[#allocation5 + $0x44] ss:$24 sps:$4 sm:$0xff]   ;;  %v7386_v32 = vld [vmem:[#allocation5 + $0x38] ss:$24 sps:$4 sm:$0xff]  }
 0x11f   :  { %5151 = vmatprep.subr.bf16.mxu0 %v7349_v33  ;;  %v7389_v33 = vld [vmem:[#allocation5 + $0x40] ss:$24 sps:$4 sm:$0xff]  }
 0x121   :  { %4948 = vmatpush1.bf16.msra.mxu1 %v7344_v34  ;;  %v8391_v34 = vpack.c.bf16 %v93_v26, %v93_v26  ;;  %v7433_v26 = vld [vmem:[#allocation5 + $0x194] ss:$24 sps:$4 sm:$0xff]  }
 0x122   :  { %5152 = vmatpush1.bf16.msra.mxu0 %v7347_v35  ;;  %4949 = vmatprep.subr.bf16.mxu1 %v7352_v37  ;;  %v8393_v35 = vpack.c.bf16 %v101_v27, %v101_v27  ;;  %v92_v37 = vld [vmem:[#allocation2 + $0x130] sm:$0xff]  ;;  %v7428_v27 = vld [vmem:[#allocation5 + $0x188] ss:$24 sps:$4 sm:$0xff]  }
 0x123   :  { %5153 = vmatprep.subr.bf16.mxu0 %v7355_v38  ;;  %v100_v38 = vld [vmem:[#allocation2 + $0x170] sm:$0xff] }
 0x125   :  { %4950 = vmatpush1.bf16.msra.mxu1 %v7350_v42  ;;  %v7394_v42 = vld [vmem:[#allocation5 + $0x6c] ss:$24 sps:$4 sm:$0xff]  }
 0x126   :  { %5154 = vmatpush1.bf16.msra.mxu0 %v7353_v43  ;;  %4951 = vmatprep.subr.bf16.mxu1 %v7358_v48  ;;  %v7397_v43 = vld [vmem:[#allocation5 + $0x74] ss:$24 sps:$4 sm:$0xff]   ;;  %v8399_v48 = vpack.c.bf16 %v92_v37, %v92_v37  ;;  %v7437_v37 = vld [vmem:[#allocation5 + $0x1c0] ss:$24 sps:$4 sm:$0xff]  }
 0x127   :  { %5155 = vmatprep.subr.bf16.mxu0 %v7361_v50  ;;  %v8401_v50 = vpack.c.bf16 %v100_v38, %v100_v38  ;;  %v7442_v38 = vld [vmem:[#allocation5 + $0x1ec] ss:$24 sps:$4 sm:$0xff]  }
 0x129   :  { %4952 = vmatpush1.bf16.msra.mxu1 %v7356_v51  ;;  %v7392_v51 = vld [vmem:[#allocation5 + $0x68] ss:$24 sps:$4 sm:$0xff]  }
 0x12a   :  { %5156 = vmatpush1.bf16.msra.mxu0 %v7359_v54  ;;  %4953 = vmatprep.subr.bf16.mxu1 %v7364_v60  ;;  %v7395_v54 = vld [vmem:[#allocation5 + $0x70] ss:$24 sps:$4 sm:$0xff]   ;;  %v7400_v60 = vld [vmem:[#allocation5 + $0x9c] ss:$24 sps:$4 sm:$0xff]  }
 0x12b   :  { %5157 = vmatprep.subr.bf16.mxu0 %v7367_v61  ;;  %v7403_v61 = vld [vmem:[#allocation5 + $0xa4] ss:$24 sps:$4 sm:$0xff]  }
 0x12d   :  { %4954 = vmatpush1.bf16.msra.mxu1 %v7362_v0  ;;  %v7398_v0 = vld [vmem:[#allocation5 + $0x98] ss:$24 sps:$4 sm:$0xff]  }
 0x12e   :  { %5158 = vmatpush1.bf16.msra.mxu0 %v7365_v1  ;;  %4955 = vmatprep.subr.bf16.mxu1 %v7370_v2  ;;  %v7401_v1 = vld [vmem:[#allocation5 + $0xa0] ss:$24 sps:$4 sm:$0xff]   ;;  %v7406_v2 = vld [vmem:[#allocation5 + $0xcc] ss:$24 sps:$4 sm:$0xff]  }
 0x12f   :  { %5159 = vmatprep.subr.bf16.mxu0 %v7373_v3  ;;  %v7409_v3 = vld [vmem:[#allocation5 + $0xd4] ss:$24 sps:$4 sm:$0xff]  }
 0x131   :  { %4956 = vmatpush1.bf16.msra.mxu1 %v7368_v5  ;;  %v7404_v5 = vld [vmem:[#allocation5 + $0xc8] ss:$24 sps:$4 sm:$0xff]  }
 0x132   :  { %5160 = vmatpush1.bf16.msra.mxu0 %v7371_v6  ;;  %4957 = vmatprep.subr.bf16.mxu1 %v7376_v8  ;;  %v7407_v6 = vld [vmem:[#allocation5 + $0xd0] ss:$24 sps:$4 sm:$0xff]   ;;  %v7412_v8 = vld [vmem:[#allocation5 + $0xfc] ss:$24 sps:$4 sm:$0xff]  }
 0x133   :  { %5161 = vmatprep.subr.bf16.mxu0 %v7379_v9  ;;  %v7415_v9 = vld [vmem:[#allocation5 + $0x104] ss:$24 sps:$4 sm:$0xff]  }
 0x135   :  { %4958 = vmatpush1.bf16.msra.mxu1 %v7374_v10  ;;  %v7410_v10 = vld [vmem:[#allocation5 + $0xf8] ss:$24 sps:$4 sm:$0xff]  }
 0x136   :  { %5162 = vmatpush1.bf16.msra.mxu0 %v7377_v11  ;;  %5182 = vmatprep.subr.bf16.mxu1 %v7382_v18  ;;  %v7413_v11 = vld [vmem:[#allocation5 + $0x100] ss:$24 sps:$4 sm:$0xff]   ;;  %v7427_v18 = vld [vmem:[#allocation5 + $0x164] ss:$24 sps:$4 sm:$0xff]  }
 0x137   :  { %5590 = vmatprep.subr.bf16.mxu0 %v7385_v19  ;;  %v7422_v19 = vld [vmem:[#allocation5 + $0x158] ss:$24 sps:$4 sm:$0xff]  }
 0x138   :  { %4960 = vmatmul.mubr.bf16.vlgmr.msra.gmra.mrb[0].mxu1 %v8387_v24 }
 0x139   :  { %5164 = vmatmul.mubr.bf16.vlgmr.msra.gmra.mrb[0].mxu0 %v8389_v25  ;;  %5183 = vmatpush1.bf16.msra.mxu1 %v7380_v20  ;;  %v7425_v20 = vld [vmem:[#allocation5 + $0x160] ss:$24 sps:$4 sm:$0xff]  }
 0x13a   :  { %5591 = vmatpush1.bf16.msra.mxu0 %v7383_v21  ;;  %5184 = vmatprep.subr.bf16.mxu1 %v7388_v28  ;;  %v7430_v21 = vld [vmem:[#allocation5 + $0x18c] ss:$24 sps:$4 sm:$0xff]   ;;  %v7431_v28 = vld [vmem:[#allocation5 + $0x190] ss:$24 sps:$4 sm:$0xff]  }
 0x13b   :  { %5592 = vmatprep.subr.bf16.mxu0 %v7391_v29  ;;  %4969 = vmatprep.mubr.bf16.mxu1 %v8391_v34  ;;  %v7436_v29 = vld [vmem:[#allocation5 + $0x1bc] ss:$24 sps:$4 sm:$0xff]  }
 0x13c   :  { %5173 = vmatprep.mubr.bf16.mxu0 %v8393_v35 }
 0x13d   :  { %5185 = vmatpush1.bf16.msra.mxu1 %v7386_v32  ;;  %v7439_v32 = vld [vmem:[#allocation5 + $0x1c4] ss:$24 sps:$4 sm:$0xff]  }
 0x13e   :  { %5593 = vmatpush1.bf16.msra.mxu0 %v7389_v33  ;;  %5186 = vmatprep.subr.bf16.mxu1 %v7394_v42  ;;  %v7434_v33 = vld [vmem:[#allocation5 + $0x1b8] ss:$24 sps:$4 sm:$0xff]   ;;  %v7445_v42 = vld [vmem:[#allocation5 + $0x1f4] ss:$24 sps:$4 sm:$0xff]  }
 0x13f   :  { %5594 = vmatprep.subr.bf16.mxu0 %v7397_v43  ;;  %v7440_v43 = vld [vmem:[#allocation5 + $0x1e8] ss:$24 sps:$4 sm:$0xff]  }
 0x140   :  { %4970 = vmatmul.mubr.bf16.gmra.mrb[4].mxu1 %v8399_v48 }
 0x141   :  { %5174 = vmatmul.mubr.bf16.gmra.mrb[4].mxu0 %v8401_v50  ;;  %5187 = vmatpush1.bf16.msra.mxu1 %v7392_v51  ;;  %v7443_v51 = vld [vmem:[#allocation5 + $0x1f0] ss:$24 sps:$4 sm:$0xff]  }
 0x142   :  { %5595 = vmatpush1.bf16.msra.mxu0 %v7395_v54  ;;  %5188 = vmatprep.subr.bf16.mxu1 %v7400_v60  ;;  %v7448_v54 = vld [vmem:[#allocation5 + $0x21c] ss:$24 sps:$4 sm:$0xff]  }
 0x143   :  { %5596 = vmatprep.subr.bf16.mxu0 %v7403_v61  ;;  %5214 = vmatprep.mubr.bf16.mxu1 %v8309_v52  ;;  %v7451_v60 = vld [vmem:[#allocation5 + $0x224] ss:$24 sps:$4 sm:$0xff]   ;;  %v7446_v61 = vld [vmem:[#allocation5 + $0x218] ss:$24 sps:$4 sm:$0xff]  }
 0x144   :  { %5622 = vmatprep.mubr.bf16.mxu0 %v8309_v52  ;;  %v7424_v52 = vld [vmem:[#allocation5 + $0x15c] ss:$24 sps:$4 sm:$0xff]  }
 0x145   :  { %5189 = vmatpush1.bf16.msra.mxu1 %v7398_v0  ;;  %v7449_v0 = vld [vmem:[#allocation5 + $0x220] ss:$24 sps:$4 sm:$0xff]  }
 0x146   :  { %5597 = vmatpush1.bf16.msra.mxu0 %v7401_v1  ;;  %5190 = vmatprep.subr.bf16.mxu1 %v7406_v2  ;;  %v7454_v1 = vld [vmem:[#allocation5 + $0x24c] ss:$24 sps:$4 sm:$0xff]  }
 0x147   :  { %5598 = vmatprep.subr.bf16.mxu0 %v7409_v3  ;;  %v7457_v2 = vld [vmem:[#allocation5 + $0x254] ss:$24 sps:$4 sm:$0xff]   ;;  %v7452_v3 = vld [vmem:[#allocation5 + $0x248] ss:$24 sps:$4 sm:$0xff]  }
 0x149   :  { %5191 = vmatpush1.bf16.msra.mxu1 %v7404_v5  ;;  %v7455_v5 = vld [vmem:[#allocation5 + $0x250] ss:$24 sps:$4 sm:$0xff]  }
 0x14a   :  { %5599 = vmatpush1.bf16.msra.mxu0 %v7407_v6  ;;  %5192 = vmatprep.subr.bf16.mxu1 %v7412_v8  ;;  %v7460_v6 = vld [vmem:[#allocation5 + $0x27c] ss:$24 sps:$4 sm:$0xff]  }
 0x14b   :  { %5600 = vmatprep.subr.bf16.mxu0 %v7415_v9  ;;  %v7463_v8 = vld [vmem:[#allocation5 + $0x284] ss:$24 sps:$4 sm:$0xff]   ;;  %v7458_v9 = vld [vmem:[#allocation5 + $0x278] ss:$24 sps:$4 sm:$0xff]  }
 0x14d   :  { %5193 = vmatpush1.bf16.msra.mxu1 %v7410_v10  ;;  %v7461_v10 = vld [vmem:[#allocation5 + $0x280] ss:$24 sps:$4 sm:$0xff]  }
 0x14e   :  { %5601 = vmatpush1.bf16.msra.mxu0 %v7413_v11  ;;  %5194 = vmatprep.subr.bf16.mxu1 %v7418_v12  ;;  %v7466_v11 = vld [vmem:[#allocation5 + $0x2ac] ss:$24 sps:$4 sm:$0xff]  }
 0x14f   :  { %5602 = vmatprep.subr.bf16.mxu0 %v7421_v13  ;;  %v7469_v12 = vld [vmem:[#allocation5 + $0x2b4] ss:$24 sps:$4 sm:$0xff]   ;;  %v7464_v13 = vld [vmem:[#allocation5 + $0x2a8] ss:$24 sps:$4 sm:$0xff]  }
 0x151   :  { %5195 = vmatpush1.bf16.msra.mxu1 %v7416_v16  ;;  %v7467_v16 = vld [vmem:[#allocation5 + $0x2b0] ss:$24 sps:$4 sm:$0xff]  }
 0x152   :  { %5603 = vmatpush1.bf16.msra.mxu0 %v7419_v17  ;;  %5196 = vmatprep.subr.bf16.mxu1 %v7424_v52  ;;  %v7472_v17 = vld [vmem:[#allocation5 + $0x2dc] ss:$24 sps:$4 sm:$0xff]  }
 0x153   :  { %5604 = vmatprep.subr.bf16.mxu0 %v7427_v18  ;;  %v7475_v52 = vld [vmem:[#allocation5 + $0x2e4] ss:$24 sps:$4 sm:$0xff]   ;;  %v7470_v18 = vld [vmem:[#allocation5 + $0x2d8] ss:$24 sps:$4 sm:$0xff]  }
 0x155   :  { %5197 = vmatpush1.bf16.msra.mxu1 %v7422_v19  ;;  %v7473_v19 = vld [vmem:[#allocation5 + $0x2e0] ss:$24 sps:$4 sm:$0xff]  }
 0x156   :  { %5605 = vmatpush1.bf16.msra.mxu0 %v7425_v20  ;;  %5198 = vmatprep.subr.bf16.mxu1 %v7430_v21  ;;  %v7478_v20 = vld [vmem:[#allocation5 + $0x30c] ss:$24 sps:$4 sm:$0xff]  }
 0x157   :  { %5606 = vmatprep.subr.bf16.mxu0 %v7433_v26  ;;  %v7481_v21 = vld [vmem:[#allocation5 + $0x314] ss:$24 sps:$4 sm:$0xff]   ;;  %v7476_v26 = vld [vmem:[#allocation5 + $0x308] ss:$24 sps:$4 sm:$0xff]  }
 0x159   :  { %5199 = vmatpush1.bf16.msra.mxu1 %v7428_v27  ;;  %v7479_v27 = vld [vmem:[#allocation5 + $0x310] ss:$24 sps:$4 sm:$0xff]  }
 0x15a   :  { %5607 = vmatpush1.bf16.msra.mxu0 %v7431_v28  ;;  %5200 = vmatprep.subr.bf16.mxu1 %v7436_v29  ;;  %v7484_v28 = vld [vmem:[#allocation5 + $0x33c] ss:$24 sps:$4 sm:$0xff]  }
 0x15b   :  { %5608 = vmatprep.subr.bf16.mxu0 %v7439_v32  ;;  %v7487_v29 = vld [vmem:[#allocation5 + $0x344] ss:$24 sps:$4 sm:$0xff]   ;;  %v7482_v32 = vld [vmem:[#allocation5 + $0x338] ss:$24 sps:$4 sm:$0xff]  }
 0x15d   :  { %5201 = vmatpush1.bf16.msra.mxu1 %v7434_v33  ;;  %v7485_v33 = vld [vmem:[#allocation5 + $0x340] ss:$24 sps:$4 sm:$0xff]  }
 0x15e   :  { %5609 = vmatpush1.bf16.msra.mxu0 %v7437_v37  ;;  %5202 = vmatprep.subr.bf16.mxu1 %v7442_v38  ;;  %v7490_v37 = vld [vmem:[#allocation5 + $0x36c] ss:$24 sps:$4 sm:$0xff]  }
 0x15f   :  { %5610 = vmatprep.subr.bf16.mxu0 %v7445_v42  ;;  %v7493_v38 = vld [vmem:[#allocation5 + $0x374] ss:$24 sps:$4 sm:$0xff]   ;;  %v7488_v42 = vld [vmem:[#allocation5 + $0x368] ss:$24 sps:$4 sm:$0xff]  }
 0x161   :  { %5203 = vmatpush1.bf16.msra.mxu1 %v7440_v43  ;;  %v7491_v43 = vld [vmem:[#allocation5 + $0x370] ss:$24 sps:$4 sm:$0xff]  }
 0x162   :  { %5611 = vmatpush1.bf16.msra.mxu0 %v7443_v51  ;;  %5204 = vmatprep.subr.bf16.mxu1 %v7448_v54  ;;  %v7496_v51 = vld [vmem:[#allocation5 + $0x39c] ss:$24 sps:$4 sm:$0xff]   ;;  %v7494_v54 = vld [vmem:[#allocation5 + $0x398] ss:$24 sps:$4 sm:$0xff]  }
 0x163   :  { %5612 = vmatprep.subr.bf16.mxu0 %v7451_v60  ;;  %v7497_v60 = vld [vmem:[#allocation5 + $0x3a0] ss:$24 sps:$4 sm:$0xff]  }
 0x165   :  { %5205 = vmatpush1.bf16.msra.mxu1 %v7446_v61  ;;  %v7502_v61 = vld [vmem:[#allocation5 + $0x3cc] ss:$24 sps:$4 sm:$0xff]  }
 0x166   :  { %5613 = vmatpush1.bf16.msra.mxu0 %v7449_v0  ;;  %5206 = vmatprep.subr.bf16.mxu1 %v7454_v1  ;;  %v7500_v0 = vld [vmem:[#allocation5 + $0x3c8] ss:$24 sps:$4 sm:$0xff]  }
 0x167   :  { %5614 = vmatprep.subr.bf16.mxu0 %v7457_v2  ;;  %v7503_v1 = vld [vmem:[#allocation5 + $0x3d0] ss:$24 sps:$4 sm:$0xff]   ;;  %v7508_v2 = vld [vmem:[#allocation5 + $0x3fc] ss:$24 sps:$4 sm:$0xff]  }
 0x169   :  { %5207 = vmatpush1.bf16.msra.mxu1 %v7452_v3  ;;  %v7506_v3 = vld [vmem:[#allocation5 + $0x3f8] ss:$24 sps:$4 sm:$0xff]  }
 0x16a   :  { %5615 = vmatpush1.bf16.msra.mxu0 %v7455_v5  ;;  %5208 = vmatprep.subr.bf16.mxu1 %v7460_v6  ;;  %v7509_v5 = vld [vmem:[#allocation5 + $0x400] ss:$24 sps:$4 sm:$0xff]   ;;  %v7514_v6 = vld [vmem:[#allocation5 + $0x42c] ss:$24 sps:$4 sm:$0xff]  }
 0x16b   :  { %5616 = vmatprep.subr.bf16.mxu0 %v7463_v8  ;;  %v7517_v8 = vld [vmem:[#allocation5 + $0x434] ss:$24 sps:$4 sm:$0xff]  }
 0x16d   :  { %5209 = vmatpush1.bf16.msra.mxu1 %v7458_v9  ;;  %v7512_v9 = vld [vmem:[#allocation5 + $0x428] ss:$24 sps:$4 sm:$0xff]  }
 0x16e   :  { %5617 = vmatpush1.bf16.msra.mxu0 %v7461_v10  ;;  %5210 = vmatprep.subr.bf16.mxu1 %v7466_v11  ;;  %v7515_v10 = vld [vmem:[#allocation5 + $0x430] ss:$24 sps:$4 sm:$0xff]   ;;  %v7523_v11 = vld [vmem:[#allocation5 + $0x464] ss:$24 sps:$4 sm:$0xff]  }
 0x16f   :  { %5618 = vmatprep.subr.bf16.mxu0 %v7469_v12  ;;  %v7518_v12 = vld [vmem:[#allocation5 + $0x458] ss:$24 sps:$4 sm:$0xff]  }
 0x171   :  { %5211 = vmatpush1.bf16.msra.mxu1 %v7464_v13  ;;  %v7521_v13 = vld [vmem:[#allocation5 + $0x460] ss:$24 sps:$4 sm:$0xff]  }
 0x172   :  { %5619 = vmatpush1.bf16.msra.mxu0 %v7467_v16  ;;  %5212 = vmatprep.subr.bf16.mxu1 %v7472_v17  ;;  %v7526_v16 = vld [vmem:[#allocation5 + $0x48c] ss:$24 sps:$4 sm:$0xff]  }
 0x173   :  { %5620 = vmatprep.subr.bf16.mxu0 %v7475_v52  ;;  %v7529_v17 = vld [vmem:[#allocation5 + $0x494] ss:$24 sps:$4 sm:$0xff]   ;;  %v7524_v52 = vld [vmem:[#allocation5 + $0x488] ss:$24 sps:$4 sm:$0xff]  }
 0x175   :  { %5213 = vmatpush1.bf16.msra.mxu1 %v7470_v18  ;;  %v7527_v18 = vld [vmem:[#allocation5 + $0x490] ss:$24 sps:$4 sm:$0xff]  }
 0x176   :  { %5621 = vmatpush1.bf16.msra.mxu0 %v7473_v19  ;;  %5233 = vmatprep.subr.bf16.mxu1 %v7478_v20  ;;  %v7532_v19 = vld [vmem:[#allocation5 + $0x4bc] ss:$24 sps:$4 sm:$0xff]  }
 0x177   :  { %5641 = vmatprep.subr.bf16.mxu0 %v7481_v21  ;;  %v7535_v20 = vld [vmem:[#allocation5 + $0x4c4] ss:$24 sps:$4 sm:$0xff]   ;;  %v7530_v21 = vld [vmem:[#allocation5 + $0x4b8] ss:$24 sps:$4 sm:$0xff]  }
 0x178   :  { %5215 = vmatmul.mubr.bf16.vlgmr.msra.gmra.mrb[8].mxu1 %v8315_v14 }
 0x179   :  { %5623 = vmatmul.mubr.bf16.vlgmr.msra.gmra.mrb[8].mxu0 %v8315_v14  ;;  %5234 = vmatpush1.bf16.msra.mxu1 %v7476_v26  ;;  %v7499_v14 = vld [vmem:[#allocation5 + $0x3a4] ss:$24 sps:$4 sm:$0xff]   ;;  %v7533_v26 = vld [vmem:[#allocation5 + $0x4c0] ss:$24 sps:$4 sm:$0xff]  }
 0x17a   :  { %5642 = vmatpush1.bf16.msra.mxu0 %v7479_v27  ;;  %5235 = vmatprep.subr.bf16.mxu1 %v7484_v28  ;;  %v7538_v27 = vld [vmem:[#allocation5 + $0x4ec] ss:$24 sps:$4 sm:$0xff]  }
 0x17b   :  { %5643 = vmatprep.subr.bf16.mxu0 %v7487_v29  ;;  %5224 = vmatprep.mubr.bf16.mxu1 %v8321_v36  ;;  %v7541_v28 = vld [vmem:[#allocation5 + $0x4f4] ss:$24 sps:$4 sm:$0xff]   ;;  %v7536_v29 = vld [vmem:[#allocation5 + $0x4e8] ss:$24 sps:$4 sm:$0xff]  }
 0x17c   :  { %5632 = vmatprep.mubr.bf16.mxu0 %v8321_v36  ;;  %v7505_v36 = vld [vmem:[#allocation5 + $0x3d4] ss:$24 sps:$4 sm:$0xff]  }
 0x17d   :  { %5236 = vmatpush1.bf16.msra.mxu1 %v7482_v32  ;;  %v7539_v32 = vld [vmem:[#allocation5 + $0x4f0] ss:$24 sps:$4 sm:$0xff]  }
 0x17e   :  { %5644 = vmatpush1.bf16.msra.mxu0 %v7485_v33  ;;  %5237 = vmatprep.subr.bf16.mxu1 %v7490_v37  ;;  %v7544_v33 = vld [vmem:[#allocation5 + $0x51c] ss:$24 sps:$4 sm:$0xff]  }
 0x17f   :  { %5645 = vmatprep.subr.bf16.mxu0 %v7493_v38  ;;  %v7547_v37 = vld [vmem:[#allocation5 + $0x524] ss:$24 sps:$4 sm:$0xff]   ;;  %v7542_v38 = vld [vmem:[#allocation5 + $0x518] ss:$24 sps:$4 sm:$0xff]  }
 0x180   :  { %5225 = vmatmul.mubr.bf16.gmra.mrb[12].mxu1 %v8327_v46 }
 0x181   :  { %5633 = vmatmul.mubr.bf16.gmra.mrb[12].mxu0 %v8327_v46  ;;  %5238 = vmatpush1.bf16.msra.mxu1 %v7488_v42  ;;  %v7511_v46 = vld [vmem:[#allocation5 + $0x404] ss:$24 sps:$4 sm:$0xff]   ;;  %v7545_v42 = vld [vmem:[#allocation5 + $0x520] ss:$24 sps:$4 sm:$0xff]  }
 0x182   :  { %5646 = vmatpush1.bf16.msra.mxu0 %v7491_v43  ;;  %5239 = vmatprep.subr.bf16.mxu1 %v7496_v51  ;;  %v7550_v43 = vld [vmem:[#allocation5 + $0x54c] ss:$24 sps:$4 sm:$0xff]  }
 0x183   :  { %5647 = vmatprep.subr.bf16.mxu0 %v7499_v14  ;;  %5265 = vmatprep.mubr.bf16.mxu1 %v8333_v53  ;;  %v7553_v51 = vld [vmem:[#allocation5 + $0x554] ss:$24 sps:$4 sm:$0xff]   ;;  %v7548_v14 = vld [vmem:[#allocation5 + $0x548] ss:$24 sps:$4 sm:$0xff]  }
 0x184   :  { %5673 = vmatprep.mubr.bf16.mxu0 %v8333_v53  ;;  %v7520_v53 = vld [vmem:[#allocation5 + $0x45c] ss:$24 sps:$4 sm:$0xff]  }
 0x185   :  { %5240 = vmatpush1.bf16.msra.mxu1 %v7494_v54  ;;  %v7551_v54 = vld [vmem:[#allocation5 + $0x550] ss:$24 sps:$4 sm:$0xff]  }
 0x186   :  { %5648 = vmatpush1.bf16.msra.mxu0 %v7497_v60  ;;  %5241 = vmatprep.subr.bf16.mxu1 %v7502_v61  ;;  %v7556_v60 = vld [vmem:[#allocation5 + $0x57c] ss:$24 sps:$4 sm:$0xff]  }
 0x187   :  { %5649 = vmatprep.subr.bf16.mxu0 %v7505_v36  ;;  %v7559_v61 = vld [vmem:[#allocation5 + $0x584] ss:$24 sps:$4 sm:$0xff]   ;;  %v7554_v36 = vld [vmem:[#allocation5 + $0x578] ss:$24 sps:$4 sm:$0xff]  }
 0x189   :  { %5242 = vmatpush1.bf16.msra.mxu1 %v7500_v0  ;;  %v7557_v0 = vld [vmem:[#allocation5 + $0x580] ss:$24 sps:$4 sm:$0xff]  }
 0x18a   :  { %5650 = vmatpush1.bf16.msra.mxu0 %v7503_v1  ;;  %5243 = vmatprep.subr.bf16.mxu1 %v7508_v2  ;;  %v7562_v1 = vld [vmem:[#allocation5 + $0x5ac] ss:$24 sps:$4 sm:$0xff]  }
 0x18b   :  { %5651 = vmatprep.subr.bf16.mxu0 %v7511_v46  ;;  %v7565_v2 = vld [vmem:[#allocation5 + $0x5b4] ss:$24 sps:$4 sm:$0xff]   ;;  %v7560_v46 = vld [vmem:[#allocation5 + $0x5a8] ss:$24 sps:$4 sm:$0xff]  }
 0x18d   :  { %5244 = vmatpush1.bf16.msra.mxu1 %v7506_v3  ;;  %v7563_v3 = vld [vmem:[#allocation5 + $0x5b0] ss:$24 sps:$4 sm:$0xff]  }
 0x18e   :  { %5652 = vmatpush1.bf16.msra.mxu0 %v7509_v5  ;;  %5245 = vmatprep.subr.bf16.mxu1 %v7514_v6  ;;  %v7568_v5 = vld [vmem:[#allocation5 + $0x5dc] ss:$24 sps:$4 sm:$0xff]  }
 0x18f   :  { %5653 = vmatprep.subr.bf16.mxu0 %v7517_v8  ;;  %v7571_v6 = vld [vmem:[#allocation5 + $0x5e4] ss:$24 sps:$4 sm:$0xff]   ;;  %v7566_v8 = vld [vmem:[#allocation5 + $0x5d8] ss:$24 sps:$4 sm:$0xff]  }
 0x191   :  { %5246 = vmatpush1.bf16.msra.mxu1 %v7512_v9  ;;  %v7569_v9 = vld [vmem:[#allocation5 + $0x5e0] ss:$24 sps:$4 sm:$0xff]  }
 0x192   :  { %5654 = vmatpush1.bf16.msra.mxu0 %v7515_v10  ;;  %5247 = vmatprep.subr.bf16.mxu1 %v7520_v53  ;;  %v7574_v10 = vld [vmem:[#allocation5 + $0x60c] ss:$24 sps:$4 sm:$0xff]  }
 0x193   :  { %5655 = vmatprep.subr.bf16.mxu0 %v7523_v11  ;;  %v7577_v53 = vld [vmem:[#allocation5 + $0x614] ss:$24 sps:$4 sm:$0xff]   ;;  %v7572_v11 = vld [vmem:[#allocation5 + $0x608] ss:$24 sps:$4 sm:$0xff]  }
 0x195   :  { %5248 = vmatpush1.bf16.msra.mxu1 %v7518_v12  ;;  %v7575_v12 = vld [vmem:[#allocation5 + $0x610] ss:$24 sps:$4 sm:$0xff]  }
 0x196   :  { %5656 = vmatpush1.bf16.msra.mxu0 %v7521_v13  ;;  %5249 = vmatprep.subr.bf16.mxu1 %v7526_v16  ;;  %v7580_v13 = vld [vmem:[#allocation5 + $0x63c] ss:$24 sps:$4 sm:$0xff]  }
 0x197   :  { %5657 = vmatprep.subr.bf16.mxu0 %v7529_v17  ;;  %v7583_v16 = vld [vmem:[#allocation5 + $0x644] ss:$24 sps:$4 sm:$0xff]   ;;  %v7578_v17 = vld [vmem:[#allocation5 + $0x638] ss:$24 sps:$4 sm:$0xff]  }
 0x199   :  { %5250 = vmatpush1.bf16.msra.mxu1 %v7524_v52  ;;  %v7581_v52 = vld [vmem:[#allocation5 + $0x640] ss:$24 sps:$4 sm:$0xff]  }
 0x19a   :  { %5658 = vmatpush1.bf16.msra.mxu0 %v7527_v18  ;;  %5251 = vmatprep.subr.bf16.mxu1 %v7532_v19  ;;  %v7586_v18 = vld [vmem:[#allocation5 + $0x66c] ss:$24 sps:$4 sm:$0xff]  }
 0x19b   :  { %5659 = vmatprep.subr.bf16.mxu0 %v7535_v20  ;;  %v7589_v19 = vld [vmem:[#allocation5 + $0x674] ss:$24 sps:$4 sm:$0xff]   ;;  %v7584_v20 = vld [vmem:[#allocation5 + $0x668] ss:$24 sps:$4 sm:$0xff]  }
 0x19d   :  { %5252 = vmatpush1.bf16.msra.mxu1 %v7530_v21  ;;  %v7587_v21 = vld [vmem:[#allocation5 + $0x670] ss:$24 sps:$4 sm:$0xff]  }
 0x19e   :  { %5660 = vmatpush1.bf16.msra.mxu0 %v7533_v26  ;;  %5253 = vmatprep.subr.bf16.mxu1 %v7538_v27  ;;  %v7592_v26 = vld [vmem:[#allocation5 + $0x69c] ss:$24 sps:$4 sm:$0xff]   ;;  %v7590_v27 = vld [vmem:[#allocation5 + $0x698] ss:$24 sps:$4 sm:$0xff]  }
 0x19f   :  { %5661 = vmatprep.subr.bf16.mxu0 %v7541_v28  ;;  %v7593_v28 = vld [vmem:[#allocation5 + $0x6a0] ss:$24 sps:$4 sm:$0xff]  }
 0x1a1   :  { %5254 = vmatpush1.bf16.msra.mxu1 %v7536_v29  ;;  %v7598_v29 = vld [vmem:[#allocation5 + $0x6cc] ss:$24 sps:$4 sm:$0xff]  }
 0x1a2   :  { %5662 = vmatpush1.bf16.msra.mxu0 %v7539_v32  ;;  %5255 = vmatprep.subr.bf16.mxu1 %v7544_v33  ;;  %v7596_v32 = vld [vmem:[#allocation5 + $0x6c8] ss:$24 sps:$4 sm:$0xff]  }
 0x1a3   :  { %5663 = vmatprep.subr.bf16.mxu0 %v7547_v37  ;;  %v7599_v33 = vld [vmem:[#allocation5 + $0x6d0] ss:$24 sps:$4 sm:$0xff]   ;;  %v7604_v37 = vld [vmem:[#allocation5 + $0x6fc] ss:$24 sps:$4 sm:$0xff]  }
 0x1a5   :  { %5256 = vmatpush1.bf16.msra.mxu1 %v7542_v38  ;;  %v7602_v38 = vld [vmem:[#allocation5 + $0x6f8] ss:$24 sps:$4 sm:$0xff]  }
 0x1a6   :  { %5664 = vmatpush1.bf16.msra.mxu0 %v7545_v42  ;;  %5257 = vmatprep.subr.bf16.mxu1 %v7550_v43  ;;  %v7605_v42 = vld [vmem:[#allocation5 + $0x700] ss:$24 sps:$4 sm:$0xff]   ;;  %v7610_v43 = vld [vmem:[#allocation5 + $0x72c] ss:$24 sps:$4 sm:$0xff]  }
 0x1a7   :  { %5665 = vmatprep.subr.bf16.mxu0 %v7553_v51  ;;  %v7613_v51 = vld [vmem:[#allocation5 + $0x734] ss:$24 sps:$4 sm:$0xff]  }
 0x1a9   :  { %5258 = vmatpush1.bf16.msra.mxu1 %v7548_v14  ;;  %v7608_v14 = vld [vmem:[#allocation5 + $0x728] ss:$24 sps:$4 sm:$0xff]  }
 0x1aa   :  { %5666 = vmatpush1.bf16.msra.mxu0 %v7551_v54  ;;  %5259 = vmatprep.subr.bf16.mxu1 %v7556_v60  ;;  %v7616_v54 = vld [vmem:[#allocation5 + $0x75c] ss:$24 sps:$4 sm:$0xff]  }
 0x1ab   :  { %5667 = vmatprep.subr.bf16.mxu0 %v7559_v61  ;;  %v7619_v60 = vld [vmem:[#allocation5 + $0x764] ss:$24 sps:$4 sm:$0xff]   ;;  %v7614_v61 = vld [vmem:[#allocation5 + $0x758] ss:$24 sps:$4 sm:$0xff]  }
 0x1ad   :  { %5260 = vmatpush1.bf16.msra.mxu1 %v7554_v36  ;;  %v7617_v36 = vld [vmem:[#allocation5 + $0x760] ss:$24 sps:$4 sm:$0xff]  }
 0x1ae   :  { %5668 = vmatpush1.bf16.msra.mxu0 %v7557_v0  ;;  %5261 = vmatprep.subr.bf16.mxu1 %v7562_v1  ;;  %v7622_v0 = vld [vmem:[#allocation5 + $0x78c] ss:$24 sps:$4 sm:$0xff]  }
 0x1af   :  { %5669 = vmatprep.subr.bf16.mxu0 %v7565_v2  ;;  %v7625_v1 = vld [vmem:[#allocation5 + $0x794] ss:$24 sps:$4 sm:$0xff]   ;;  %v7620_v2 = vld [vmem:[#allocation5 + $0x788] ss:$24 sps:$4 sm:$0xff]  }
 0x1b1   :  { %5262 = vmatpush1.bf16.msra.mxu1 %v7560_v46  ;;  %v7623_v46 = vld [vmem:[#allocation5 + $0x790] ss:$24 sps:$4 sm:$0xff]  }
 0x1b2   :  { %5670 = vmatpush1.bf16.msra.mxu0 %v7563_v3  ;;  %5263 = vmatprep.subr.bf16.mxu1 %v7568_v5  ;;  %v7628_v3 = vld [vmem:[#allocation5 + $0x7bc] ss:$24 sps:$4 sm:$0xff]  }
 0x1b3   :  { %5671 = vmatprep.subr.bf16.mxu0 %v7571_v6  ;;  %v7631_v5 = vld [vmem:[#allocation5 + $0x7c4] ss:$24 sps:$4 sm:$0xff]   ;;  %v7626_v6 = vld [vmem:[#allocation5 + $0x7b8] ss:$24 sps:$4 sm:$0xff]  }
 0x1b5   :  { %5264 = vmatpush1.bf16.msra.mxu1 %v7566_v8  ;;  %v7629_v8 = vld [vmem:[#allocation5 + $0x7c0] ss:$24 sps:$4 sm:$0xff]  }
 0x1b6   :  { %5672 = vmatpush1.bf16.msra.mxu0 %v7569_v9  ;;  %5284 = vmatprep.subr.bf16.mxu1 %v7574_v10  ;;  %v7634_v9 = vld [vmem:[#allocation5 + $0x7ec] ss:$24 sps:$4 sm:$0xff]  }
 0x1b7   :  { %5692 = vmatprep.subr.bf16.mxu0 %v7577_v53  ;;  %v7637_v10 = vld [vmem:[#allocation5 + $0x7f4] ss:$24 sps:$4 sm:$0xff]   ;;  %v7632_v53 = vld [vmem:[#allocation5 + $0x7e8] ss:$24 sps:$4 sm:$0xff]  }
 0x1b8   :  { %5266 = vmatmul.mubr.bf16.vlgmr.msra.gmra.mrb[8].mxu1 %v8339_v39 }
 0x1b9   :  { %5674 = vmatmul.mubr.bf16.vlgmr.msra.gmra.mrb[8].mxu0 %v8339_v39  ;;  %5285 = vmatpush1.bf16.msra.mxu1 %v7572_v11  ;;  %v7595_v39 = vld [vmem:[#allocation5 + $0x6a4] ss:$24 sps:$4 sm:$0xff]   ;;  %v7635_v11 = vld [vmem:[#allocation5 + $0x7f0] ss:$24 sps:$4 sm:$0xff]  }
 0x1ba   :  { %5693 = vmatpush1.bf16.msra.mxu0 %v7575_v12  ;;  %5286 = vmatprep.subr.bf16.mxu1 %v7580_v13  ;;  %v7640_v12 = vld [vmem:[#allocation5 + $0x81c] ss:$24 sps:$4 sm:$0xff]  }
 0x1bb   :  { %5694 = vmatprep.subr.bf16.mxu0 %v7583_v16  ;;  %5275 = vmatprep.mubr.bf16.mxu1 %v8343_v49  ;;  %v7643_v13 = vld [vmem:[#allocation5 + $0x824] ss:$24 sps:$4 sm:$0xff]   ;;  %v7638_v16 = vld [vmem:[#allocation5 + $0x818] ss:$24 sps:$4 sm:$0xff]  }
 0x1bc   :  { %5683 = vmatprep.mubr.bf16.mxu0 %v8343_v49  ;;  %v7601_v49 = vld [vmem:[#allocation5 + $0x6d4] ss:$24 sps:$4 sm:$0xff]  }
 0x1bd   :  { %5287 = vmatpush1.bf16.msra.mxu1 %v7578_v17  ;;  %v7641_v17 = vld [vmem:[#allocation5 + $0x820] ss:$24 sps:$4 sm:$0xff]  }
 0x1be   :  { %5695 = vmatpush1.bf16.msra.mxu0 %v7581_v52  ;;  %5288 = vmatprep.subr.bf16.mxu1 %v7586_v18  ;;  %v7646_v52 = vld [vmem:[#allocation5 + $0x84c] ss:$24 sps:$4 sm:$0xff]  }
 0x1bf   :  { %5696 = vmatprep.subr.bf16.mxu0 %v7589_v19  ;;  %v7649_v18 = vld [vmem:[#allocation5 + $0x854] ss:$24 sps:$4 sm:$0xff]   ;;  %v7644_v19 = vld [vmem:[#allocation5 + $0x848] ss:$24 sps:$4 sm:$0xff]  }
 0x1c0   :  { %5276 = vmatmul.mubr.bf16.gmra.mrb[12].mxu1 %v8351_v62 }
 0x1c1   :  { %5684 = vmatmul.mubr.bf16.gmra.mrb[12].mxu0 %v8351_v62  ;;  %5289 = vmatpush1.bf16.msra.mxu1 %v7584_v20  ;;  %v7607_v62 = vld [vmem:[#allocation5 + $0x704] ss:$24 sps:$4 sm:$0xff]   ;;  %v7647_v20 = vld [vmem:[#allocation5 + $0x850] ss:$24 sps:$4 sm:$0xff]  }
 0x1c2   :  { %5697 = vmatpush1.bf16.msra.mxu0 %v7587_v21  ;;  %5290 = vmatprep.subr.bf16.mxu1 %v7592_v26  ;;  %v7652_v21 = vld [vmem:[#allocation5 + $0x87c] ss:$24 sps:$4 sm:$0xff]  }
 0x1c3   :  { %5698 = vmatprep.subr.bf16.mxu0 %v7595_v39  ;;  %5316 = vmatprep.mubr.bf16.mxu1 %v8355_v4  ;;  %v7655_v26 = vld [vmem:[#allocation5 + $0x884] ss:$24 sps:$4 sm:$0xff]   ;;  %v7650_v39 = vld [vmem:[#allocation5 + $0x878] ss:$24 sps:$4 sm:$0xff]  }
 0x1c4   :  { %5724 = vmatprep.mubr.bf16.mxu0 %v8355_v4  ;;  %v7611_v4 = vld [vmem:[#allocation5 + $0x730] ss:$24 sps:$4 sm:$0xff]  }
 0x1c5   :  { %5291 = vmatpush1.bf16.msra.mxu1 %v7590_v27  ;;  %v7653_v27 = vld [vmem:[#allocation5 + $0x880] ss:$24 sps:$4 sm:$0xff]  }
 0x1c6   :  { %5699 = vmatpush1.bf16.msra.mxu0 %v7593_v28  ;;  %5292 = vmatprep.subr.bf16.mxu1 %v7598_v29  ;;  %v7658_v28 = vld [vmem:[#allocation5 + $0x8ac] ss:$24 sps:$4 sm:$0xff]  }
 0x1c7   :  { %5700 = vmatprep.subr.bf16.mxu0 %v7601_v49  ;;  %v7661_v29 = vld [vmem:[#allocation5 + $0x8b4] ss:$24 sps:$4 sm:$0xff]   ;;  %v7656_v49 = vld [vmem:[#allocation5 + $0x8a8] ss:$24 sps:$4 sm:$0xff]  }
 0x1c9   :  { %5293 = vmatpush1.bf16.msra.mxu1 %v7596_v32  ;;  %v7659_v32 = vld [vmem:[#allocation5 + $0x8b0] ss:$24 sps:$4 sm:$0xff]  }
 0x1ca   :  { %5701 = vmatpush1.bf16.msra.mxu0 %v7599_v33  ;;  %5294 = vmatprep.subr.bf16.mxu1 %v7604_v37  ;;  %v7664_v33 = vld [vmem:[#allocation5 + $0x8dc] ss:$24 sps:$4 sm:$0xff]  }
 0x1cb   :  { %5702 = vmatprep.subr.bf16.mxu0 %v7607_v62  ;;  %v7667_v37 = vld [vmem:[#allocation5 + $0x8e4] ss:$24 sps:$4 sm:$0xff]   ;;  %v7662_v62 = vld [vmem:[#allocation5 + $0x8d8] ss:$24 sps:$4 sm:$0xff]  }
 0x1cd   :  { %5295 = vmatpush1.bf16.msra.mxu1 %v7602_v38  ;;  %v7665_v38 = vld [vmem:[#allocation5 + $0x8e0] ss:$24 sps:$4 sm:$0xff]  }
 0x1ce   :  { %5703 = vmatpush1.bf16.msra.mxu0 %v7605_v42  ;;  %5296 = vmatprep.subr.bf16.mxu1 %v7610_v43  ;;  %v7670_v42 = vld [vmem:[#allocation5 + $0x90c] ss:$24 sps:$4 sm:$0xff]  }
 0x1cf   :  { %5704 = vmatprep.subr.bf16.mxu0 %v7613_v51  ;;  %v7673_v43 = vld [vmem:[#allocation5 + $0x914] ss:$24 sps:$4 sm:$0xff]   ;;  %v7668_v51 = vld [vmem:[#allocation5 + $0x908] ss:$24 sps:$4 sm:$0xff]  }
 0x1d1   :  { %5297 = vmatpush1.bf16.msra.mxu1 %v7608_v14  ;;  %v7671_v14 = vld [vmem:[#allocation5 + $0x910] ss:$24 sps:$4 sm:$0xff]  }
 0x1d2   :  { %5705 = vmatpush1.bf16.msra.mxu0 %v7611_v4  ;;  %5298 = vmatprep.subr.bf16.mxu1 %v7616_v54  ;;  %v7676_v4 = vld [vmem:[#allocation5 + $0x93c] ss:$24 sps:$4 sm:$0xff]  }
 0x1d3   :  { %5706 = vmatprep.subr.bf16.mxu0 %v7619_v60  ;;  %v7679_v54 = vld [vmem:[#allocation5 + $0x944] ss:$24 sps:$4 sm:$0xff]   ;;  %v7674_v60 = vld [vmem:[#allocation5 + $0x938] ss:$24 sps:$4 sm:$0xff]  }
 0x1d5   :  { %5299 = vmatpush1.bf16.msra.mxu1 %v7614_v61  ;;  %v7677_v61 = vld [vmem:[#allocation5 + $0x940] ss:$24 sps:$4 sm:$0xff]  }
 0x1d6   :  { %5707 = vmatpush1.bf16.msra.mxu0 %v7617_v36  ;;  %5300 = vmatprep.subr.bf16.mxu1 %v7622_v0  ;;  %v7682_v36 = vld [vmem:[#allocation5 + $0x96c] ss:$24 sps:$4 sm:$0xff]  }
 0x1d7   :  { %5708 = vmatprep.subr.bf16.mxu0 %v7625_v1  ;;  %v7685_v0 = vld [vmem:[#allocation5 + $0x974] ss:$24 sps:$4 sm:$0xff]   ;;  %v904_v1 = vlaneseq }
 0x1d9   :  { %5301 = vmatpush1.bf16.msra.mxu1 %v7620_v2  ;;  %v7680_v2 = vld [vmem:[#allocation5 + $0x968] ss:$24 sps:$4 sm:$0xff]  }
 0x1da   :  { %5709 = vmatpush1.bf16.msra.mxu0 %v7623_v46  ;;  %5302 = vmatprep.subr.bf16.mxu1 %v7628_v3  ;;  %v7683_v46 = vld [vmem:[#allocation5 + $0x970] ss:$24 sps:$4 sm:$0xff]   ;;  %v7691_v3 = vld [vmem:[#allocation5 + $0x9a4] ss:$24 sps:$4 sm:$0xff]  }
 0x1db   :  { %5710 = vmatprep.subr.bf16.mxu0 %v7631_v5  ;;  %v8427_v5 = vshrl.u32 %v904_v1, 7  ;;  %v7718_v1 = vld [vmem:[#allocation5 + $0xa8c] ss:$24 sps:$4 sm:$0xff]  }
 0x1dd   :  { %5303 = vmatpush1.bf16.msra.mxu1 %v7626_v6  ;;  %v7686_v6 = vld [vmem:[#allocation5 + $0x998] ss:$24 sps:$4 sm:$0xff]  }
 0x1de   :  { %5711 = vmatpush1.bf16.msra.mxu0 %v7629_v8  ;;  %5304 = vmatprep.subr.bf16.mxu1 %v7634_v9  ;;  %v7689_v8 = vld [vmem:[#allocation5 + $0x9a0] ss:$24 sps:$4 sm:$0xff]   ;;  %v7697_v9 = vld [vmem:[#allocation5 + $0x9d4] ss:$24 sps:$4 sm:$0xff]  }
 0x1df   :  { %5712 = vmatprep.subr.bf16.mxu0 %v7637_v10  ;;  %v7692_v10 = vld [vmem:[#allocation5 + $0x9c8] ss:$24 sps:$4 sm:$0xff]  }
 0x1e1   :  { %5305 = vmatpush1.bf16.msra.mxu1 %v7632_v53  ;;  %v906_v53 = vsub.s32 0, %v8427_v5 }
 0x1e2   :  { %5713 = vmatpush1.bf16.msra.mxu0 %v7635_v11  ;;  %5306 = vmatprep.subr.bf16.mxu1 %v7640_v12  ;;  %v7695_v11 = vld [vmem:[#allocation5 + $0x9d0] ss:$24 sps:$4 sm:$0xff]   ;;  %v902_v12 = vld [vmem:[#allocation7] sm:$0x3f] }
 0x1e3   :  { %5714 = vmatprep.subr.bf16.mxu0 %v7643_v13  ;;  %v7700_v13 = vld [vmem:[#allocation5 + $0x9fc] ss:$24 sps:$4 sm:$0xff]  }
 0x1e5   :  { %5307 = vmatpush1.bf16.msra.mxu1 %v7638_v16  ;;  %v7703_v16 = vld [vmem:[#allocation5 + $0xa04] ss:$24 sps:$4 sm:$0xff]  }
 0x1e6   :  { %5715 = vmatpush1.bf16.msra.mxu0 %v7641_v17  ;;  %5308 = vmatprep.subr.bf16.mxu1 %v7646_v52  ;;  %v907_v17 = vrot.slane %v902_v12, %v906_v53  ;;  %v7716_v53 = vld [vmem:[#allocation5 + $0xa88] ss:$24 sps:$4 sm:$0xff]  }
 0x1e7   :  { %5716 = vmatprep.subr.bf16.mxu0 %v7649_v18  ;;  %v7698_v18 = vld [vmem:[#allocation5 + $0x9f8] ss:$24 sps:$4 sm:$0xff]  }
 0x1e9   :  { %5309 = vmatpush1.bf16.msra.mxu1 %v7644_v19  ;;  %v7701_v19 = vld [vmem:[#allocation5 + $0xa00] ss:$24 sps:$4 sm:$0xff]  }
 0x1ea   :  { %5717 = vmatpush1.bf16.msra.mxu0 %v7647_v20  ;;  %5310 = vmatprep.subr.bf16.mxu1 %v7652_v21  ;;  %v7709_v20 = vld [vmem:[#allocation5 + $0xa34] ss:$24 sps:$4 sm:$0xff]  }
 0x1eb   :  { %5718 = vmatprep.subr.bf16.mxu0 %v7655_v26 }
 0x1ed   :  { %5311 = vmatpush1.bf16.msra.mxu1 %v7650_v39 }
 0x1ee   :  { %5719 = vmatpush1.bf16.msra.mxu0 %v7653_v27  ;;  %5312 = vmatprep.subr.bf16.mxu1 %v7658_v28 }
 0x1ef   :  { %5720 = vmatprep.subr.bf16.mxu0 %v7661_v29 }
 0x1f1   :  { %5313 = vmatpush1.bf16.msra.mxu1 %v7656_v49 }
 0x1f2   :  { %5721 = vmatpush1.bf16.msra.mxu0 %v7659_v32  ;;  %5314 = vmatprep.subr.bf16.mxu1 %v7664_v33  ;;  %v7704_v33 = vld [vmem:[#allocation5 + $0xa28] ss:$24 sps:$4 sm:$0xff]  }
 0x1f3   :  { %5722 = vmatprep.subr.bf16.mxu0 %v7667_v37  ;;  %v7707_v37 = vld [vmem:[#allocation5 + $0xa30] ss:$24 sps:$4 sm:$0xff]  }
 0x1f5   :  { %5315 = vmatpush1.bf16.msra.mxu1 %v7662_v62 }
 0x1f6   :  { %5723 = vmatpush1.bf16.msra.mxu0 %v7665_v38  ;;  %5335 = vmatprep.subr.bf16.mxu1 %v7670_v42 }
 0x1f7   :  { %5743 = vmatprep.subr.bf16.mxu0 %v7673_v43 }
 0x1f8   :  { %5317 = vmatmul.mubr.bf16.vlgmr.msra.gmra.mrb[8].mxu1 %v8363_v22 }
 0x1f9   :  { %5725 = vmatmul.mubr.bf16.vlgmr.msra.gmra.mrb[8].mxu0 %v8363_v22  ;;  %5336 = vmatpush1.bf16.msra.mxu1 %v7668_v51  ;;  %v7688_v22 = vld [vmem:[#allocation5 + $0x99c] ss:$24 sps:$4 sm:$0xff]  }
 0x1fa   :  { %5744 = vmatpush1.bf16.msra.mxu0 %v7671_v14  ;;  %5337 = vmatprep.subr.bf16.mxu1 %v7676_v4  ;;  %v7712_v51 = vld [vmem:[#allocation5 + $0xa5c] ss:$24 sps:$4 sm:$0xff]  }
 0x1fb   :  { %5745 = vmatprep.subr.bf16.mxu0 %v7679_v54  ;;  %5326 = vmatprep.mubr.bf16.mxu1 %v8367_v30  ;;  %v7715_v14 = vld [vmem:[#allocation5 + $0xa64] ss:$24 sps:$4 sm:$0xff]  }
 0x1fc   :  { %5734 = vmatprep.mubr.bf16.mxu0 %v8367_v30  ;;  %v7694_v30 = vld [vmem:[#allocation5 + $0x9cc] ss:$24 sps:$4 sm:$0xff]  }
 0x1fd   :  { %5338 = vmatpush1.bf16.msra.mxu1 %v7674_v60 }
 0x1fe   :  { %5746 = vmatpush1.bf16.msra.mxu0 %v7677_v61  ;;  %5339 = vmatprep.subr.bf16.mxu1 %v7682_v36  ;;  %v7710_v36 = vld [vmem:[#allocation5 + $0xa58] ss:$24 sps:$4 sm:$0xff]  }
 0x1ff   :  { %5747 = vmatprep.subr.bf16.mxu0 %v7685_v0  ;;  %v7713_v0 = vld [vmem:[#allocation5 + $0xa60] ss:$24 sps:$4 sm:$0xff]  }
 0x200   :  { %5327 = vmatmul.mubr.bf16.gmra.mrb[12].mxu1 %v8375_v44 }
 0x201   :  { %5735 = vmatmul.mubr.bf16.gmra.mrb[12].mxu0 %v8375_v44  ;;  %5340 = vmatpush1.bf16.msra.mxu1 %v7680_v2  ;;  %v910_v44 = vsub.s32 1, %v8427_v5  ;;  %v7721_v2 = vld [vmem:[#allocation5 + $0xa94] ss:$24 sps:$4 sm:$0xff]  }
 0x202   :  { %5748 = vmatpush1.bf16.msra.mxu0 %v7683_v46  ;;  %5341 = vmatprep.subr.bf16.mxu1 %v7688_v22 }
 0x203   :  { %5749 = vmatprep.subr.bf16.mxu0 %v7691_v3  ;;  %5367 = vmatprep.mubr.bf16.mxu1 %v8379_v57  ;;  %v911_v52 = vrot.slane %v902_v12, %v910_v44 }
 0x204   :  { %5775 = vmatprep.mubr.bf16.mxu0 %v8379_v57  ;;  %v7706_v57 = vld [vmem:[#allocation5 + $0xa2c] ss:$24 sps:$4 sm:$0xff]  }
 0x205   :  { %5342 = vmatpush1.bf16.msra.mxu1 %v7686_v6 }
 0x206   :  { %5750 = vmatpush1.bf16.msra.mxu0 %v7689_v8  ;;  %5343 = vmatprep.subr.bf16.mxu1 %v7694_v30 }
 0x207   :  { %5751 = vmatprep.subr.bf16.mxu0 %v7697_v9 }
 0x209   :  { %5344 = vmatpush1.bf16.msra.mxu1 %v7692_v10 }
 0x20a   :  { %5752 = vmatpush1.bf16.msra.mxu0 %v7695_v11  ;;  %5345 = vmatprep.subr.bf16.mxu1 %v7700_v13  ;;  %v7719_v11 = vld [vmem:[#allocation5 + $0xa90] ss:$24 sps:$4 sm:$0xff]  }
 0x20b   :  { %5753 = vmatprep.subr.bf16.mxu0 %v7703_v16  ;;  %v4961_v21 = vpop.f32.mrb[0].mxu1  ;;  %v7724_v16 = vld [vmem:[#allocation5 + $0xabc] ss:$24 sps:$4 sm:$0xff]  }
 0x20c   :  { %v5165_v26 = vpop.f32.mrb[0].mxu0  ;;  %v6802_v39 = vadd.f32 %v4961_v21, %v907_v17  ;;  %v4963_v27 = vpop.f32.mrb[1].mxu1  ;;  %v7728_v21 = vld [vmem:[#allocation5 + $0xae8] ss:$24 sps:$4 sm:$0xff]  }
 0x20d   :  { %v5167_v28 = vpop.f32.mrb[1].mxu0  ;;  %v6804_v29 = vadd.f32 %v4963_v27, %v911_v52  ;;  %v4965_v49 = vpop.f32.mrb[2].mxu1  ;;  %5346 = vmatpush1.bf16.msra.mxu1 %v7698_v18  ;;  %v7727_v18 = vld [vmem:[#allocation5 + $0xac4] ss:$24 sps:$4 sm:$0xff]  }
 0x20e   :  { %v5169_v32 = vpop.f32.mrb[2].mxu0  ;;  %5754 = vmatpush1.bf16.msra.mxu0 %v7701_v19  ;;  %v6803_v62 = vadd.f32 %v6802_v39, %v5165_v26  ;;  %v6806_v38 = vadd.f32 %v4965_v49, %v907_v17  ;;  %v4967_v42 = vpop.f32.mrb[3].mxu1  ;;  %5347 = vmatprep.subr.bf16.mxu1 %v7706_v57  ;;  %v7730_v57 = vld [vmem:[#allocation5 + $0xaec] ss:$24 sps:$4 sm:$0xff]   ;;  %v7731_v26 = vld [vmem:[#allocation5 + $0xaf0] ss:$24 sps:$4 sm:$0xff]  }
 0x20f   :  { %v5171_v43 = vpop.f32.mrb[3].mxu0  ;;  %5755 = vmatprep.subr.bf16.mxu0 %v7709_v20  ;;  %v6805_v4 = vadd.f32 %v6804_v29, %v5167_v28  ;;  %v6808_v54 = vadd.f32 %v4967_v42, %v911_v52  ;;  %v7733_v20 = vld [vmem:[#allocation5 + $0xaf4] ss:$24 sps:$4 sm:$0xff]   ;;  %v7739_v27 = vld [vmem:[#allocation5 + $0xb24] ss:$24 sps:$4 sm:$0xff]  }
 0x210   :  { %5998 = vst [vmem:[#allocation8] sm:$0xff] %v6803_v62  ;;  %v6807_v60 = vadd.f32 %v6806_v38, %v5169_v32  ;;  %v7736_v39 = vld [vmem:[#allocation5 + $0xb1c] ss:$24 sps:$4 sm:$0xff]   ;;  %v7734_v28 = vld [vmem:[#allocation5 + $0xb18] ss:$24 sps:$4 sm:$0xff]  }
 0x211   :  { %5999 = vst [vmem:[#allocation8 + $0x8] sm:$0xff] %v6805_v4  ;;  %v6809_v61 = vadd.f32 %v6808_v54, %v5171_v43  ;;  %5348 = vmatpush1.bf16.msra.mxu1 %v7704_v33  ;;  %v7737_v29 = vld [vmem:[#allocation5 + $0xb20] ss:$24 sps:$4 sm:$0xff]   ;;  %v7742_v49 = vld [vmem:[#allocation5 + $0xb4c] ss:$24 sps:$4 sm:$0xff]  }
 0x212   :  { %5756 = vmatpush1.bf16.msra.mxu0 %v7707_v37  ;;  %6004 = vst [vmem:[#allocation8 + $0x30] sm:$0xff] %v6807_v60  ;;  %5349 = vmatprep.subr.bf16.mxu1 %v7712_v51  ;;  %v7745_v32 = vld [vmem:[#allocation5 + $0xb54] ss:$24 sps:$4 sm:$0xff]   ;;  %v7740_v33 = vld [vmem:[#allocation5 + $0xb48] ss:$24 sps:$4 sm:$0xff]  }
 0x213   :  { %5757 = vmatprep.subr.bf16.mxu0 %v7715_v14  ;;  %6005 = vst [vmem:[#allocation8 + $0x38] sm:$0xff] %v6809_v61  ;;  %v4971_v46 = vpop.f32.mrb[4].mxu1  ;;  %v7743_v37 = vld [vmem:[#allocation5 + $0xb50] ss:$24 sps:$4 sm:$0xff]   ;;  %v7748_v62 = vld [vmem:[#allocation5 + $0xb7c] ss:$24 sps:$4 sm:$0xff]  }
 0x214   :  { %v5175_v22 = vpop.f32.mrb[4].mxu0  ;;  %v6810_v3 = vadd.f32 %v4971_v46, %v907_v17  ;;  %v4973_v6 = vpop.f32.mrb[5].mxu1  ;;  %v7722_v17 = vld [vmem:[#allocation5 + $0xab8] ss:$24 sps:$4 sm:$0xff]   ;;  %v7751_v38 = vld [vmem:[#allocation5 + $0xb84] ss:$24 sps:$4 sm:$0xff]  }
 0x215   :  { %v5177_v8 = vpop.f32.mrb[5].mxu0  ;;  %v6812_v30 = vadd.f32 %v4973_v6, %v911_v52  ;;  %v4975_v9 = vpop.f32.mrb[6].mxu1  ;;  %5350 = vmatpush1.bf16.msra.mxu1 %v7710_v36  ;;  %v7725_v52 = vld [vmem:[#allocation5 + $0xac0] ss:$24 sps:$4 sm:$0xff]   ;;  %v7754_v51 = vld [vmem:[#allocation5 + $0xbac] ss:$24 sps:$4 sm:$0xff]  }
 0x216   :  { %v5179_v10 = vpop.f32.mrb[6].mxu0  ;;  %5758 = vmatpush1.bf16.msra.mxu0 %v7713_v0  ;;  %v6811_v12 = vadd.f32 %v6810_v3, %v5175_v22  ;;  %v4976_v44 = vpop.f32.mrb[7].mxu1  ;;  %5351 = vmatprep.subr.bf16.mxu1 %v7718_v1  ;;  %v7746_v42 = vld [vmem:[#allocation5 + $0xb78] ss:$24 sps:$4 sm:$0xff]   ;;  %v7757_v14 = vld [vmem:[#allocation5 + $0xbb4] ss:$24 sps:$4 sm:$0xff]  }
 0x217   :  { %v5180_v13 = vpop.f32.mrb[7].mxu0  ;;  %5759 = vmatprep.subr.bf16.mxu0 %v7721_v2  ;;  %v6813_v19 = vadd.f32 %v6812_v30, %v5177_v8  ;;  %v7749_v43 = vld [vmem:[#allocation5 + $0xb80] ss:$24 sps:$4 sm:$0xff]   ;;  %v7755_v54 = vld [vmem:[#allocation5 + $0xbb0] ss:$24 sps:$4 sm:$0xff]  }
 0x218   :  { %6010 = vst [vmem:[#allocation8 + $0x60] sm:$0xff] %v6811_v12  ;;  %v7752_v4 = vld [vmem:[#allocation5 + $0xba8] ss:$24 sps:$4 sm:$0xff]   ;;  %v7760_v60 = vld [vmem:[#allocation5 + $0xbdc] ss:$24 sps:$4 sm:$0xff]  }
 0x219   :  { %6011 = vst [vmem:[#allocation8 + $0x68] sm:$0xff] %v6813_v19  ;;  %5352 = vmatpush1.bf16.msra.mxu1 %v7716_v53  ;;  %v7763_v61 = vld [vmem:[#allocation5 + $0xbe4] ss:$24 sps:$4 sm:$0xff]   ;;  %v7758_v36 = vld [vmem:[#allocation5 + $0xbd8] ss:$24 sps:$4 sm:$0xff]  }
 0x21a   :  { %5760 = vmatpush1.bf16.msra.mxu0 %v7719_v11  ;;  %5353 = vmatprep.subr.bf16.mxu1 %v7724_v16  ;;  %v7761_v0 = vld [vmem:[#allocation5 + $0xbe0] ss:$24 sps:$4 sm:$0xff]   ;;  %v7766_v1 = vld [vmem:[#allocation5 + $0xc0c] ss:$24 sps:$4 sm:$0xff]   ;;  %v7767_v22 = vld [vmem:[#allocation5 + $0xc10] ss:$24 sps:$4 sm:$0xff]  }
 0x21b   :  { %5761 = vmatprep.subr.bf16.mxu0 %v7727_v18  ;;  %v7769_v2 = vld [vmem:[#allocation5 + $0xc14] ss:$24 sps:$4 sm:$0xff]   ;;  %v7764_v46 = vld [vmem:[#allocation5 + $0xc08] ss:$24 sps:$4 sm:$0xff]   ;;  %v7775_v6 = vld [vmem:[#allocation5 + $0xc44] ss:$24 sps:$4 sm:$0xff]  }
 0x21c   :  { %v7772_v3 = vld [vmem:[#allocation5 + $0xc3c] ss:$24 sps:$4 sm:$0xff]   ;;  %v7770_v8 = vld [vmem:[#allocation5 + $0xc38] ss:$24 sps:$4 sm:$0xff]   ;;  %v7778_v9 = vld [vmem:[#allocation5 + $0xc6c] ss:$24 sps:$4 sm:$0xff]  }
 0x21d   :  { %5354 = vmatpush1.bf16.msra.mxu1 %v7722_v17  ;;  %v7773_v30 = vld [vmem:[#allocation5 + $0xc40] ss:$24 sps:$4 sm:$0xff]   ;;  %v7781_v10 = vld [vmem:[#allocation5 + $0xc74] ss:$24 sps:$4 sm:$0xff]   ;;  %v7779_v11 = vld [vmem:[#allocation5 + $0xc70] ss:$24 sps:$4 sm:$0xff]  }
 0x21e   :  { %5762 = vmatpush1.bf16.msra.mxu0 %v7725_v52  ;;  %5355 = vmatprep.subr.bf16.mxu1 %v7730_v57  ;;  %v7776_v53 = vld [vmem:[#allocation5 + $0xc68] ss:$24 sps:$4 sm:$0xff]   ;;  %v7784_v12 = vld [vmem:[#allocation5 + $0xc9c] ss:$24 sps:$4 sm:$0xff]   ;;  %v7782_v44 = vld [vmem:[#allocation5 + $0xc98] ss:$24 sps:$4 sm:$0xff]  }
 0x21f   :  { %5763 = vmatprep.subr.bf16.mxu0 %v7733_v20  ;;  %v7785_v13 = vld [vmem:[#allocation5 + $0xca0] ss:$24 sps:$4 sm:$0xff]   ;;  %v7790_v16 = vld [vmem:[#allocation5 + $0xccc] ss:$24 sps:$4 sm:$0xff]   ;;  %v7791_v19 = vld [vmem:[#allocation5 + $0xcd0] ss:$24 sps:$4 sm:$0xff]  }
 0x220   :  { %v7788_v18 = vld [vmem:[#allocation5 + $0xcc8] ss:$24 sps:$4 sm:$0xff]   ;;  %v7796_v17 = vld [vmem:[#allocation5 + $0xcfc] ss:$24 sps:$4 sm:$0xff]   ;;  %v7794_v52 = vld [vmem:[#allocation5 + $0xcf8] ss:$24 sps:$4 sm:$0xff]  }
 0x221   :  { %5356 = vmatpush1.bf16.msra.mxu1 %v7728_v21  ;;  %v7797_v57 = vld [vmem:[#allocation5 + $0xd00] ss:$24 sps:$4 sm:$0xff]   ;;  %v7802_v20 = vld [vmem:[#allocation5 + $0xd2c] ss:$24 sps:$4 sm:$0xff]  }
 0x222   :  { %5764 = vmatpush1.bf16.msra.mxu0 %v7731_v26  ;;  %5357 = vmatprep.subr.bf16.mxu1 %v7736_v39  ;;  %v7805_v21 = vld [vmem:[#allocation5 + $0xd34] ss:$24 sps:$4 sm:$0xff]   ;;  %v7800_v26 = vld [vmem:[#allocation5 + $0xd28] ss:$24 sps:$4 sm:$0xff]  }
 0x223   :  { %5765 = vmatprep.subr.bf16.mxu0 %v7739_v27  ;;  %v7808_v39 = vld [vmem:[#allocation5 + $0xd5c] ss:$24 sps:$4 sm:$0xff]  }
 0x224   :  { %v7811_v27 = vld [vmem:[#allocation5 + $0xd64] ss:$24 sps:$4 sm:$0xff]  }
 0x225   :  { %5358 = vmatpush1.bf16.msra.mxu1 %v7734_v28  ;;  %v7806_v28 = vld [vmem:[#allocation5 + $0xd58] ss:$24 sps:$4 sm:$0xff]  }
 0x226   :  { %5766 = vmatpush1.bf16.msra.mxu0 %v7737_v29  ;;  %5359 = vmatprep.subr.bf16.mxu1 %v7742_v49  ;;  %v7809_v29 = vld [vmem:[#allocation5 + $0xd60] ss:$24 sps:$4 sm:$0xff]   ;;  %v7814_v49 = vld [vmem:[#allocation5 + $0xd8c] ss:$24 sps:$4 sm:$0xff]  }
 0x227   :  { %5767 = vmatprep.subr.bf16.mxu0 %v7745_v32  ;;  %v7817_v32 = vld [vmem:[#allocation5 + $0xd94] ss:$24 sps:$4 sm:$0xff]  }
 0x229   :  { %5360 = vmatpush1.bf16.msra.mxu1 %v7740_v33  ;;  %v7812_v33 = vld [vmem:[#allocation5 + $0xd88] ss:$24 sps:$4 sm:$0xff]  }
 0x22a   :  { %5768 = vmatpush1.bf16.msra.mxu0 %v7743_v37  ;;  %5361 = vmatprep.subr.bf16.mxu1 %v7748_v62  ;;  %v7815_v37 = vld [vmem:[#allocation5 + $0xd90] ss:$24 sps:$4 sm:$0xff]   ;;  %v7820_v62 = vld [vmem:[#allocation5 + $0xdbc] ss:$24 sps:$4 sm:$0xff]  }
 0x22b   :  { %5769 = vmatprep.subr.bf16.mxu0 %v7751_v38  ;;  %v7823_v38 = vld [vmem:[#allocation5 + $0xdc4] ss:$24 sps:$4 sm:$0xff]  }
 0x22d   :  { %5362 = vmatpush1.bf16.msra.mxu1 %v7746_v42  ;;  %v7818_v42 = vld [vmem:[#allocation5 + $0xdb8] ss:$24 sps:$4 sm:$0xff]  }
 0x22e   :  { %5770 = vmatpush1.bf16.msra.mxu0 %v7749_v43  ;;  %5363 = vmatprep.subr.bf16.mxu1 %v7754_v51  ;;  %v7821_v43 = vld [vmem:[#allocation5 + $0xdc0] ss:$24 sps:$4 sm:$0xff]   ;;  %v7826_v51 = vld [vmem:[#allocation5 + $0xdec] ss:$24 sps:$4 sm:$0xff]  }
 0x22f   :  { %5771 = vmatprep.subr.bf16.mxu0 %v7757_v14  ;;  %v7829_v14 = vld [vmem:[#allocation5 + $0xdf4] ss:$24 sps:$4 sm:$0xff]  }
 0x231   :  { %5364 = vmatpush1.bf16.msra.mxu1 %v7752_v4  ;;  %v7824_v4 = vld [vmem:[#allocation5 + $0xde8] ss:$24 sps:$4 sm:$0xff]  }
 0x232   :  { %5772 = vmatpush1.bf16.msra.mxu0 %v7755_v54  ;;  %5365 = vmatprep.subr.bf16.mxu1 %v7760_v60  ;;  %v7827_v54 = vld [vmem:[#allocation5 + $0xdf0] ss:$24 sps:$4 sm:$0xff]   ;;  %v7832_v60 = vld [vmem:[#allocation5 + $0xe1c] ss:$24 sps:$4 sm:$0xff]  }
 0x233   :  { %5773 = vmatprep.subr.bf16.mxu0 %v7763_v61  ;;  %v7835_v61 = vld [vmem:[#allocation5 + $0xe24] ss:$24 sps:$4 sm:$0xff]  }
 0x235   :  { %5366 = vmatpush1.bf16.msra.mxu1 %v7758_v36  ;;  %v7830_v36 = vld [vmem:[#allocation5 + $0xe18] ss:$24 sps:$4 sm:$0xff]  }
 0x236   :  { %5774 = vmatpush1.bf16.msra.mxu0 %v7761_v0  ;;  %5386 = vmatprep.subr.bf16.mxu1 %v7766_v1  ;;  %v7833_v0 = vld [vmem:[#allocation5 + $0xe20] ss:$24 sps:$4 sm:$0xff]   ;;  %v7838_v1 = vld [vmem:[#allocation5 + $0xe4c] ss:$24 sps:$4 sm:$0xff]  }
 0x237   :  { %5794 = vmatprep.subr.bf16.mxu0 %v7769_v2  ;;  %v7841_v2 = vld [vmem:[#allocation5 + $0xe54] ss:$24 sps:$4 sm:$0xff]  }
 0x238   :  { %5368 = vmatmul.mubr.bf16.vlgmr.msra.gmra.mrb[8].mxu1 %v8387_v24 }
 0x239   :  { %5776 = vmatmul.mubr.bf16.vlgmr.msra.gmra.mrb[8].mxu0 %v8387_v24  ;;  %5387 = vmatpush1.bf16.msra.mxu1 %v7764_v46  ;;  %v7787_v24 = vld [vmem:[#allocation5 + $0xca4] ss:$24 sps:$4 sm:$0xff]   ;;  %v7836_v46 = vld [vmem:[#allocation5 + $0xe48] ss:$24 sps:$4 sm:$0xff]  }
 0x23a   :  { %5795 = vmatpush1.bf16.msra.mxu0 %v7767_v22  ;;  %5388 = vmatprep.subr.bf16.mxu1 %v7772_v3  ;;  %v7839_v22 = vld [vmem:[#allocation5 + $0xe50] ss:$24 sps:$4 sm:$0xff]   ;;  %v7844_v3 = vld [vmem:[#allocation5 + $0xe7c] ss:$24 sps:$4 sm:$0xff]  }
 0x23b   :  { %5796 = vmatprep.subr.bf16.mxu0 %v7775_v6  ;;  %5377 = vmatprep.mubr.bf16.mxu1 %v8391_v34  ;;  %v7847_v6 = vld [vmem:[#allocation5 + $0xe84] ss:$24 sps:$4 sm:$0xff]  }
 0x23c   :  { %5785 = vmatprep.mubr.bf16.mxu0 %v8391_v34  ;;  %v7793_v34 = vld [vmem:[#allocation5 + $0xcd4] ss:$24 sps:$4 sm:$0xff]  }
 0x23d   :  { %5389 = vmatpush1.bf16.msra.mxu1 %v7770_v8  ;;  %v7842_v8 = vld [vmem:[#allocation5 + $0xe78] ss:$24 sps:$4 sm:$0xff]  }
 0x23e   :  { %5797 = vmatpush1.bf16.msra.mxu0 %v7773_v30  ;;  %5390 = vmatprep.subr.bf16.mxu1 %v7778_v9  ;;  %v7845_v30 = vld [vmem:[#allocation5 + $0xe80] ss:$24 sps:$4 sm:$0xff]   ;;  %v7850_v9 = vld [vmem:[#allocation5 + $0xeac] ss:$24 sps:$4 sm:$0xff]  }
 0x23f   :  { %5798 = vmatprep.subr.bf16.mxu0 %v7781_v10  ;;  %v7853_v10 = vld [vmem:[#allocation5 + $0xeb4] ss:$24 sps:$4 sm:$0xff]  }
 0x240   :  { %5378 = vmatmul.mubr.bf16.gmra.mrb[12].mxu1 %v8399_v48 }
 0x241   :  { %5786 = vmatmul.mubr.bf16.gmra.mrb[12].mxu0 %v8399_v48  ;;  %5391 = vmatpush1.bf16.msra.mxu1 %v7776_v53  ;;  %v7799_v48 = vld [vmem:[#allocation5 + $0xd04] ss:$24 sps:$4 sm:$0xff]   ;;  %v7848_v53 = vld [vmem:[#allocation5 + $0xea8] ss:$24 sps:$4 sm:$0xff]  }
 0x242   :  { %5799 = vmatpush1.bf16.msra.mxu0 %v7779_v11  ;;  %5392 = vmatprep.subr.bf16.mxu1 %v7784_v12  ;;  %v7851_v11 = vld [vmem:[#allocation5 + $0xeb0] ss:$24 sps:$4 sm:$0xff]   ;;  %v7856_v12 = vld [vmem:[#allocation5 + $0xedc] ss:$24 sps:$4 sm:$0xff]  }
 0x243   :  { %5800 = vmatprep.subr.bf16.mxu0 %v7787_v24  ;;  %5418 = vmatprep.mubr.bf16.mxu1 %v8312_v55  ;;  %v7859_v24 = vld [vmem:[#allocation5 + $0xee4] ss:$24 sps:$4 sm:$0xff]  }
 0x244   :  { %5826 = vmatprep.mubr.bf16.mxu0 %v8312_v55  ;;  %v7803_v55 = vld [vmem:[#allocation5 + $0xd30] ss:$24 sps:$4 sm:$0xff]  }
 0x245   :  { %5393 = vmatpush1.bf16.msra.mxu1 %v7782_v44  ;;  %v7854_v44 = vld [vmem:[#allocation5 + $0xed8] ss:$24 sps:$4 sm:$0xff]  }
 0x246   :  { %5801 = vmatpush1.bf16.msra.mxu0 %v7785_v13  ;;  %5394 = vmatprep.subr.bf16.mxu1 %v7790_v16  ;;  %v7857_v13 = vld [vmem:[#allocation5 + $0xee0] ss:$24 sps:$4 sm:$0xff]   ;;  %v7862_v16 = vld [vmem:[#allocation5 + $0xf0c] ss:$24 sps:$4 sm:$0xff]  }
 0x247   :  { %5802 = vmatprep.subr.bf16.mxu0 %v7793_v34  ;;  %v7865_v34 = vld [vmem:[#allocation5 + $0xf14] ss:$24 sps:$4 sm:$0xff]  }
 0x249   :  { %5395 = vmatpush1.bf16.msra.mxu1 %v7788_v18  ;;  %v7860_v18 = vld [vmem:[#allocation5 + $0xf08] ss:$24 sps:$4 sm:$0xff]  }
 0x24a   :  { %5803 = vmatpush1.bf16.msra.mxu0 %v7791_v19  ;;  %5396 = vmatprep.subr.bf16.mxu1 %v7796_v17  ;;  %v7863_v19 = vld [vmem:[#allocation5 + $0xf10] ss:$24 sps:$4 sm:$0xff]   ;;  %v7868_v17 = vld [vmem:[#allocation5 + $0xf3c] ss:$24 sps:$4 sm:$0xff]  }
 0x24b   :  { %5804 = vmatprep.subr.bf16.mxu0 %v7799_v48  ;;  %v7871_v48 = vld [vmem:[#allocation5 + $0xf44] ss:$24 sps:$4 sm:$0xff]  }
 0x24d   :  { %5397 = vmatpush1.bf16.msra.mxu1 %v7794_v52  ;;  %v7866_v52 = vld [vmem:[#allocation5 + $0xf38] ss:$24 sps:$4 sm:$0xff]  }
 0x24e   :  { %5805 = vmatpush1.bf16.msra.mxu0 %v7797_v57  ;;  %5398 = vmatprep.subr.bf16.mxu1 %v7802_v20  ;;  %v7869_v57 = vld [vmem:[#allocation5 + $0xf40] ss:$24 sps:$4 sm:$0xff]   ;;  %v7874_v20 = vld [vmem:[#allocation5 + $0xf6c] ss:$24 sps:$4 sm:$0xff]  }
 0x24f   :  { %5806 = vmatprep.subr.bf16.mxu0 %v7805_v21  ;;  %v7877_v21 = vld [vmem:[#allocation5 + $0xf74] ss:$24 sps:$4 sm:$0xff]  }
 0x251   :  { %5399 = vmatpush1.bf16.msra.mxu1 %v7800_v26  ;;  %v7872_v26 = vld [vmem:[#allocation5 + $0xf68] ss:$24 sps:$4 sm:$0xff]  }
 0x252   :  { %5807 = vmatpush1.bf16.msra.mxu0 %v7803_v55  ;;  %5400 = vmatprep.subr.bf16.mxu1 %v7808_v39  ;;  %v7875_v55 = vld [vmem:[#allocation5 + $0xf70] ss:$24 sps:$4 sm:$0xff]   ;;  %v7880_v39 = vld [vmem:[#allocation5 + $0xf9c] ss:$24 sps:$4 sm:$0xff]  }
 0x253   :  { %5808 = vmatprep.subr.bf16.mxu0 %v7811_v27  ;;  %v7878_v27 = vld [vmem:[#allocation5 + $0xf98] ss:$24 sps:$4 sm:$0xff]  }
 0x255   :  { %5401 = vmatpush1.bf16.msra.mxu1 %v7806_v28  ;;  %v7881_v28 = vld [vmem:[#allocation5 + $0xfa0] ss:$24 sps:$4 sm:$0xff]  }
 0x256   :  { %5809 = vmatpush1.bf16.msra.mxu0 %v7809_v29  ;;  %5402 = vmatprep.subr.bf16.mxu1 %v7814_v49  ;;  %v7886_v29 = vld [vmem:[#allocation5 + $0xfcc] ss:$24 sps:$4 sm:$0xff]   ;;  %v7884_v49 = vld [vmem:[#allocation5 + $0xfc8] ss:$24 sps:$4 sm:$0xff]  }
 0x257   :  { %5810 = vmatprep.subr.bf16.mxu0 %v7817_v32  ;;  %v7887_v32 = vld [vmem:[#allocation5 + $0xfd0] ss:$24 sps:$4 sm:$0xff]  }
 0x259   :  { %5403 = vmatpush1.bf16.msra.mxu1 %v7812_v33  ;;  %v7892_v33 = vld [vmem:[#allocation5 + $0xffc] ss:$24 sps:$4 sm:$0xff]  }
 0x25a   :  { %5811 = vmatpush1.bf16.msra.mxu0 %v7815_v37  ;;  %5404 = vmatprep.subr.bf16.mxu1 %v7820_v62  ;;  %v7890_v37 = vld [vmem:[#allocation5 + $0xff8] ss:$24 sps:$4 sm:$0xff]  }
 0x25b   :  { %5812 = vmatprep.subr.bf16.mxu0 %v7823_v38  ;;  %v7893_v62 = vld [vmem:[#allocation5 + $0x1000] ss:$24 sps:$4 sm:$0xff]   ;;  %v7898_v38 = vld [vmem:[#allocation5 + $0x102c] ss:$24 sps:$4 sm:$0xff]  }
 0x25d   :  { %5405 = vmatpush1.bf16.msra.mxu1 %v7818_v42  ;;  %v7901_v42 = vld [vmem:[#allocation5 + $0x1034] ss:$24 sps:$4 sm:$0xff]  }
 0x25e   :  { %5813 = vmatpush1.bf16.msra.mxu0 %v7821_v43  ;;  %5406 = vmatprep.subr.bf16.mxu1 %v7826_v51  ;;  %v7896_v43 = vld [vmem:[#allocation5 + $0x1028] ss:$24 sps:$4 sm:$0xff]   ;;  %v7904_v51 = vld [vmem:[#allocation5 + $0x105c] ss:$24 sps:$4 sm:$0xff]  }
 0x25f   :  { %5814 = vmatprep.subr.bf16.mxu0 %v7829_v14  ;;  %v7907_v14 = vld [vmem:[#allocation5 + $0x1064] ss:$24 sps:$4 sm:$0xff]  }
 0x261   :  { %5407 = vmatpush1.bf16.msra.mxu1 %v7824_v4  ;;  %v7902_v4 = vld [vmem:[#allocation5 + $0x1058] ss:$24 sps:$4 sm:$0xff]  }
 0x262   :  { %5815 = vmatpush1.bf16.msra.mxu0 %v7827_v54  ;;  %5408 = vmatprep.subr.bf16.mxu1 %v7832_v60  ;;  %v7905_v54 = vld [vmem:[#allocation5 + $0x1060] ss:$24 sps:$4 sm:$0xff]   ;;  %v7910_v60 = vld [vmem:[#allocation5 + $0x108c] ss:$24 sps:$4 sm:$0xff]  }
 0x263   :  { %5816 = vmatprep.subr.bf16.mxu0 %v7835_v61  ;;  %v7913_v61 = vld [vmem:[#allocation5 + $0x1094] ss:$24 sps:$4 sm:$0xff]  }
 0x265   :  { %5409 = vmatpush1.bf16.msra.mxu1 %v7830_v36  ;;  %v7908_v36 = vld [vmem:[#allocation5 + $0x1088] ss:$24 sps:$4 sm:$0xff]  }
 0x266   :  { %5817 = vmatpush1.bf16.msra.mxu0 %v7833_v0  ;;  %5410 = vmatprep.subr.bf16.mxu1 %v7838_v1  ;;  %v7911_v0 = vld [vmem:[#allocation5 + $0x1090] ss:$24 sps:$4 sm:$0xff]   ;;  %v7916_v1 = vld [vmem:[#allocation5 + $0x10bc] ss:$24 sps:$4 sm:$0xff]  }
 0x267   :  { %5818 = vmatprep.subr.bf16.mxu0 %v7841_v2  ;;  %v7919_v2 = vld [vmem:[#allocation5 + $0x10c4] ss:$24 sps:$4 sm:$0xff]  }
 0x269   :  { %5411 = vmatpush1.bf16.msra.mxu1 %v7836_v46  ;;  %v7914_v46 = vld [vmem:[#allocation5 + $0x10b8] ss:$24 sps:$4 sm:$0xff]  }
 0x26a   :  { %5819 = vmatpush1.bf16.msra.mxu0 %v7839_v22  ;;  %5412 = vmatprep.subr.bf16.mxu1 %v7844_v3  ;;  %v7917_v22 = vld [vmem:[#allocation5 + $0x10c0] ss:$24 sps:$4 sm:$0xff]   ;;  %v7922_v3 = vld [vmem:[#allocation5 + $0x10ec] ss:$24 sps:$4 sm:$0xff]  }
 0x26b   :  { %5820 = vmatprep.subr.bf16.mxu0 %v7847_v6  ;;  %v7925_v6 = vld [vmem:[#allocation5 + $0x10f4] ss:$24 sps:$4 sm:$0xff]  }
 0x26d   :  { %5413 = vmatpush1.bf16.msra.mxu1 %v7842_v8  ;;  %v7920_v8 = vld [vmem:[#allocation5 + $0x10e8] ss:$24 sps:$4 sm:$0xff]  }
 0x26e   :  { %5821 = vmatpush1.bf16.msra.mxu0 %v7845_v30  ;;  %5414 = vmatprep.subr.bf16.mxu1 %v7850_v9  ;;  %v7923_v30 = vld [vmem:[#allocation5 + $0x10f0] ss:$24 sps:$4 sm:$0xff]   ;;  %v7928_v9 = vld [vmem:[#allocation5 + $0x111c] ss:$24 sps:$4 sm:$0xff]  }
 0x26f   :  { %5822 = vmatprep.subr.bf16.mxu0 %v7853_v10  ;;  %v7931_v10 = vld [vmem:[#allocation5 + $0x1124] ss:$24 sps:$4 sm:$0xff]  }
 0x271   :  { %5415 = vmatpush1.bf16.msra.mxu1 %v7848_v53  ;;  %v7926_v53 = vld [vmem:[#allocation5 + $0x1118] ss:$24 sps:$4 sm:$0xff]  }
 0x272   :  { %5823 = vmatpush1.bf16.msra.mxu0 %v7851_v11  ;;  %5416 = vmatprep.subr.bf16.mxu1 %v7856_v12  ;;  %v7929_v11 = vld [vmem:[#allocation5 + $0x1120] ss:$24 sps:$4 sm:$0xff]   ;;  %v7934_v12 = vld [vmem:[#allocation5 + $0x114c] ss:$24 sps:$4 sm:$0xff]  }
 0x273   :  { %5824 = vmatprep.subr.bf16.mxu0 %v7859_v24  ;;  %v7937_v24 = vld [vmem:[#allocation5 + $0x1154] ss:$24 sps:$4 sm:$0xff]  }
 0x275   :  { %5417 = vmatpush1.bf16.msra.mxu1 %v7854_v44  ;;  %v7932_v44 = vld [vmem:[#allocation5 + $0x1148] ss:$24 sps:$4 sm:$0xff]  }
 0x276   :  { %5825 = vmatpush1.bf16.msra.mxu0 %v7857_v13  ;;  %5437 = vmatprep.subr.bf16.mxu1 %v7862_v16  ;;  %v7935_v13 = vld [vmem:[#allocation5 + $0x1150] ss:$24 sps:$4 sm:$0xff]   ;;  %v7940_v16 = vld [vmem:[#allocation5 + $0x117c] ss:$24 sps:$4 sm:$0xff]  }
 0x277   :  { %5845 = vmatprep.subr.bf16.mxu0 %v7865_v34  ;;  %v7943_v34 = vld [vmem:[#allocation5 + $0x1184] ss:$24 sps:$4 sm:$0xff]  }
 0x278   :  { %5419 = vmatmul.mubr.bf16.vlgmr.msra.gmra.mrb[8].mxu1 %v8317_v15 }
 0x279   :  { %5827 = vmatmul.mubr.bf16.vlgmr.msra.gmra.mrb[8].mxu0 %v8317_v15  ;;  %5438 = vmatpush1.bf16.msra.mxu1 %v7860_v18  ;;  %v7883_v15 = vld [vmem:[#allocation5 + $0xfa4] ss:$24 sps:$4 sm:$0xff]   ;;  %v7938_v18 = vld [vmem:[#allocation5 + $0x1178] ss:$24 sps:$4 sm:$0xff]  }
 0x27a   :  { %5846 = vmatpush1.bf16.msra.mxu0 %v7863_v19  ;;  %5439 = vmatprep.subr.bf16.mxu1 %v7868_v17  ;;  %v7941_v19 = vld [vmem:[#allocation5 + $0x1180] ss:$24 sps:$4 sm:$0xff]   ;;  %v7946_v17 = vld [vmem:[#allocation5 + $0x11ac] ss:$24 sps:$4 sm:$0xff]  }
 0x27b   :  { %5847 = vmatprep.subr.bf16.mxu0 %v7871_v48  ;;  %5428 = vmatprep.mubr.bf16.mxu1 %v8323_v41  ;;  %v7949_v48 = vld [vmem:[#allocation5 + $0x11b4] ss:$24 sps:$4 sm:$0xff]  }
 0x27c   :  { %5836 = vmatprep.mubr.bf16.mxu0 %v8323_v41  ;;  %v7889_v41 = vld [vmem:[#allocation5 + $0xfd4] ss:$24 sps:$4 sm:$0xff]  }
 0x27d   :  { %5440 = vmatpush1.bf16.msra.mxu1 %v7866_v52  ;;  %v7944_v52 = vld [vmem:[#allocation5 + $0x11a8] ss:$24 sps:$4 sm:$0xff]  }
 0x27e   :  { %5848 = vmatpush1.bf16.msra.mxu0 %v7869_v57  ;;  %5441 = vmatprep.subr.bf16.mxu1 %v7874_v20  ;;  %v7947_v57 = vld [vmem:[#allocation5 + $0x11b0] ss:$24 sps:$4 sm:$0xff]   ;;  %v7952_v20 = vld [vmem:[#allocation5 + $0x11dc] ss:$24 sps:$4 sm:$0xff]  }
 0x27f   :  { %5849 = vmatprep.subr.bf16.mxu0 %v7877_v21  ;;  %v7955_v21 = vld [vmem:[#allocation5 + $0x11e4] ss:$24 sps:$4 sm:$0xff]  }
 0x280   :  { %5429 = vmatmul.mubr.bf16.gmra.mrb[12].mxu1 %v8329_v47 }
 0x281   :  { %5837 = vmatmul.mubr.bf16.gmra.mrb[12].mxu0 %v8329_v47  ;;  %5442 = vmatpush1.bf16.msra.mxu1 %v7872_v26  ;;  %v7895_v47 = vld [vmem:[#allocation5 + $0x1004] ss:$24 sps:$4 sm:$0xff]   ;;  %v7950_v26 = vld [vmem:[#allocation5 + $0x11d8] ss:$24 sps:$4 sm:$0xff]  }
 0x282   :  { %5850 = vmatpush1.bf16.msra.mxu0 %v7875_v55  ;;  %5443 = vmatprep.subr.bf16.mxu1 %v7880_v39  ;;  %v7953_v55 = vld [vmem:[#allocation5 + $0x11e0] ss:$24 sps:$4 sm:$0xff]   ;;  %v7958_v39 = vld [vmem:[#allocation5 + $0x120c] ss:$24 sps:$4 sm:$0xff]  }
 0x283   :  { %5851 = vmatprep.subr.bf16.mxu0 %v7883_v15  ;;  %5469 = vmatprep.mubr.bf16.mxu1 %v8335_v59  ;;  %v7961_v15 = vld [vmem:[#allocation5 + $0x1214] ss:$24 sps:$4 sm:$0xff]  }
 0x284   :  { %5877 = vmatprep.mubr.bf16.mxu0 %v8335_v59  ;;  %v7899_v59 = vld [vmem:[#allocation5 + $0x1030] ss:$24 sps:$4 sm:$0xff]  }
 0x285   :  { %5444 = vmatpush1.bf16.msra.mxu1 %v7878_v27  ;;  %v7956_v27 = vld [vmem:[#allocation5 + $0x1208] ss:$24 sps:$4 sm:$0xff]  }
 0x286   :  { %5852 = vmatpush1.bf16.msra.mxu0 %v7881_v28  ;;  %5445 = vmatprep.subr.bf16.mxu1 %v7886_v29  ;;  %v7959_v28 = vld [vmem:[#allocation5 + $0x1210] ss:$24 sps:$4 sm:$0xff]   ;;  %v7964_v29 = vld [vmem:[#allocation5 + $0x123c] ss:$24 sps:$4 sm:$0xff]  }
 0x287   :  { %5853 = vmatprep.subr.bf16.mxu0 %v7889_v41  ;;  %v7967_v41 = vld [vmem:[#allocation5 + $0x1244] ss:$24 sps:$4 sm:$0xff]  }
 0x289   :  { %5446 = vmatpush1.bf16.msra.mxu1 %v7884_v49  ;;  %v7962_v49 = vld [vmem:[#allocation5 + $0x1238] ss:$24 sps:$4 sm:$0xff]  }
 0x28a   :  { %5854 = vmatpush1.bf16.msra.mxu0 %v7887_v32  ;;  %5447 = vmatprep.subr.bf16.mxu1 %v7892_v33  ;;  %v7965_v32 = vld [vmem:[#allocation5 + $0x1240] ss:$24 sps:$4 sm:$0xff]   ;;  %v7970_v33 = vld [vmem:[#allocation5 + $0x126c] ss:$24 sps:$4 sm:$0xff]  }
 0x28b   :  { %5855 = vmatprep.subr.bf16.mxu0 %v7895_v47  ;;  %v7973_v47 = vld [vmem:[#allocation5 + $0x1274] ss:$24 sps:$4 sm:$0xff]  }
 0x28d   :  { %5448 = vmatpush1.bf16.msra.mxu1 %v7890_v37  ;;  %v7968_v37 = vld [vmem:[#allocation5 + $0x1268] ss:$24 sps:$4 sm:$0xff]  }
 0x28e   :  { %5856 = vmatpush1.bf16.msra.mxu0 %v7893_v62  ;;  %5449 = vmatprep.subr.bf16.mxu1 %v7898_v38  ;;  %v7971_v62 = vld [vmem:[#allocation5 + $0x1270] ss:$24 sps:$4 sm:$0xff]   ;;  %v7976_v38 = vld [vmem:[#allocation5 + $0x129c] ss:$24 sps:$4 sm:$0xff]  }
 0x28f   :  { %5857 = vmatprep.subr.bf16.mxu0 %v7901_v42  ;;  %v7974_v42 = vld [vmem:[#allocation5 + $0x1298] ss:$24 sps:$4 sm:$0xff]  }
 0x291   :  { %5450 = vmatpush1.bf16.msra.mxu1 %v7896_v43  ;;  %v7977_v43 = vld [vmem:[#allocation5 + $0x12a0] ss:$24 sps:$4 sm:$0xff]  }
 0x292   :  { %5858 = vmatpush1.bf16.msra.mxu0 %v7899_v59  ;;  %5451 = vmatprep.subr.bf16.mxu1 %v7904_v51  ;;  %v7982_v59 = vld [vmem:[#allocation5 + $0x12cc] ss:$24 sps:$4 sm:$0xff]   ;;  %v7980_v51 = vld [vmem:[#allocation5 + $0x12c8] ss:$24 sps:$4 sm:$0xff]  }
 0x293   :  { %5859 = vmatprep.subr.bf16.mxu0 %v7907_v14  ;;  %v7983_v14 = vld [vmem:[#allocation5 + $0x12d0] ss:$24 sps:$4 sm:$0xff]  }
 0x295   :  { %5452 = vmatpush1.bf16.msra.mxu1 %v7902_v4  ;;  %v7988_v4 = vld [vmem:[#allocation5 + $0x12fc] ss:$24 sps:$4 sm:$0xff]  }
 0x296   :  { %5860 = vmatpush1.bf16.msra.mxu0 %v7905_v54  ;;  %5453 = vmatprep.subr.bf16.mxu1 %v7910_v60  ;;  %v7986_v54 = vld [vmem:[#allocation5 + $0x12f8] ss:$24 sps:$4 sm:$0xff]  }
 0x297   :  { %5861 = vmatprep.subr.bf16.mxu0 %v7913_v61  ;;  %v7989_v60 = vld [vmem:[#allocation5 + $0x1300] ss:$24 sps:$4 sm:$0xff]   ;;  %v7994_v61 = vld [vmem:[#allocation5 + $0x132c] ss:$24 sps:$4 sm:$0xff]  }
 0x299   :  { %5454 = vmatpush1.bf16.msra.mxu1 %v7908_v36  ;;  %v7997_v36 = vld [vmem:[#allocation5 + $0x1334] ss:$24 sps:$4 sm:$0xff]  }
 0x29a   :  { %5862 = vmatpush1.bf16.msra.mxu0 %v7911_v0  ;;  %5455 = vmatprep.subr.bf16.mxu1 %v7916_v1  ;;  %v7992_v0 = vld [vmem:[#allocation5 + $0x1328] ss:$24 sps:$4 sm:$0xff]   ;;  %v8000_v1 = vld [vmem:[#allocation5 + $0x135c] ss:$24 sps:$4 sm:$0xff]  }
 0x29b   :  { %5863 = vmatprep.subr.bf16.mxu0 %v7919_v2  ;;  %v8003_v2 = vld [vmem:[#allocation5 + $0x1364] ss:$24 sps:$4 sm:$0xff]  }
 0x29d   :  { %5456 = vmatpush1.bf16.msra.mxu1 %v7914_v46  ;;  %v7998_v46 = vld [vmem:[#allocation5 + $0x1358] ss:$24 sps:$4 sm:$0xff]  }
 0x29e   :  { %5864 = vmatpush1.bf16.msra.mxu0 %v7917_v22  ;;  %5457 = vmatprep.subr.bf16.mxu1 %v7922_v3  ;;  %v8001_v22 = vld [vmem:[#allocation5 + $0x1360] ss:$24 sps:$4 sm:$0xff]   ;;  %v8006_v3 = vld [vmem:[#allocation5 + $0x138c] ss:$24 sps:$4 sm:$0xff]  }
 0x29f   :  { %5865 = vmatprep.subr.bf16.mxu0 %v7925_v6  ;;  %v8009_v6 = vld [vmem:[#allocation5 + $0x1394] ss:$24 sps:$4 sm:$0xff]  }
 0x2a1   :  { %5458 = vmatpush1.bf16.msra.mxu1 %v7920_v8  ;;  %v8004_v8 = vld [vmem:[#allocation5 + $0x1388] ss:$24 sps:$4 sm:$0xff]  }
 0x2a2   :  { %5866 = vmatpush1.bf16.msra.mxu0 %v7923_v30  ;;  %5459 = vmatprep.subr.bf16.mxu1 %v7928_v9  ;;  %v8007_v30 = vld [vmem:[#allocation5 + $0x1390] ss:$24 sps:$4 sm:$0xff]   ;;  %v8012_v9 = vld [vmem:[#allocation5 + $0x13bc] ss:$24 sps:$4 sm:$0xff]  }
 0x2a3   :  { %5867 = vmatprep.subr.bf16.mxu0 %v7931_v10  ;;  %v8015_v10 = vld [vmem:[#allocation5 + $0x13c4] ss:$24 sps:$4 sm:$0xff]  }
 0x2a5   :  { %5460 = vmatpush1.bf16.msra.mxu1 %v7926_v53  ;;  %v8010_v53 = vld [vmem:[#allocation5 + $0x13b8] ss:$24 sps:$4 sm:$0xff]  }
 0x2a6   :  { %5868 = vmatpush1.bf16.msra.mxu0 %v7929_v11  ;;  %5461 = vmatprep.subr.bf16.mxu1 %v7934_v12  ;;  %v8013_v11 = vld [vmem:[#allocation5 + $0x13c0] ss:$24 sps:$4 sm:$0xff]   ;;  %v8018_v12 = vld [vmem:[#allocation5 + $0x13ec] ss:$24 sps:$4 sm:$0xff]  }
 0x2a7   :  { %5869 = vmatprep.subr.bf16.mxu0 %v7937_v24  ;;  %v8021_v24 = vld [vmem:[#allocation5 + $0x13f4] ss:$24 sps:$4 sm:$0xff]  }
 0x2a9   :  { %5462 = vmatpush1.bf16.msra.mxu1 %v7932_v44  ;;  %v8016_v44 = vld [vmem:[#allocation5 + $0x13e8] ss:$24 sps:$4 sm:$0xff]  }
 0x2aa   :  { %5870 = vmatpush1.bf16.msra.mxu0 %v7935_v13  ;;  %5463 = vmatprep.subr.bf16.mxu1 %v7940_v16  ;;  %v8019_v13 = vld [vmem:[#allocation5 + $0x13f0] ss:$24 sps:$4 sm:$0xff]   ;;  %v8024_v16 = vld [vmem:[#allocation5 + $0x141c] ss:$24 sps:$4 sm:$0xff]  }
 0x2ab   :  { %5871 = vmatprep.subr.bf16.mxu0 %v7943_v34  ;;  %v8027_v34 = vld [vmem:[#allocation5 + $0x1424] ss:$24 sps:$4 sm:$0xff]  }
 0x2ad   :  { %5464 = vmatpush1.bf16.msra.mxu1 %v7938_v18  ;;  %v8022_v18 = vld [vmem:[#allocation5 + $0x1418] ss:$24 sps:$4 sm:$0xff]  }
 0x2ae   :  { %5872 = vmatpush1.bf16.msra.mxu0 %v7941_v19  ;;  %5465 = vmatprep.subr.bf16.mxu1 %v7946_v17  ;;  %v8025_v19 = vld [vmem:[#allocation5 + $0x1420] ss:$24 sps:$4 sm:$0xff]   ;;  %v8030_v17 = vld [vmem:[#allocation5 + $0x144c] ss:$24 sps:$4 sm:$0xff]  }
 0x2af   :  { %5873 = vmatprep.subr.bf16.mxu0 %v7949_v48  ;;  %v8033_v48 = vld [vmem:[#allocation5 + $0x1454] ss:$24 sps:$4 sm:$0xff]  }
 0x2b1   :  { %5466 = vmatpush1.bf16.msra.mxu1 %v7944_v52  ;;  %v8028_v52 = vld [vmem:[#allocation5 + $0x1448] ss:$24 sps:$4 sm:$0xff]  }
 0x2b2   :  { %5874 = vmatpush1.bf16.msra.mxu0 %v7947_v57  ;;  %5467 = vmatprep.subr.bf16.mxu1 %v7952_v20  ;;  %v8031_v57 = vld [vmem:[#allocation5 + $0x1450] ss:$24 sps:$4 sm:$0xff]   ;;  %v8036_v20 = vld [vmem:[#allocation5 + $0x147c] ss:$24 sps:$4 sm:$0xff]  }
 0x2b3   :  { %5875 = vmatprep.subr.bf16.mxu0 %v7955_v21  ;;  %v8039_v21 = vld [vmem:[#allocation5 + $0x1484] ss:$24 sps:$4 sm:$0xff]  }
 0x2b5   :  { %5468 = vmatpush1.bf16.msra.mxu1 %v7950_v26  ;;  %v8034_v26 = vld [vmem:[#allocation5 + $0x1478] ss:$24 sps:$4 sm:$0xff]  }
 0x2b6   :  { %5876 = vmatpush1.bf16.msra.mxu0 %v7953_v55  ;;  %5488 = vmatprep.subr.bf16.mxu1 %v7958_v39  ;;  %v8037_v55 = vld [vmem:[#allocation5 + $0x1480] ss:$24 sps:$4 sm:$0xff]   ;;  %v8042_v39 = vld [vmem:[#allocation5 + $0x14ac] ss:$24 sps:$4 sm:$0xff]  }
 0x2b7   :  { %5896 = vmatprep.subr.bf16.mxu0 %v7961_v15  ;;  %v8045_v15 = vld [vmem:[#allocation5 + $0x14b4] ss:$24 sps:$4 sm:$0xff]  }
 0x2b8   :  { %5470 = vmatmul.mubr.bf16.vlgmr.msra.gmra.mrb[8].mxu1 %v8341_v40 }
 0x2b9   :  { %5878 = vmatmul.mubr.bf16.vlgmr.msra.gmra.mrb[8].mxu0 %v8341_v40  ;;  %5489 = vmatpush1.bf16.msra.mxu1 %v7956_v27  ;;  %v7979_v40 = vld [vmem:[#allocation5 + $0x12a4] ss:$24 sps:$4 sm:$0xff]   ;;  %v8040_v27 = vld [vmem:[#allocation5 + $0x14a8] ss:$24 sps:$4 sm:$0xff]  }
 0x2ba   :  { %5897 = vmatpush1.bf16.msra.mxu0 %v7959_v28  ;;  %5490 = vmatprep.subr.bf16.mxu1 %v7964_v29  ;;  %v8043_v28 = vld [vmem:[#allocation5 + $0x14b0] ss:$24 sps:$4 sm:$0xff]   ;;  %v8048_v29 = vld [vmem:[#allocation5 + $0x14dc] ss:$24 sps:$4 sm:$0xff]  }
 0x2bb   :  { %5898 = vmatprep.subr.bf16.mxu0 %v7967_v41  ;;  %5479 = vmatprep.mubr.bf16.mxu1 %v8347_v56  ;;  %v8051_v41 = vld [vmem:[#allocation5 + $0x14e4] ss:$24 sps:$4 sm:$0xff]  }
 0x2bc   :  { %5887 = vmatprep.mubr.bf16.mxu0 %v8347_v56  ;;  %v7985_v56 = vld [vmem:[#allocation5 + $0x12d4] ss:$24 sps:$4 sm:$0xff]  }
 0x2bd   :  { %5491 = vmatpush1.bf16.msra.mxu1 %v7962_v49  ;;  %v8046_v49 = vld [vmem:[#allocation5 + $0x14d8] ss:$24 sps:$4 sm:$0xff]  }
 0x2be   :  { %5899 = vmatpush1.bf16.msra.mxu0 %v7965_v32  ;;  %5492 = vmatprep.subr.bf16.mxu1 %v7970_v33  ;;  %v8049_v32 = vld [vmem:[#allocation5 + $0x14e0] ss:$24 sps:$4 sm:$0xff]   ;;  %v8054_v33 = vld [vmem:[#allocation5 + $0x150c] ss:$24 sps:$4 sm:$0xff]  }
 0x2bf   :  { %5900 = vmatprep.subr.bf16.mxu0 %v7973_v47  ;;  %v8057_v47 = vld [vmem:[#allocation5 + $0x1514] ss:$24 sps:$4 sm:$0xff]  }
 0x2c0   :  { %5480 = vmatmul.mubr.bf16.gmra.mrb[12].mxu1 %v8353_v63 }
 0x2c1   :  { %5888 = vmatmul.mubr.bf16.gmra.mrb[12].mxu0 %v8353_v63  ;;  %5493 = vmatpush1.bf16.msra.mxu1 %v7968_v37  ;;  %v7991_v63 = vld [vmem:[#allocation5 + $0x1304] ss:$24 sps:$4 sm:$0xff]   ;;  %v8052_v37 = vld [vmem:[#allocation5 + $0x1508] ss:$24 sps:$4 sm:$0xff]  }
 0x2c2   :  { %5901 = vmatpush1.bf16.msra.mxu0 %v7971_v62  ;;  %5494 = vmatprep.subr.bf16.mxu1 %v7976_v38  ;;  %v8055_v62 = vld [vmem:[#allocation5 + $0x1510] ss:$24 sps:$4 sm:$0xff]   ;;  %v8060_v38 = vld [vmem:[#allocation5 + $0x153c] ss:$24 sps:$4 sm:$0xff]  }
 0x2c3   :  { %5902 = vmatprep.subr.bf16.mxu0 %v7979_v40  ;;  %5520 = vmatprep.mubr.bf16.mxu1 %v8359_v7  ;;  %v8063_v40 = vld [vmem:[#allocation5 + $0x1544] ss:$24 sps:$4 sm:$0xff]  }
 0x2c4   :  { %5928 = vmatprep.mubr.bf16.mxu0 %v8359_v7  ;;  %v7995_v7 = vld [vmem:[#allocation5 + $0x1330] ss:$24 sps:$4 sm:$0xff]  }
 0x2c5   :  { %5495 = vmatpush1.bf16.msra.mxu1 %v7974_v42  ;;  %v8058_v42 = vld [vmem:[#allocation5 + $0x1538] ss:$24 sps:$4 sm:$0xff]  }
 0x2c6   :  { %5903 = vmatpush1.bf16.msra.mxu0 %v7977_v43  ;;  %5496 = vmatprep.subr.bf16.mxu1 %v7982_v59  ;;  %v8061_v43 = vld [vmem:[#allocation5 + $0x1540] ss:$24 sps:$4 sm:$0xff]   ;;  %v8066_v59 = vld [vmem:[#allocation5 + $0x156c] ss:$24 sps:$4 sm:$0xff]  }
 0x2c7   :  { %5904 = vmatprep.subr.bf16.mxu0 %v7985_v56  ;;  %v8069_v56 = vld [vmem:[#allocation5 + $0x1574] ss:$24 sps:$4 sm:$0xff]  }
 0x2c9   :  { %5497 = vmatpush1.bf16.msra.mxu1 %v7980_v51  ;;  %v8064_v51 = vld [vmem:[#allocation5 + $0x1568] ss:$24 sps:$4 sm:$0xff]  }
 0x2ca   :  { %5905 = vmatpush1.bf16.msra.mxu0 %v7983_v14  ;;  %5498 = vmatprep.subr.bf16.mxu1 %v7988_v4  ;;  %v8067_v14 = vld [vmem:[#allocation5 + $0x1570] ss:$24 sps:$4 sm:$0xff]   ;;  %v8072_v4 = vld [vmem:[#allocation5 + $0x159c] ss:$24 sps:$4 sm:$0xff]  }
 0x2cb   :  { %5906 = vmatprep.subr.bf16.mxu0 %v7991_v63  ;;  %v8070_v63 = vld [vmem:[#allocation5 + $0x1598] ss:$24 sps:$4 sm:$0xff]  }
 0x2cd   :  { %5499 = vmatpush1.bf16.msra.mxu1 %v7986_v54  ;;  %v8073_v54 = vld [vmem:[#allocation5 + $0x15a0] ss:$24 sps:$4 sm:$0xff]  }
 0x2ce   :  { %5907 = vmatpush1.bf16.msra.mxu0 %v7989_v60  ;;  %5500 = vmatprep.subr.bf16.mxu1 %v7994_v61  ;;  %v8078_v60 = vld [vmem:[#allocation5 + $0x15cc] ss:$24 sps:$4 sm:$0xff]   ;;  %v8076_v61 = vld [vmem:[#allocation5 + $0x15c8] ss:$24 sps:$4 sm:$0xff]  }
 0x2cf   :  { %5908 = vmatprep.subr.bf16.mxu0 %v7997_v36  ;;  %v8079_v36 = vld [vmem:[#allocation5 + $0x15d0] ss:$24 sps:$4 sm:$0xff]  }
 0x2d1   :  { %5501 = vmatpush1.bf16.msra.mxu1 %v7992_v0  ;;  %v8084_v0 = vld [vmem:[#allocation5 + $0x15fc] ss:$24 sps:$4 sm:$0xff]  }
 0x2d2   :  { %5909 = vmatpush1.bf16.msra.mxu0 %v7995_v7  ;;  %5502 = vmatprep.subr.bf16.mxu1 %v8000_v1  ;;  %v8082_v7 = vld [vmem:[#allocation5 + $0x15f8] ss:$24 sps:$4 sm:$0xff]  }
 0x2d3   :  { %5910 = vmatprep.subr.bf16.mxu0 %v8003_v2  ;;  %v8085_v1 = vld [vmem:[#allocation5 + $0x1600] ss:$24 sps:$4 sm:$0xff]   ;;  %v8090_v2 = vld [vmem:[#allocation5 + $0x162c] ss:$24 sps:$4 sm:$0xff]  }
 0x2d5   :  { %5503 = vmatpush1.bf16.msra.mxu1 %v7998_v46  ;;  %v8093_v46 = vld [vmem:[#allocation5 + $0x1634] ss:$24 sps:$4 sm:$0xff]  }
 0x2d6   :  { %5911 = vmatpush1.bf16.msra.mxu0 %v8001_v22  ;;  %5504 = vmatprep.subr.bf16.mxu1 %v8006_v3  ;;  %v8088_v22 = vld [vmem:[#allocation5 + $0x1628] ss:$24 sps:$4 sm:$0xff]   ;;  %v8096_v3 = vld [vmem:[#allocation5 + $0x165c] ss:$24 sps:$4 sm:$0xff]  }
 0x2d7   :  { %5912 = vmatprep.subr.bf16.mxu0 %v8009_v6  ;;  %v8099_v6 = vld [vmem:[#allocation5 + $0x1664] ss:$24 sps:$4 sm:$0xff]  }
 0x2d9   :  { %5505 = vmatpush1.bf16.msra.mxu1 %v8004_v8  ;;  %v8094_v8 = vld [vmem:[#allocation5 + $0x1658] ss:$24 sps:$4 sm:$0xff]  }
 0x2da   :  { %5913 = vmatpush1.bf16.msra.mxu0 %v8007_v30  ;;  %5506 = vmatprep.subr.bf16.mxu1 %v8012_v9  ;;  %v8097_v30 = vld [vmem:[#allocation5 + $0x1660] ss:$24 sps:$4 sm:$0xff]   ;;  %v8102_v9 = vld [vmem:[#allocation5 + $0x168c] ss:$24 sps:$4 sm:$0xff]  }
 0x2db   :  { %5914 = vmatprep.subr.bf16.mxu0 %v8015_v10  ;;  %v8105_v10 = vld [vmem:[#allocation5 + $0x1694] ss:$24 sps:$4 sm:$0xff]  }
 0x2dd   :  { %5507 = vmatpush1.bf16.msra.mxu1 %v8010_v53  ;;  %v8100_v53 = vld [vmem:[#allocation5 + $0x1688] ss:$24 sps:$4 sm:$0xff]  }
 0x2de   :  { %5915 = vmatpush1.bf16.msra.mxu0 %v8013_v11  ;;  %5508 = vmatprep.subr.bf16.mxu1 %v8018_v12  ;;  %v8103_v11 = vld [vmem:[#allocation5 + $0x1690] ss:$24 sps:$4 sm:$0xff]   ;;  %v8108_v12 = vld [vmem:[#allocation5 + $0x16bc] ss:$24 sps:$4 sm:$0xff]  }
 0x2df   :  { %5916 = vmatprep.subr.bf16.mxu0 %v8021_v24  ;;  %v8111_v24 = vld [vmem:[#allocation5 + $0x16c4] ss:$24 sps:$4 sm:$0xff]  }
 0x2e1   :  { %5509 = vmatpush1.bf16.msra.mxu1 %v8016_v44  ;;  %v8106_v44 = vld [vmem:[#allocation5 + $0x16b8] ss:$24 sps:$4 sm:$0xff]  }
 0x2e2   :  { %5917 = vmatpush1.bf16.msra.mxu0 %v8019_v13  ;;  %5510 = vmatprep.subr.bf16.mxu1 %v8024_v16  ;;  %v8109_v13 = vld [vmem:[#allocation5 + $0x16c0] ss:$24 sps:$4 sm:$0xff]   ;;  %v8114_v16 = vld [vmem:[#allocation5 + $0x16ec] ss:$24 sps:$4 sm:$0xff]  }
 0x2e3   :  { %5918 = vmatprep.subr.bf16.mxu0 %v8027_v34  ;;  %v8117_v34 = vld [vmem:[#allocation5 + $0x16f4] ss:$24 sps:$4 sm:$0xff]  }
 0x2e5   :  { %5511 = vmatpush1.bf16.msra.mxu1 %v8022_v18  ;;  %v8112_v18 = vld [vmem:[#allocation5 + $0x16e8] ss:$24 sps:$4 sm:$0xff]  }
 0x2e6   :  { %5919 = vmatpush1.bf16.msra.mxu0 %v8025_v19  ;;  %5512 = vmatprep.subr.bf16.mxu1 %v8030_v17  ;;  %v8115_v19 = vld [vmem:[#allocation5 + $0x16f0] ss:$24 sps:$4 sm:$0xff]   ;;  %v8120_v17 = vld [vmem:[#allocation5 + $0x171c] ss:$24 sps:$4 sm:$0xff]  }
 0x2e7   :  { %5920 = vmatprep.subr.bf16.mxu0 %v8033_v48  ;;  %v8123_v48 = vld [vmem:[#allocation5 + $0x1724] ss:$24 sps:$4 sm:$0xff]  }
 0x2e9   :  { %5513 = vmatpush1.bf16.msra.mxu1 %v8028_v52  ;;  %v8118_v52 = vld [vmem:[#allocation5 + $0x1718] ss:$24 sps:$4 sm:$0xff]  }
 0x2ea   :  { %5921 = vmatpush1.bf16.msra.mxu0 %v8031_v57  ;;  %5514 = vmatprep.subr.bf16.mxu1 %v8036_v20  ;;  %v8121_v57 = vld [vmem:[#allocation5 + $0x1720] ss:$24 sps:$4 sm:$0xff]   ;;  %v8126_v20 = vld [vmem:[#allocation5 + $0x174c] ss:$24 sps:$4 sm:$0xff]  }
 0x2eb   :  { %5922 = vmatprep.subr.bf16.mxu0 %v8039_v21  ;;  %v8129_v21 = vld [vmem:[#allocation5 + $0x1754] ss:$24 sps:$4 sm:$0xff]  }
 0x2ed   :  { %5515 = vmatpush1.bf16.msra.mxu1 %v8034_v26  ;;  %v8124_v26 = vld [vmem:[#allocation5 + $0x1748] ss:$24 sps:$4 sm:$0xff]  }
 0x2ee   :  { %5923 = vmatpush1.bf16.msra.mxu0 %v8037_v55  ;;  %5516 = vmatprep.subr.bf16.mxu1 %v8042_v39  ;;  %v8127_v55 = vld [vmem:[#allocation5 + $0x1750] ss:$24 sps:$4 sm:$0xff]   ;;  %v8132_v39 = vld [vmem:[#allocation5 + $0x177c] ss:$24 sps:$4 sm:$0xff]  }
 0x2ef   :  { %5924 = vmatprep.subr.bf16.mxu0 %v8045_v15  ;;  %v8135_v15 = vld [vmem:[#allocation5 + $0x1784] ss:$24 sps:$4 sm:$0xff]  }
 0x2f1   :  { %5517 = vmatpush1.bf16.msra.mxu1 %v8040_v27  ;;  %v8130_v27 = vld [vmem:[#allocation5 + $0x1778] ss:$24 sps:$4 sm:$0xff]  }
 0x2f2   :  { %5925 = vmatpush1.bf16.msra.mxu0 %v8043_v28  ;;  %5518 = vmatprep.subr.bf16.mxu1 %v8048_v29  ;;  %v8133_v28 = vld [vmem:[#allocation5 + $0x1780] ss:$24 sps:$4 sm:$0xff]   ;;  %v8138_v29 = vld [vmem:[#allocation5 + $0x17ac] ss:$24 sps:$4 sm:$0xff]  }
 0x2f3   :  { %5926 = vmatprep.subr.bf16.mxu0 %v8051_v41  ;;  %v8141_v41 = vld [vmem:[#allocation5 + $0x17b4] ss:$24 sps:$4 sm:$0xff]  }
 0x2f5   :  { %5519 = vmatpush1.bf16.msra.mxu1 %v8046_v49  ;;  %v8136_v49 = vld [vmem:[#allocation5 + $0x17a8] ss:$24 sps:$4 sm:$0xff]  }
 0x2f6   :  { %5927 = vmatpush1.bf16.msra.mxu0 %v8049_v32  ;;  %5539 = vmatprep.subr.bf16.mxu1 %v8054_v33  ;;  %v8139_v32 = vld [vmem:[#allocation5 + $0x17b0] ss:$24 sps:$4 sm:$0xff]   ;;  %v8144_v33 = vld [vmem:[#allocation5 + $0x17dc] ss:$24 sps:$4 sm:$0xff]  }
 0x2f7   :  { %5947 = vmatprep.subr.bf16.mxu0 %v8057_v47  ;;  %v8147_v47 = vld [vmem:[#allocation5 + $0x17e4] ss:$24 sps:$4 sm:$0xff]  }
 0x2f8   :  { %5521 = vmatmul.mubr.bf16.vlgmr.msra.gmra.mrb[8].mxu1 %v8365_v23 }
 0x2f9   :  { %5929 = vmatmul.mubr.bf16.vlgmr.msra.gmra.mrb[8].mxu0 %v8365_v23  ;;  %5540 = vmatpush1.bf16.msra.mxu1 %v8052_v37  ;;  %v8075_v23 = vld [vmem:[#allocation5 + $0x15a4] ss:$24 sps:$4 sm:$0xff]   ;;  %v8142_v37 = vld [vmem:[#allocation5 + $0x17d8] ss:$24 sps:$4 sm:$0xff]  }
 0x2fa   :  { %5948 = vmatpush1.bf16.msra.mxu0 %v8055_v62  ;;  %5541 = vmatprep.subr.bf16.mxu1 %v8060_v38  ;;  %v8145_v62 = vld [vmem:[#allocation5 + $0x17e0] ss:$24 sps:$4 sm:$0xff]   ;;  %v914_v38 = vsub.s32 2, %v8427_v5 }
 0x2fb   :  { %5949 = vmatprep.subr.bf16.mxu0 %v8063_v40  ;;  %5530 = vmatprep.mubr.bf16.mxu1 %v8369_v31  ;;  %v922_v40 = vsub.s32 4, %v8427_v5 }
 0x2fc   :  { %5938 = vmatprep.mubr.bf16.mxu0 %v8369_v31  ;;  %v8081_v31 = vld [vmem:[#allocation5 + $0x15d4] ss:$24 sps:$4 sm:$0xff]  }
 0x2fd   :  { %5542 = vmatpush1.bf16.msra.mxu1 %v8058_v42  ;;  %v918_v42 = vsub.s32 3, %v8427_v5 }
 0x2fe   :  { %5950 = vmatpush1.bf16.msra.mxu0 %v8061_v43  ;;  %5543 = vmatprep.subr.bf16.mxu1 %v8066_v59  ;;  %v926_v43 = vsub.s32 5, %v8427_v5  ;;  %v8148_v59 = vld [vmem:[#allocation7] sm:$0x3f] }
 0x2ff   :  { %5951 = vmatprep.subr.bf16.mxu0 %v8069_v56  ;;  %v915_v56 = vrot.slane %v8148_v59, %v914_v38 }
 0x300   :  { %5531 = vmatmul.mubr.bf16.gmra.mrb[12].mxu1 %v8377_v45 }
 0x301   :  { %5939 = vmatmul.mubr.bf16.gmra.mrb[12].mxu0 %v8377_v45  ;;  %5544 = vmatpush1.bf16.msra.mxu1 %v8064_v51  ;;  %v8087_v45 = vld [vmem:[#allocation5 + $0x1604] ss:$24 sps:$4 sm:$0xff]   ;;  %v923_v51 = vrot.slane %v8148_v59, %v922_v40 }
 0x302   :  { %5952 = vmatpush1.bf16.msra.mxu0 %v8067_v14  ;;  %5545 = vmatprep.subr.bf16.mxu1 %v8072_v4  ;;  %v927_v14 = vrot.slane %v8148_v59, %v926_v43 }
 0x303   :  { %5953 = vmatprep.subr.bf16.mxu0 %v8075_v23  ;;  %5571 = vmatprep.mubr.bf16.mxu1 %v8381_v58 }
 0x304   :  { %5979 = vmatprep.mubr.bf16.mxu0 %v8381_v58  ;;  %v8091_v58 = vld [vmem:[#allocation5 + $0x1630] ss:$24 sps:$4 sm:$0xff]  }
 0x305   :  { %5546 = vmatpush1.bf16.msra.mxu1 %v8070_v63 }
 0x306   :  { %5954 = vmatpush1.bf16.msra.mxu0 %v8073_v54  ;;  %5547 = vmatprep.subr.bf16.mxu1 %v8078_v60 }
 0x307   :  { %5955 = vmatprep.subr.bf16.mxu0 %v8081_v31 }
 0x309   :  { %5548 = vmatpush1.bf16.msra.mxu1 %v8076_v61 }
 0x30a   :  { %5956 = vmatpush1.bf16.msra.mxu0 %v8079_v36  ;;  %5549 = vmatprep.subr.bf16.mxu1 %v8084_v0 }
 0x30b   :  { %5957 = vmatprep.subr.bf16.mxu0 %v8087_v45 }
 0x30d   :  { %5550 = vmatpush1.bf16.msra.mxu1 %v8082_v7 }
 0x30e   :  { %5958 = vmatpush1.bf16.msra.mxu0 %v8085_v1  ;;  %5551 = vmatprep.subr.bf16.mxu1 %v8090_v2 }
 0x30f   :  { %5959 = vmatprep.subr.bf16.mxu0 %v8093_v46 }
 0x311   :  { %5552 = vmatpush1.bf16.msra.mxu1 %v8088_v22 }
 0x312   :  { %5960 = vmatpush1.bf16.msra.mxu0 %v8091_v58  ;;  %5553 = vmatprep.subr.bf16.mxu1 %v8096_v3 }
 0x313   :  { %5961 = vmatprep.subr.bf16.mxu0 %v8099_v6 }
 0x315   :  { %5554 = vmatpush1.bf16.msra.mxu1 %v8094_v8 }
 0x316   :  { %5962 = vmatpush1.bf16.msra.mxu0 %v8097_v30  ;;  %5555 = vmatprep.subr.bf16.mxu1 %v8102_v9 }
 0x317   :  { %5963 = vmatprep.subr.bf16.mxu0 %v8105_v10 }
 0x319   :  { %5556 = vmatpush1.bf16.msra.mxu1 %v8100_v53 }
 0x31a   :  { %5964 = vmatpush1.bf16.msra.mxu0 %v8103_v11  ;;  %5557 = vmatprep.subr.bf16.mxu1 %v8108_v12 }
 0x31b   :  { %5965 = vmatprep.subr.bf16.mxu0 %v8111_v24 }
 0x31d   :  { %5558 = vmatpush1.bf16.msra.mxu1 %v8106_v44 }
 0x31e   :  { %5966 = vmatpush1.bf16.msra.mxu0 %v8109_v13  ;;  %5559 = vmatprep.subr.bf16.mxu1 %v8114_v16 }
 0x31f   :  { %5967 = vmatprep.subr.bf16.mxu0 %v8117_v34 }
 0x321   :  { %5560 = vmatpush1.bf16.msra.mxu1 %v8112_v18 }
 0x322   :  { %5968 = vmatpush1.bf16.msra.mxu0 %v8115_v19  ;;  %5561 = vmatprep.subr.bf16.mxu1 %v8120_v17 }
 0x323   :  { %5969 = vmatprep.subr.bf16.mxu0 %v8123_v48 }
 0x325   :  { %5562 = vmatpush1.bf16.msra.mxu1 %v8118_v52 }
 0x326   :  { %5970 = vmatpush1.bf16.msra.mxu0 %v8121_v57  ;;  %5563 = vmatprep.subr.bf16.mxu1 %v8126_v20 }
 0x327   :  { %5971 = vmatprep.subr.bf16.mxu0 %v8129_v21 }
 0x329   :  { %5564 = vmatpush1.bf16.msra.mxu1 %v8124_v26 }
 0x32a   :  { %5972 = vmatpush1.bf16.msra.mxu0 %v8127_v55  ;;  %5565 = vmatprep.subr.bf16.mxu1 %v8132_v39 }
 0x32b   :  { %5973 = vmatprep.subr.bf16.mxu0 %v8135_v15 }
 0x32d   :  { %5566 = vmatpush1.bf16.msra.mxu1 %v8130_v27 }
 0x32e   :  { %5974 = vmatpush1.bf16.msra.mxu0 %v8133_v28  ;;  %5567 = vmatprep.subr.bf16.mxu1 %v8138_v29 }
 0x32f   :  { %5975 = vmatprep.subr.bf16.mxu0 %v8141_v41 }
 0x331   :  { %5568 = vmatpush1.bf16.msra.mxu1 %v8136_v49 }
 0x332   :  { %5976 = vmatpush1.bf16.msra.mxu0 %v8139_v32  ;;  %5569 = vmatprep.subr.bf16.mxu1 %v8144_v33 }
 0x333   :  { %5977 = vmatprep.subr.bf16.mxu0 %v8147_v47 }
 0x335   :  { %5570 = vmatpush1.bf16.msra.mxu1 %v8142_v37 }
 0x336   :  { %5978 = vmatpush1.bf16.msra.mxu0 %v8145_v62 }
 0x338   :  { %5572 = vmatmul.mubr.bf16.vlgmr.msra.gmra.mrb[8].mxu1 %v8389_v25 }
 0x339   :  { %5980 = vmatmul.mubr.bf16.vlgmr.msra.gmra.mrb[8].mxu0 %v8389_v25  ;;  %5581 = vmatprep.mubr.bf16.mxu1 %v8393_v35  ;;  %v919_v25 = vrot.slane %v8148_v59, %v918_v42 }
 0x33a   :  { %5989 = vmatprep.mubr.bf16.mxu0 %v8393_v35 }
 0x340   :  { %5582 = vmatmul.mubr.bf16.gmra.mrb[12].mxu1 %v8401_v50 }
 0x341   :  { %5990 = vmatmul.mubr.bf16.gmra.mrb[12].mxu0 %v8401_v50 }
 0x40b   :  { %v5573_v4 = vpop.f32.mrb[8].mxu1 }
 0x40c   :  { %v5981_v23 = vpop.f32.mrb[8].mxu0  ;;  %v6814_v35 = vadd.f32 %v5573_v4, %v915_v56  ;;  %v5575_v54 = vpop.f32.mrb[9].mxu1 }
 0x40d   :  { %v6820_v63 = vadd.f32 %v5981_v23, %v923_v51  ;;  %v5983_v60 = vpop.f32.mrb[9].mxu0  ;;  %v6815_v50 = vadd.f32 %v5575_v54, %v919_v25  ;;  %v5577_v61 = vpop.f32.mrb[10].mxu1 }
 0x40e   :  { %v6821_v31 = vadd.f32 %v5983_v60, %v927_v14  ;;  %v5985_v36 = vpop.f32.mrb[10].mxu0  ;;  %6000 = vst [vmem:[#allocation8 + $0x10] sm:$0xff] %v6814_v35  ;;  %v6816_v0 = vadd.f32 %v5577_v61, %v915_v56  ;;  %v5579_v5 = vpop.f32.mrb[11].mxu1 }
 0x40f   :  { %6002 = vst [vmem:[#allocation8 + $0x20] sm:$0xff] %v6820_v63  ;;  %v6822_v45 = vadd.f32 %v5985_v36, %v923_v51  ;;  %v5987_v7 = vpop.f32.mrb[11].mxu0  ;;  %6001 = vst [vmem:[#allocation8 + $0x18] sm:$0xff] %v6815_v50  ;;  %v6817_v1 = vadd.f32 %v5579_v5, %v919_v25 }
 0x410   :  { %6003 = vst [vmem:[#allocation8 + $0x28] sm:$0xff] %v6821_v31  ;;  %v6823_v2 = vadd.f32 %v5987_v7, %v927_v14  ;;  %6006 = vst [vmem:[#allocation8 + $0x40] sm:$0xff] %v6816_v0 }
 0x411   :  { %6008 = vst [vmem:[#allocation8 + $0x50] sm:$0xff] %v6822_v45  ;;  %6007 = vst [vmem:[#allocation8 + $0x48] sm:$0xff] %v6817_v1 }
 0x412   :  { %6009 = vst [vmem:[#allocation8 + $0x58] sm:$0xff] %v6823_v2 }
 0x413   :  { %v5583_v46 = vpop.f32.mrb[12].mxu1 }
 0x414   :  { %v5991_v22 = vpop.f32.mrb[12].mxu0  ;;  %v6818_v58 = vadd.f32 %v5583_v46, %v915_v56  ;;  %v5585_v6 = vpop.f32.mrb[13].mxu1 }
 0x415   :  { %v6824_v3 = vadd.f32 %v5991_v22, %v923_v51  ;;  %v5993_v8 = vpop.f32.mrb[13].mxu0  ;;  %v6819_v30 = vadd.f32 %v5585_v6, %v919_v25  ;;  %v5587_v10 = vpop.f32.mrb[14].mxu1 }
 0x416   :  { %v6825_v9 = vadd.f32 %v5993_v8, %v927_v14  ;;  %v5995_v53 = vpop.f32.mrb[14].mxu0  ;;  %6012 = vst [vmem:[#allocation8 + $0x70] sm:$0xff] %v6818_v58  ;;  %v5588_v11 = vpop.f32.mrb[15].mxu1 }
 0x417   :  { %6014 = vst [vmem:[#allocation8 + $0x80] sm:$0xff] %v6824_v3  ;;  %v5996_v12 = vpop.f32.mrb[15].mxu0  ;;  %6013 = vst [vmem:[#allocation8 + $0x78] sm:$0xff] %v6819_v30 }
 0x418   :  { %6015 = vst [vmem:[#allocation8 + $0x88] sm:$0xff] %v6825_v9 }
 0x419   :  { %8226 = shalt.err (!%p8223_p0)
}
 0x41a   :  { %s8227_s27 = scalar_lea.hbm %s8492_s3, 2304 }
 0x41b   :  { %p8228_p1 = scmp.ne.s32.totalorder %s8492_s3, %s8227_s27  ;;  %p8231_p2 = scmp.lt.u32.totalorder %s8227_s27, %s8492_s3 }
 0x41d   :  { %p8233_p3 = pnand %p8231_p2, %p8228_p1 }
 0x41f   :  { %8236 = shalt.err (!%p8233_p3)
}
 0x420   :  { %s8251_s5 = smov 768   ;;  %s8252_s6 = smov 48  }
 0x421   :  { %6027 = dma.vmem_to_hbm [thread:$0]  %s6022_s23, 2304, %s8492_s3, [#allocation4], %s8251_s5, %s8251_s5, %s8252_s6  }
 0x422   :  { %8241 = dma.done.wait [#allocation4], 2304  }
 0x423   :  { %8242 = vsyncadd [#allocation4], 4294964992 }
 0x424   :  { %6031 = vsyncpa [#allocation3], 1 }
 0x425   :  { %6032 = vsyncpa [#allocation6], 1 }
 0x426   :  { %6033 = vsyncpa [#allocation4], 1 }

</bundles_post_ra>
